<compile_context>
chip_gen: v7x
topology: tpu7x:2x2x1
jax: 0.10.0
libtpu: 0.0.40
codegen_flags: <defaults>
</compile_context>

<pallas_src>
import functools

import jax
import jax.numpy as jnp
from jax.experimental import pallas as pl
from jax.experimental.pallas import tpu as pltpu

_NEG_SLOPE = 0.2
_VMEM_LIMIT = 32 * 1024 * 1024   # safe on v5e/v6e/v7x (<= physical everywhere)


def _round_up(x, m):
    return ((x + m - 1) // m) * m


def _pick_tiles(M, max_tm=1024):
    """Split M (multiple of 8) into >=2 tiles when possible (megacore)."""
    best = (M, 1)
    for t in (2, 4, 8, 16, 32, 64):
        if M % t == 0 and (M // t) % 8 == 0:
            best = (M // t, t)
            if best[0] <= max_tm:
                return best
    return best


# ------------------------------------------------------------------ kernels

def _fused_conv_kernel(x_ref, w_ref, o_ref, *, Ho, Wo, act):
    # x_ref: (1, (Ho+1)*Wo, K) bf16; w_ref: (2, K, tcp) bf16; o_ref: (1, Ho*Wo, tcp) bf16
    M = Ho * Wo
    a = x_ref[0, 0:M, :]                 # rows hs = ho      (tap dh=0)
    b = x_ref[0, Wo:Wo + M, :]           # rows hs = ho + 1  (tap dh=1)
    acc = jnp.dot(a, w_ref[0], preferred_element_type=jnp.float32)
    acc += jnp.dot(b, w_ref[1], preferred_element_type=jnp.float32)
    if act == "leaky":
        acc = jnp.where(acc >= 0, acc, _NEG_SLOPE * acc)
    elif act == "sigmoid":
        acc = jax.nn.sigmoid(acc)        # exp lands on the EUP slot
    o_ref[...] = acc[None].astype(o_ref.dtype)


def _fused_conv_stats_kernel(x_ref, w_ref, o_ref, sum_ref, sq_ref, *, Ho, Wo):
    # Same conv, plus per-image per-channel sum / sum-of-squares (f32) for BN.
    M = Ho * Wo
    a = x_ref[0, 0:M, :]
    b = x_ref[0, Wo:Wo + M, :]
    acc = jnp.dot(a, w_ref[0], preferred_element_type=jnp.float32)
    acc += jnp.dot(b, w_ref[1], preferred_element_type=jnp.float32)
    o_ref[...] = acc[None].astype(o_ref.dtype)
    sum_ref[...] = jnp.sum(acc, axis=0, keepdims=True)[None]
    sq_ref[...] = jnp.sum(acc * acc, axis=0, keepdims=True)[None]


def _matmul_act_kernel(p_ref, w_ref, o_ref, *, act):
    # Fallback path: one M-tile of the im2col matmul, activation fused.
    y = jnp.dot(p_ref[...], w_ref[...], preferred_element_type=jnp.float32)
    if act == "leaky":
        y = jnp.where(y >= 0, y, _NEG_SLOPE * y)
    elif act == "sigmoid":
        y = jax.nn.sigmoid(y)
    o_ref[...] = y.astype(o_ref.dtype)


def _matmul_stats_kernel(p_ref, w_ref, o_ref, sum_ref, sq_ref):
    # Fallback path: matmul tile + per-tile channel sum / sum-of-squares.
    y = jnp.dot(p_ref[...], w_ref[...], preferred_element_type=jnp.float32)
    o_ref[...] = y.astype(o_ref.dtype)
    sum_ref[...] = jnp.sum(y, axis=0, keepdims=True)[None]
    sq_ref[...] = jnp.sum(y * y, axis=0, keepdims=True)[None]


def _affine_leaky_kernel(x_ref, s_ref, b_ref, o_ref):
    # y = leaky_relu(x * scale + bias); x bf16, scale/bias f32 per channel.
    y = x_ref[...].astype(jnp.float32) * s_ref[...] + b_ref[...]
    o_ref[...] = jnp.where(y >= 0, y, _NEG_SLOPE * y).astype(o_ref.dtype)


# ------------------------------------------------------------------ wrappers

def pallas_fused_conv(x2, w2, Ho, Wo, act=None, stats=False):
    """x2: (N, (Ho+1)*Wo, K) bf16, w2: (2, K, Cp) bf16.

    grid = (N, Cout-tiles); each step computes the whole per-image stride-2
    conv output (Ho*Wo, tcp) as two shifted-row matmuls."""
    N, rows, K = x2.shape
    Cp = w2.shape[-1]
    tcp = 256 if Cp % 256 == 0 else 128
    cpt = Cp // tcp
    M = Ho * Wo

    x_spec = pl.BlockSpec((1, rows, K), lambda n, j: (n, 0, 0))
    w_spec = pl.BlockSpec((2, K, tcp), lambda n, j: (0, 0, j))
    o_spec = pl.BlockSpec((1, M, tcp), lambda n, j: (n, 0, j))
    s_spec = pl.BlockSpec((1, 1, tcp), lambda n, j: (n, 0, j))

    cost = pl.CostEstimate(
        flops=2 * N * M * (2 * K) * Cp,
        transcendentals=N * M * Cp if act == "sigmoid" else 0,
        bytes_accessed=x2.size * 2 + w2.size * 2 + N * M * Cp * 2)

    if stats:
        kern = functools.partial(_fused_conv_stats_kernel, Ho=Ho, Wo=Wo)
        out_shape = (jax.ShapeDtypeStruct((N, M, Cp), jnp.bfloat16),
                     jax.ShapeDtypeStruct((N, 1, Cp), jnp.float32),
                     jax.ShapeDtypeStruct((N, 1, Cp), jnp.float32))
        out_specs = (o_spec, s_spec, s_spec)
    else:
        kern = functools.partial(_fused_conv_kernel, Ho=Ho, Wo=Wo, act=act)
        out_shape = jax.ShapeDtypeStruct((N, M, Cp), jnp.bfloat16)
        out_specs = o_spec

    return pl.pallas_call(
        kern,
        out_shape=out_shape,
        grid_spec=pltpu.PrefetchScalarGridSpec(
            num_scalar_prefetch=0,
            grid=(N, cpt),
            in_specs=[x_spec, w_spec],
            out_specs=out_specs),
        compiler_params=pltpu.CompilerParams(
            dimension_semantics=("parallel", "parallel"),
            vmem_limit_bytes=_VMEM_LIMIT),
        cost_estimate=cost,
    )(x2, w2)


def pallas_conv_act(patches, w_mat, act):
    """Fallback: (M, K)bf16 @ (K, Cp)bf16 -> (M_pad, Cp)bf16, fused act."""
    M, K = patches.shape
    Cp = w_mat.shape[-1]
    M_pad = _round_up(max(M, 8), 8)
    if M_pad != M:
        patches = jnp.pad(patches, ((0, M_pad - M), (0, 0)))
    tm, tiles = _pick_tiles(M_pad, max_tm=512)
    out = pl.pallas_call(
        functools.partial(_matmul_act_kernel, act=act),
        out_shape=jax.ShapeDtypeStruct((M_pad, Cp), jnp.bfloat16),
        grid_spec=pltpu.PrefetchScalarGridSpec(
            num_scalar_prefetch=0,
            grid=(tiles,),
            in_specs=[pl.BlockSpec((tm, K), lambda i: (i, 0)),
                      pl.BlockSpec((K, Cp), lambda i: (0, 0))],
            out_specs=pl.BlockSpec((tm, Cp), lambda i: (i, 0))),
        compiler_params=pltpu.CompilerParams(
            dimension_semantics=("parallel",), vmem_limit_bytes=_VMEM_LIMIT),
        cost_estimate=pl.CostEstimate(
            flops=2 * M_pad * K * Cp,
            transcendentals=M_pad * Cp if act == "sigmoid" else 0,
            bytes_accessed=patches.size * 2 + w_mat.size * 2 + M_pad * Cp * 2),
    )(patches, w_mat)
    return out, M_pad


def pallas_conv_stats(patches, w_mat):
    """Fallback: matmul + per-tile channel sum/sumsq outputs (BatchNorm)."""
    M, K = patches.shape
    Cp = w_mat.shape[-1]
    M_pad = _round_up(max(M, 8), 8)
    if M_pad != M:
        patches = jnp.pad(patches, ((0, M_pad - M), (0, 0)))
    tm, tiles = _pick_tiles(M_pad, max_tm=512)
    y, sums, sqs = pl.pallas_call(
        _matmul_stats_kernel,
        out_shape=(jax.ShapeDtypeStruct((M_pad, Cp), jnp.bfloat16),
                   jax.ShapeDtypeStruct((tiles, 1, Cp), jnp.float32),
                   jax.ShapeDtypeStruct((tiles, 1, Cp), jnp.float32)),
        grid_spec=pltpu.PrefetchScalarGridSpec(
            num_scalar_prefetch=0,
            grid=(tiles,),
            in_specs=[pl.BlockSpec((tm, K), lambda i: (i, 0)),
                      pl.BlockSpec((K, Cp), lambda i: (0, 0))],
            out_specs=(pl.BlockSpec((tm, Cp), lambda i: (i, 0)),
                       pl.BlockSpec((1, 1, Cp), lambda i: (i, 0, 0)),
                       pl.BlockSpec((1, 1, Cp), lambda i: (i, 0, 0)))),
        compiler_params=pltpu.CompilerParams(
            dimension_semantics=("parallel",), vmem_limit_bytes=_VMEM_LIMIT),
        cost_estimate=pl.CostEstimate(
            flops=2 * M_pad * K * Cp + 3 * M_pad * Cp,
            transcendentals=0,
            bytes_accessed=patches.size * 2 + w_mat.size * 2 + M_pad * Cp * 2),
    )(patches, w_mat)
    return y, sums, sqs, M_pad


def pallas_affine_leaky(y, scale, bias):
    """Tiled bf16 y = leaky_relu(y * scale + bias), per-channel scale/bias."""
    M, C = y.shape
    tm, tiles = _pick_tiles(M, max_tm=2048)
    return pl.pallas_call(
        _affine_leaky_kernel,
        out_shape=jax.ShapeDtypeStruct((M, C), jnp.bfloat16),
        grid_spec=pltpu.PrefetchScalarGridSpec(
            num_scalar_prefetch=0,
            grid=(tiles,),
            in_specs=[pl.BlockSpec((tm, C), lambda i: (i, 0)),
                      pl.BlockSpec((1, C), lambda i: (0, 0)),
                      pl.BlockSpec((1, C), lambda i: (0, 0))],
            out_specs=pl.BlockSpec((tm, C), lambda i: (i, 0))),
        compiler_params=pltpu.CompilerParams(
            dimension_semantics=("parallel",), vmem_limit_bytes=_VMEM_LIMIT),
        cost_estimate=pl.CostEstimate(
            flops=3 * M * C, transcendentals=0,
            bytes_accessed=2 * M * C * 2 + 2 * C * 4),
    )(y, scale.reshape(1, C).astype(jnp.float32),
      bias.reshape(1, C).astype(jnp.float32))


# ------------------------------------------------------------------ layer glue

def _prep_input_2tap(x_nhwc, cin_pad):
    """NHWC (true channels) -> (N, (Ho+1)*Wo, 8*cin_pad) bf16.

    Width-im2col (kw=0..3, stride 2) + height space-to-depth by 2, so the
    stride-2/4x4 conv becomes two row-shifted K=8*cin_pad matmuls."""
    N, H, W, C = x_nhwc.shape
    Ho, Wo = H // 2, W // 2
    x = jnp.pad(x_nhwc, ((0, 0), (1, 1), (1, 1),
                         (0, cin_pad - C))).astype(jnp.bfloat16)
    cols = [x[:, :, kw:kw + 2 * Wo:2, :] for kw in range(4)]   # (N, H+2, Wo, cp)
    x = jnp.stack(cols, axis=3)                                # (N, H+2, Wo, 4, cp)
    x = x.reshape(N, Ho + 1, 2, Wo, 4, cin_pad)                # (N, hs, ph, Wo, kw, c)
    x = jnp.transpose(x, (0, 1, 3, 2, 4, 5))                   # (N, hs, Wo, ph, kw, c)
    return x.reshape(N, (Ho + 1) * Wo, 8 * cin_pad)


def _prep_weight_2tap(w, cin_pad, cout_pad):
    """(Cout, Cin, 4, 4) -> (2[dh], 8*cin_pad, cout_pad) bf16 (zero-padded)."""
    Cout, Cin, _, _ = w.shape
    wp = jnp.pad(w, ((0, cout_pad - Cout), (0, cin_pad - Cin), (0, 0), (0, 0)))
    wp = wp.reshape(cout_pad, cin_pad, 2, 2, 4)       # (co, c, dh, ph, kw)
    wp = jnp.transpose(wp, (2, 3, 4, 1, 0))           # (dh, ph, kw, c, co)
    return wp.reshape(2, 8 * cin_pad, cout_pad).astype(jnp.bfloat16)


def _im2col_nhwc(x, k=4, s=2, p=1):
    """Fallback: NHWC -> (N*Ho*Wo, C*k*k); K order c*16 + kh*4 + kw."""
    N, H, W, C = x.shape
    Ho = (H + 2 * p - k) // s + 1
    Wo = (W + 2 * p - k) // s + 1
    xp = jnp.pad(x, ((0, 0), (p, p), (p, p), (0, 0)))
    cols = []
    for kh in range(k):
        for kw in range(k):
            cols.append(xp[:, kh:kh + s * Ho:s, kw:kw + s * Wo:s, :])
    patches = jnp.stack(cols, axis=-1)                # (N, Ho, Wo, C, k*k)
    return patches.reshape(N * Ho * Wo, C * k * k), (N, Ho, Wo)


def _prep_weight(w, cin_pad, cout_pad):
    """Fallback: (Cout, Cin, 4, 4) -> (cin_pad*16, cout_pad) bf16."""
    Cout, Cin, kh, kw = w.shape
    wm = w.reshape(Cout, Cin, kh * kw)
    wm = jnp.pad(wm, ((0, cout_pad - Cout), (0, cin_pad - Cin), (0, 0)))
    wm = wm.reshape(cout_pad, cin_pad * kh * kw)
    return wm.T.astype(jnp.bfloat16)


def cbr2d(x, weight, gamma=None, beta=None, act="leaky", eps=1e-5):
    """Conv2d(k=4,s=2,p=1,bias=False) [+BatchNorm2d batch stats] [+act].

    x: (N, H, W, Cin) with the true channel count (any float dtype).
    Returns (N, H//2, W//2, Cout) bf16."""
    N, H, W, Cin = x.shape
    Cout = weight.shape[0]
    Ho, Wo = H // 2, W // 2
    M_true = N * Ho * Wo
    cout_pad = _round_up(Cout, 128)
    sums = sqs = None

    if Wo % 16 == 0:
        # Fused path: no im2col patch matrix; conv done in one Pallas call.
        cin_pad = _round_up(Cin, 16)                 # K = 8*cin_pad % 128 == 0
        x2 = _prep_input_2tap(x, cin_pad)
        w2 = _prep_weight_2tap(weight, cin_pad, cout_pad)
        if gamma is None:
            y = pallas_fused_conv(x2, w2, Ho, Wo, act=act)
        else:
            y, sums, sqs = pallas_fused_conv(x2, w2, Ho, Wo, stats=True)
        y_flat = y.reshape(M_true, cout_pad)
    else:
        # Fallback (tiny tail layers): XLA im2col + Pallas matmul.
        cin_pad = _round_up(Cin, 8)                  # K = cin_pad*16 % 128 == 0
        if cin_pad != Cin:
            x = jnp.pad(x, ((0, 0), (0, 0), (0, 0), (0, cin_pad - Cin)))
        patches, _ = _im2col_nhwc(x.astype(jnp.bfloat16))
        w_mat = _prep_weight(weight, cin_pad, cout_pad)
        if gamma is None:
            y_flat, _ = pallas_conv_act(patches, w_mat, act=act)
        else:
            y_flat, sums, sqs, _ = pallas_conv_stats(patches, w_mat)

    if gamma is not None:
        # Training-mode BatchNorm (biased variance over N*Ho*Wo); stats come
        # from the f32 matmul accumulators, no extra pass over the activation.
        total = sums[:, 0, :].sum(axis=0)
        total_sq = sqs[:, 0, :].sum(axis=0)
        mean = total / M_true
        var = jnp.maximum(total_sq / M_true - mean * mean, 0.0)
        g = jnp.pad(gamma, (0, cout_pad - Cout))     # zero-pad (robust)
        b = jnp.pad(beta, (0, cout_pad - Cout))
        scale = g * jax.lax.rsqrt(var + eps)
        bias = b - mean * scale
        y_flat = pallas_affine_leaky(y_flat, scale, bias)

    out = y_flat[:M_true].reshape(N, Ho, Wo, cout_pad)
    return out[..., :Cout]                           # carry true channels only


def discriminator_cycle_forward(x_nchw, params):
    x = jnp.transpose(x_nchw, (0, 2, 3, 1))          # NCHW -> NHWC once
    x = cbr2d(x, params["w1"], act="leaky")
    x = cbr2d(x, params["w2"], params["g2"], params["b2"])
    x = cbr2d(x, params["w3"], params["g3"], params["b3"])
    x = cbr2d(x, params["w4"], params["g4"], params["b4"])
    # enc5: conv only; the module then applies torch.sigmoid -> fused epilogue.
    x = cbr2d(x, params["w5"], act="sigmoid")
    return jnp.transpose(x, (0, 3, 1, 2)).astype(jnp.float32)


# ------------------------------------------------------------------ reference

def _ref_forward(x, params, eps=1e-5):
    dn = ("NCHW", "OIHW", "NCHW")

    def conv(x, w):
        return jax.lax.conv_general_dilated(
            x, w, (2, 2), ((1, 1), (1, 1)), dimension_numbers=dn)

    def bn(x, g, b):
        mean = x.mean(axis=(0, 2, 3), keepdims=True)
        var = x.var(axis=(0, 2, 3), keepdims=True)
        return ((x - mean) / jnp.sqrt(var + eps)) * g.reshape(1, -1, 1, 1) \
            + b.reshape(1, -1, 1, 1)

    def lrelu(x):
        return jnp.where(x >= 0, x, _NEG_SLOPE * x)

    x = lrelu(conv(x, params["w1"]))
    x = lrelu(bn(conv(x, params["w2"]), params["g2"], params["b2"]))
    x = lrelu(bn(conv(x, params["w3"]), params["g3"], params["b3"]))
    x = lrelu(bn(conv(x, params["w4"]), params["g4"], params["b4"]))
    x = jax.nn.sigmoid(conv(x, params["w5"]))
    return x


# ------------------------------------------------------------------ main

def make_params(key, input_nc, output_nc, nker):
    keys = jax.random.split(key, 5)
    shapes = [
        (1 * nker, 1 * input_nc, 4, 4),
        (2 * nker, 1 * nker, 4, 4),
        (4 * nker, 2 * nker, 4, 4),
        (8 * nker, 4 * nker, 4, 4),
        (output_nc, 8 * nker, 4, 4),
    ]
    params = {}
    for i, (k, s) in enumerate(zip(keys, shapes), start=1):
        params[f"w{i}"] = (0.05 * jax.random.normal(k, s)).astype(jnp.float32)
    for i, s in zip((2, 3, 4), shapes[1:4]):
        params[f"g{i}"] = jnp.ones((s[0],), jnp.float32)     # BN gamma init
        params[f"b{i}"] = jnp.zeros((s[0],), jnp.float32)    # BN beta init
    return params


if __name__ == "__main__":
    key = jax.random.PRNGKey(0)
    kx, kp = jax.random.split(key)

    # Small but consistent shapes: 5 stride-2 convs need H, W divisible by 32.
    N, input_nc, output_nc, nker, H, W = 2, 3, 1, 8, 64, 64
    x = jax.random.normal(kx, (N, input_nc, H, W), dtype=jnp.float32)
    params = make_params(kp, input_nc, output_nc, nker)

    fwd = jax.jit(discriminator_cycle_forward)
    out = jax.block_until_ready(fwd(x, params))
    assert out.shape == (N, output_nc, H // 32, W // 32), out.shape

    ref = jax.block_until_ready(jax.jit(_ref_forward)(x, params))
    # bf16 MXU inputs / bf16-carried activations (f32 accumulate & stats) vs.
    # the f32 XLA reference; outputs are post-sigmoid in [0, 1].
    err = float(jnp.max(jnp.abs(out - ref)))
    assert err < 4e-2, err

    print("KERNEL_OK")
</pallas_src>

<mosaic_0001>
module attributes {stable_mosaic.version = 11 : i64} {
  func.func @_fused_conv_kernel(%arg0: i32, %arg1: i32, %arg2: memref<1x1056x128xbf16, #tpu.memory_space<vmem>>, %arg3: memref<2x128x128xbf16, #tpu.memory_space<vmem>>, %arg4: memref<1x1024x128xbf16, #tpu.memory_space<vmem>>) attributes {dimension_semantics = [#tpu.dimension_semantics<parallel>, #tpu.dimension_semantics<parallel>], iteration_bounds = array<i64: 2, 1>, scalar_prefetch = 0 : i64, scratch_operands = 0 : i64, tpu.core_type = #tpu.core_type<tc>, window_params = [{transform_indices = @transform_0, window_bounds = array<i64: 1, 1056, 128>}, {transform_indices = @transform_1, window_bounds = array<i64: 2, 128, 128>}, {transform_indices = @transform_2, window_bounds = array<i64: 1, 1024, 128>}]} {
    %c0 = arith.constant 0 : index
    %c0_0 = arith.constant 0 : index
    %c0_1 = arith.constant 0 : index
    %0 = vector.load %arg2[%c0, %c0_0, %c0_1] : memref<1x1056x128xbf16, #tpu.memory_space<vmem>>, vector<1x1024x128xbf16>
    %1 = vector.shape_cast %0 : vector<1x1024x128xbf16> to vector<1024x128xbf16>
    %c0_2 = arith.constant 0 : index
    %c32 = arith.constant 32 : index
    %c0_3 = arith.constant 0 : index
    %2 = vector.load %arg2[%c0_2, %c32, %c0_3] : memref<1x1056x128xbf16, #tpu.memory_space<vmem>>, vector<1x1024x128xbf16>
    %3 = vector.shape_cast %2 : vector<1x1024x128xbf16> to vector<1024x128xbf16>
    %c0_4 = arith.constant 0 : index
    %c0_5 = arith.constant 0 : index
    %c0_6 = arith.constant 0 : index
    %4 = vector.load %arg3[%c0_4, %c0_5, %c0_6] : memref<2x128x128xbf16, #tpu.memory_space<vmem>>, vector<1x128x128xbf16>
    %5 = vector.shape_cast %4 : vector<1x128x128xbf16> to vector<128x128xbf16>
    %cst = arith.constant dense<0.000000e+00> : vector<1024x128xf32>
    %6 = tpu.matmul %1, %5, %cst {dimension_numbers = #tpu.dot_dimension_numbers<[1], [0], [0], [1], [0, 0, 1, 1], [], []>} : vector<1024x128xbf16>, vector<128x128xbf16>, vector<1024x128xf32> -> vector<1024x128xf32>
    %c1 = arith.constant 1 : index
    %c0_7 = arith.constant 0 : index
    %c0_8 = arith.constant 0 : index
    %7 = vector.load %arg3[%c1, %c0_7, %c0_8] : memref<2x128x128xbf16, #tpu.memory_space<vmem>>, vector<1x128x128xbf16>
    %8 = vector.shape_cast %7 : vector<1x128x128xbf16> to vector<128x128xbf16>
    %cst_9 = arith.constant dense<0.000000e+00> : vector<1024x128xf32>
    %9 = tpu.matmul %3, %8, %cst_9 {dimension_numbers = #tpu.dot_dimension_numbers<[1], [0], [0], [1], [0, 0, 1, 1], [], []>} : vector<1024x128xbf16>, vector<128x128xbf16>, vector<1024x128xf32> -> vector<1024x128xf32>
    %10 = arith.addf %6, %9 : vector<1024x128xf32>
    %cst_10 = arith.constant 0.000000e+00 : f32
    %11 = vector.broadcast %cst_10 : f32 to vector<1024x128xf32>
    %12 = arith.cmpf oge, %10, %11 : vector<1024x128xf32>
    %cst_11 = arith.constant 2.000000e-01 : f32
    %13 = vector.broadcast %cst_11 : f32 to vector<1024x128xf32>
    %14 = arith.mulf %13, %10 : vector<1024x128xf32>
    %15 = arith.select %12, %10, %14 : vector<1024x128xi1>, vector<1024x128xf32>
    %16 = vector.shape_cast %15 : vector<1024x128xf32> to vector<1x1024x128xf32>
    %17 = arith.truncf %16 : vector<1x1024x128xf32> to vector<1x1024x128xbf16>
    %c0_12 = arith.constant 0 : index
    %c0_13 = arith.constant 0 : index
    %c0_14 = arith.constant 0 : index
    %18 = vector.load %arg4[%c0_12, %c0_13, %c0_14] : memref<1x1024x128xbf16, #tpu.memory_space<vmem>>, vector<1x1024x128xbf16>
    tpu.vector_store %arg4[%c0_12, %c0_13, %c0_14], %17 {strides = array<i32>} : memref<1x1024x128xbf16, #tpu.memory_space<vmem>>, vector<1x1024x128xbf16>,
    return
  }
  func.func @transform_0(%arg0: i32, %arg1: i32) -> (i32, i32, i32) {
    %c0_i32 = arith.constant 0 : i32
    %c0_i32_0 = arith.constant 0 : i32
    %c0_i32_1 = arith.constant 0 : i32
    return %arg0, %c0_i32, %c0_i32_0 : i32, i32, i32
  }
  func.func @transform_1(%arg0: i32, %arg1: i32) -> (i32, i32, i32) {
    %c0_i32 = arith.constant 0 : i32
    %c0_i32_0 = arith.constant 0 : i32
    %c0_i32_1 = arith.constant 0 : i32
    return %c0_i32, %c0_i32_0, %arg1 : i32, i32, i32
  }
  func.func @transform_2(%arg0: i32, %arg1: i32) -> (i32, i32, i32) {
    %c0_i32 = arith.constant 0 : i32
    %c0_i32_0 = arith.constant 0 : i32
    return %arg0, %c0_i32, %arg1 : i32, i32, i32
  }
}

module attributes {stable_mosaic.version = 11 : i64} {
  func.func @_fused_conv_stats_kernel(%arg0: i32, %arg1: i32, %arg2: memref<1x272x128xbf16, #tpu.memory_space<vmem>>, %arg3: memref<2x128x128xbf16, #tpu.memory_space<vmem>>, %arg4: memref<1x256x128xbf16, #tpu.memory_space<vmem>>, %arg5: memref<1x1x128xf32, #tpu.memory_space<vmem>>, %arg6: memref<1x1x128xf32, #tpu.memory_space<vmem>>) attributes {dimension_semantics = [#tpu.dimension_semantics<parallel>, #tpu.dimension_semantics<parallel>], iteration_bounds = array<i64: 2, 1>, scalar_prefetch = 0 : i64, scratch_operands = 0 : i64, tpu.core_type = #tpu.core_type<tc>, window_params = [{transform_indices = @transform_0, window_bounds = array<i64: 1, 272, 128>}, {transform_indices = @transform_1, window_bounds = array<i64: 2, 128, 128>}, {transform_indices = @transform_2, window_bounds = array<i64: 1, 256, 128>}, {transform_indices = @transform_3, window_bounds = array<i64: 1, 1, 128>}, {transform_indices = @transform_4, window_bounds = array<i64: 1, 1, 128>}]} {
    %c0 = arith.constant 0 : index
    %c0_0 = arith.constant 0 : index
    %c0_1 = arith.constant 0 : index
    %0 = vector.load %arg2[%c0, %c0_0, %c0_1] : memref<1x272x128xbf16, #tpu.memory_space<vmem>>, vector<1x256x128xbf16>
    %1 = vector.shape_cast %0 : vector<1x256x128xbf16> to vector<256x128xbf16>
    %c0_2 = arith.constant 0 : index
    %c16 = arith.constant 16 : index
    %c0_3 = arith.constant 0 : index
    %2 = vector.load %arg2[%c0_2, %c16, %c0_3] : memref<1x272x128xbf16, #tpu.memory_space<vmem>>, vector<1x256x128xbf16>
    %3 = vector.shape_cast %2 : vector<1x256x128xbf16> to vector<256x128xbf16>
    %c0_4 = arith.constant 0 : index
    %c0_5 = arith.constant 0 : index
    %c0_6 = arith.constant 0 : index
    %4 = vector.load %arg3[%c0_4, %c0_5, %c0_6] : memref<2x128x128xbf16, #tpu.memory_space<vmem>>, vector<1x128x128xbf16>
    %5 = vector.shape_cast %4 : vector<1x128x128xbf16> to vector<128x128xbf16>
    %cst = arith.constant dense<0.000000e+00> : vector<256x128xf32>
    %6 = tpu.matmul %1, %5, %cst {dimension_numbers = #tpu.dot_dimension_numbers<[1], [0], [0], [1], [0, 0, 1, 1], [], []>} : vector<256x128xbf16>, vector<128x128xbf16>, vector<256x128xf32> -> vector<256x128xf32>
    %c1 = arith.constant 1 : index
    %c0_7 = arith.constant 0 : index
    %c0_8 = arith.constant 0 : index
    %7 = vector.load %arg3[%c1, %c0_7, %c0_8] : memref<2x128x128xbf16, #tpu.memory_space<vmem>>, vector<1x128x128xbf16>
    %8 = vector.shape_cast %7 : vector<1x128x128xbf16> to vector<128x128xbf16>
    %cst_9 = arith.constant dense<0.000000e+00> : vector<256x128xf32>
    %9 = tpu.matmul %3, %8, %cst_9 {dimension_numbers = #tpu.dot_dimension_numbers<[1], [0], [0], [1], [0, 0, 1, 1], [], []>} : vector<256x128xbf16>, vector<128x128xbf16>, vector<256x128xf32> -> vector<256x128xf32>
    %10 = arith.addf %6, %9 : vector<256x128xf32>
    %11 = vector.shape_cast %10 : vector<256x128xf32> to vector<1x256x128xf32>
    %12 = arith.truncf %11 : vector<1x256x128xf32> to vector<1x256x128xbf16>
    %c0_10 = arith.constant 0 : index
    %c0_11 = arith.constant 0 : index
    %c0_12 = arith.constant 0 : index
    %13 = vector.load %arg4[%c0_10, %c0_11, %c0_12] : memref<1x256x128xbf16, #tpu.memory_space<vmem>>, vector<1x256x128xbf16>
    tpu.vector_store %arg4[%c0_10, %c0_11, %c0_12], %12 {strides = array<i32>} : memref<1x256x128xbf16, #tpu.memory_space<vmem>>, vector<1x256x128xbf16>,
    %cst_13 = arith.constant dense<0.000000e+00> : vector<128xf32>
    %14 = vector.multi_reduction <add>, %10, %cst_13 [0] : vector<256x128xf32> to vector<128xf32>
    %15 = vector.shape_cast %14 : vector<128xf32> to vector<1x128xf32>
    %16 = vector.shape_cast %15 : vector<1x128xf32> to vector<1x1x128xf32>
    %c0_14 = arith.constant 0 : index
    %c0_15 = arith.constant 0 : index
    %c0_16 = arith.constant 0 : index
    %17 = vector.load %arg5[%c0_14, %c0_15, %c0_16] : memref<1x1x128xf32, #tpu.memory_space<vmem>>, vector<1x1x128xf32>
    tpu.vector_store %arg5[%c0_14, %c0_15, %c0_16], %16 {strides = array<i32>} : memref<1x1x128xf32, #tpu.memory_space<vmem>>, vector<1x1x128xf32>,
    %18 = arith.mulf %10, %10 : vector<256x128xf32>
    %cst_17 = arith.constant dense<0.000000e+00> : vector<128xf32>
    %19 = vector.multi_reduction <add>, %18, %cst_17 [0] : vector<256x128xf32> to vector<128xf32>
    %20 = vector.shape_cast %19 : vector<128xf32> to vector<1x128xf32>
    %21 = vector.shape_cast %20 : vector<1x128xf32> to vector<1x1x128xf32>
    %c0_18 = arith.constant 0 : index
    %c0_19 = arith.constant 0 : index
    %c0_20 = arith.constant 0 : index
    %22 = vector.load %arg6[%c0_18, %c0_19, %c0_20] : memref<1x1x128xf32, #tpu.memory_space<vmem>>, vector<1x1x128xf32>
    tpu.vector_store %arg6[%c0_18, %c0_19, %c0_20], %21 {strides = array<i32>} : memref<1x1x128xf32, #tpu.memory_space<vmem>>, vector<1x1x128xf32>,
    return
  }
  func.func @transform_0(%arg0: i32, %arg1: i32) -> (i32, i32, i32) {
    %c0_i32 = arith.constant 0 : i32
    %c0_i32_0 = arith.constant 0 : i32
    %c0_i32_1 = arith.constant 0 : i32
    return %arg0, %c0_i32, %c0_i32_0 : i32, i32, i32
  }
  func.func @transform_1(%arg0: i32, %arg1: i32) -> (i32, i32, i32) {
    %c0_i32 = arith.constant 0 : i32
    %c0_i32_0 = arith.constant 0 : i32
    %c0_i32_1 = arith.constant 0 : i32
    return %c0_i32, %c0_i32_0, %arg1 : i32, i32, i32
  }
  func.func @transform_2(%arg0: i32, %arg1: i32) -> (i32, i32, i32) {
    %c0_i32 = arith.constant 0 : i32
    %c0_i32_0 = arith.constant 0 : i32
    return %arg0, %c0_i32, %arg1 : i32, i32, i32
  }
  func.func @transform_3(%arg0: i32, %arg1: i32) -> (i32, i32, i32) {
    %c0_i32 = arith.constant 0 : i32
    %c0_i32_0 = arith.constant 0 : i32
    return %arg0, %c0_i32, %arg1 : i32, i32, i32
  }
  func.func @transform_4(%arg0: i32, %arg1: i32) -> (i32, i32, i32) {
    %c0_i32 = arith.constant 0 : i32
    %c0_i32_0 = arith.constant 0 : i32
    return %arg0, %c0_i32, %arg1 : i32, i32, i32
  }
}

module attributes {stable_mosaic.version = 11 : i64} {
  func.func @_affine_leaky_kernel(%arg0: i32, %arg1: memref<256x128xbf16, #tpu.memory_space<vmem>>, %arg2: memref<1x128xf32, #tpu.memory_space<vmem>>, %arg3: memref<1x128xf32, #tpu.memory_space<vmem>>, %arg4: memref<256x128xbf16, #tpu.memory_space<vmem>>) attributes {dimension_semantics = [#tpu.dimension_semantics<parallel>], iteration_bounds = array<i64: 2>, scalar_prefetch = 0 : i64, scratch_operands = 0 : i64, tpu.core_type = #tpu.core_type<tc>, window_params = [{transform_indices = @transform_0, window_bounds = array<i64: 256, 128>}, {pipeline_mode = #tpu.pipeline_mode<synchronous>, transform_indices = @transform_1, window_bounds = array<i64: 1, 128>}, {pipeline_mode = #tpu.pipeline_mode<synchronous>, transform_indices = @transform_2, window_bounds = array<i64: 1, 128>}, {transform_indices = @transform_3, window_bounds = array<i64: 256, 128>}]} {
    %c0 = arith.constant 0 : index
    %c0_0 = arith.constant 0 : index
    %0 = vector.load %arg1[%c0, %c0_0] : memref<256x128xbf16, #tpu.memory_space<vmem>>, vector<256x128xbf16>
    %1 = arith.extf %0 : vector<256x128xbf16> to vector<256x128xf32>
    %c0_1 = arith.constant 0 : index
    %c0_2 = arith.constant 0 : index
    %2 = vector.load %arg2[%c0_1, %c0_2] : memref<1x128xf32, #tpu.memory_space<vmem>>, vector<1x128xf32>
    %3 = vector.broadcast %2 : vector<1x128xf32> to vector<256x128xf32>
    %4 = arith.mulf %1, %3 : vector<256x128xf32>
    %c0_3 = arith.constant 0 : index
    %c0_4 = arith.constant 0 : index
    %5 = vector.load %arg3[%c0_3, %c0_4] : memref<1x128xf32, #tpu.memory_space<vmem>>, vector<1x128xf32>
    %6 = vector.broadcast %5 : vector<1x128xf32> to vector<256x128xf32>
    %7 = arith.addf %4, %6 : vector<256x128xf32>
    %cst = arith.constant 0.000000e+00 : f32
    %8 = vector.broadcast %cst : f32 to vector<256x128xf32>
    %9 = arith.cmpf oge, %7, %8 : vector<256x128xf32>
    %cst_5 = arith.constant 2.000000e-01 : f32
    %10 = vector.broadcast %cst_5 : f32 to vector<256x128xf32>
    %11 = arith.mulf %10, %7 : vector<256x128xf32>
    %12 = arith.select %9, %7, %11 : vector<256x128xi1>, vector<256x128xf32>
    %13 = arith.truncf %12 : vector<256x128xf32> to vector<256x128xbf16>
    %c0_6 = arith.constant 0 : index
    %c0_7 = arith.constant 0 : index
    %14 = vector.load %arg4[%c0_6, %c0_7] : memref<256x128xbf16, #tpu.memory_space<vmem>>, vector<256x128xbf16>
    tpu.vector_store %arg4[%c0_6, %c0_7], %13 {strides = array<i32>} : memref<256x128xbf16, #tpu.memory_space<vmem>>, vector<256x128xbf16>,
    return
  }
  func.func @transform_0(%arg0: i32) -> (i32, i32) {
    %c0_i32 = arith.constant 0 : i32
    %c0_i32_0 = arith.constant 0 : i32
    return %arg0, %c0_i32 : i32, i32
  }
  func.func @transform_1(%arg0: i32) -> (i32, i32) {
    %c0_i32 = arith.constant 0 : i32
    %c0_i32_0 = arith.constant 0 : i32
    %c0_i32_1 = arith.constant 0 : i32
    return %c0_i32, %c0_i32_0 : i32, i32
  }
  func.func @transform_2(%arg0: i32) -> (i32, i32) {
    %c0_i32 = arith.constant 0 : i32
    %c0_i32_0 = arith.constant 0 : i32
    %c0_i32_1 = arith.constant 0 : i32
    return %c0_i32, %c0_i32_0 : i32, i32
  }
  func.func @transform_3(%arg0: i32) -> (i32, i32) {
    %c0_i32 = arith.constant 0 : i32
    %c0_i32_0 = arith.constant 0 : i32
    return %arg0, %c0_i32 : i32, i32
  }
}

module attributes {stable_mosaic.version = 11 : i64} {
  func.func @_matmul_stats_kernel(%arg0: i32, %arg1: memref<64x256xbf16, #tpu.memory_space<vmem>>, %arg2: memref<256x128xbf16, #tpu.memory_space<vmem>>, %arg3: memref<64x128xbf16, #tpu.memory_space<vmem>>, %arg4: memref<1x1x128xf32, #tpu.memory_space<vmem>>, %arg5: memref<1x1x128xf32, #tpu.memory_space<vmem>>) attributes {dimension_semantics = [#tpu.dimension_semantics<parallel>], iteration_bounds = array<i64: 2>, scalar_prefetch = 0 : i64, scratch_operands = 0 : i64, tpu.core_type = #tpu.core_type<tc>, window_params = [{transform_indices = @transform_0, window_bounds = array<i64: 64, 256>}, {pipeline_mode = #tpu.pipeline_mode<synchronous>, transform_indices = @transform_1, window_bounds = array<i64: 256, 128>}, {transform_indices = @transform_2, window_bounds = array<i64: 64, 128>}, {transform_indices = @transform_3, window_bounds = array<i64: 1, 1, 128>}, {transform_indices = @transform_4, window_bounds = array<i64: 1, 1, 128>}]} {
    %c0 = arith.constant 0 : index
    %c0_0 = arith.constant 0 : index
    %0 = vector.load %arg1[%c0, %c0_0] : memref<64x256xbf16, #tpu.memory_space<vmem>>, vector<64x256xbf16>
    %c0_1 = arith.constant 0 : index
    %c0_2 = arith.constant 0 : index
    %1 = vector.load %arg2[%c0_1, %c0_2] : memref<256x128xbf16, #tpu.memory_space<vmem>>, vector<256x128xbf16>
    %cst = arith.constant dense<0.000000e+00> : vector<64x128xf32>
    %2 = tpu.matmul %0, %1, %cst {dimension_numbers = #tpu.dot_dimension_numbers<[1], [0], [0], [1], [0, 0, 1, 1], [], []>} : vector<64x256xbf16>, vector<256x128xbf16>, vector<64x128xf32> -> vector<64x128xf32>
    %3 = arith.truncf %2 : vector<64x128xf32> to vector<64x128xbf16>
    %c0_3 = arith.constant 0 : index
    %c0_4 = arith.constant 0 : index
    %4 = vector.load %arg3[%c0_3, %c0_4] : memref<64x128xbf16, #tpu.memory_space<vmem>>, vector<64x128xbf16>
    tpu.vector_store %arg3[%c0_3, %c0_4], %3 {strides = array<i32>} : memref<64x128xbf16, #tpu.memory_space<vmem>>, vector<64x128xbf16>,
    %cst_5 = arith.constant dense<0.000000e+00> : vector<128xf32>
    %5 = vector.multi_reduction <add>, %2, %cst_5 [0] : vector<64x128xf32> to vector<128xf32>
    %6 = vector.shape_cast %5 : vector<128xf32> to vector<1x128xf32>
    %7 = vector.shape_cast %6 : vector<1x128xf32> to vector<1x1x128xf32>
    %c0_6 = arith.constant 0 : index
    %c0_7 = arith.constant 0 : index
    %c0_8 = arith.constant 0 : index
    %8 = vector.load %arg4[%c0_6, %c0_7, %c0_8] : memref<1x1x128xf32, #tpu.memory_space<vmem>>, vector<1x1x128xf32>
    tpu.vector_store %arg4[%c0_6, %c0_7, %c0_8], %7 {strides = array<i32>} : memref<1x1x128xf32, #tpu.memory_space<vmem>>, vector<1x1x128xf32>,
    %9 = arith.mulf %2, %2 : vector<64x128xf32>
    %cst_9 = arith.constant dense<0.000000e+00> : vector<128xf32>
    %10 = vector.multi_reduction <add>, %9, %cst_9 [0] : vector<64x128xf32> to vector<128xf32>
    %11 = vector.shape_cast %10 : vector<128xf32> to vector<1x128xf32>
    %12 = vector.shape_cast %11 : vector<1x128xf32> to vector<1x1x128xf32>
    %c0_10 = arith.constant 0 : index
    %c0_11 = arith.constant 0 : index
    %c0_12 = arith.constant 0 : index
    %13 = vector.load %arg5[%c0_10, %c0_11, %c0_12] : memref<1x1x128xf32, #tpu.memory_space<vmem>>, vector<1x1x128xf32>
    tpu.vector_store %arg5[%c0_10, %c0_11, %c0_12], %12 {strides = array<i32>} : memref<1x1x128xf32, #tpu.memory_space<vmem>>, vector<1x1x128xf32>,
    return
  }
  func.func @transform_0(%arg0: i32) -> (i32, i32) {
    %c0_i32 = arith.constant 0 : i32
    %c0_i32_0 = arith.constant 0 : i32
    return %arg0, %c0_i32 : i32, i32
  }
  func.func @transform_1(%arg0: i32) -> (i32, i32) {
    %c0_i32 = arith.constant 0 : i32
    %c0_i32_0 = arith.constant 0 : i32
    %c0_i32_1 = arith.constant 0 : i32
    return %c0_i32, %c0_i32_0 : i32, i32
  }
  func.func @transform_2(%arg0: i32) -> (i32, i32) {
    %c0_i32 = arith.constant 0 : i32
    %c0_i32_0 = arith.constant 0 : i32
    return %arg0, %c0_i32 : i32, i32
  }
  func.func @transform_3(%arg0: i32) -> (i32, i32, i32) {
    %c0_i32 = arith.constant 0 : i32
    %c0_i32_0 = arith.constant 0 : i32
    %c0_i32_1 = arith.constant 0 : i32
    return %arg0, %c0_i32, %c0_i32_0 : i32, i32, i32
  }
  func.func @transform_4(%arg0: i32) -> (i32, i32, i32) {
    %c0_i32 = arith.constant 0 : i32
    %c0_i32_0 = arith.constant 0 : i32
    %c0_i32_1 = arith.constant 0 : i32
    return %arg0, %c0_i32, %c0_i32_0 : i32, i32, i32
  }
}

module attributes {stable_mosaic.version = 11 : i64} {
  func.func @_affine_leaky_kernel(%arg0: i32, %arg1: memref<64x128xbf16, #tpu.memory_space<vmem>>, %arg2: memref<1x128xf32, #tpu.memory_space<vmem>>, %arg3: memref<1x128xf32, #tpu.memory_space<vmem>>, %arg4: memref<64x128xbf16, #tpu.memory_space<vmem>>) attributes {dimension_semantics = [#tpu.dimension_semantics<parallel>], iteration_bounds = array<i64: 2>, scalar_prefetch = 0 : i64, scratch_operands = 0 : i64, tpu.core_type = #tpu.core_type<tc>, window_params = [{transform_indices = @transform_0, window_bounds = array<i64: 64, 128>}, {pipeline_mode = #tpu.pipeline_mode<synchronous>, transform_indices = @transform_1, window_bounds = array<i64: 1, 128>}, {pipeline_mode = #tpu.pipeline_mode<synchronous>, transform_indices = @transform_2, window_bounds = array<i64: 1, 128>}, {transform_indices = @transform_3, window_bounds = array<i64: 64, 128>}]} {
    %c0 = arith.constant 0 : index
    %c0_0 = arith.constant 0 : index
    %0 = vector.load %arg1[%c0, %c0_0] : memref<64x128xbf16, #tpu.memory_space<vmem>>, vector<64x128xbf16>
    %1 = arith.extf %0 : vector<64x128xbf16> to vector<64x128xf32>
    %c0_1 = arith.constant 0 : index
    %c0_2 = arith.constant 0 : index
    %2 = vector.load %arg2[%c0_1, %c0_2] : memref<1x128xf32, #tpu.memory_space<vmem>>, vector<1x128xf32>
    %3 = vector.broadcast %2 : vector<1x128xf32> to vector<64x128xf32>
    %4 = arith.mulf %1, %3 : vector<64x128xf32>
    %c0_3 = arith.constant 0 : index
    %c0_4 = arith.constant 0 : index
    %5 = vector.load %arg3[%c0_3, %c0_4] : memref<1x128xf32, #tpu.memory_space<vmem>>, vector<1x128xf32>
    %6 = vector.broadcast %5 : vector<1x128xf32> to vector<64x128xf32>
    %7 = arith.addf %4, %6 : vector<64x128xf32>
    %cst = arith.constant 0.000000e+00 : f32
    %8 = vector.broadcast %cst : f32 to vector<64x128xf32>
    %9 = arith.cmpf oge, %7, %8 : vector<64x128xf32>
    %cst_5 = arith.constant 2.000000e-01 : f32
    %10 = vector.broadcast %cst_5 : f32 to vector<64x128xf32>
    %11 = arith.mulf %10, %7 : vector<64x128xf32>
    %12 = arith.select %9, %7, %11 : vector<64x128xi1>, vector<64x128xf32>
    %13 = arith.truncf %12 : vector<64x128xf32> to vector<64x128xbf16>
    %c0_6 = arith.constant 0 : index
    %c0_7 = arith.constant 0 : index
    %14 = vector.load %arg4[%c0_6, %c0_7] : memref<64x128xbf16, #tpu.memory_space<vmem>>, vector<64x128xbf16>
    tpu.vector_store %arg4[%c0_6, %c0_7], %13 {strides = array<i32>} : memref<64x128xbf16, #tpu.memory_space<vmem>>, vector<64x128xbf16>,
    return
  }
  func.func @transform_0(%arg0: i32) -> (i32, i32) {
    %c0_i32 = arith.constant 0 : i32
    %c0_i32_0 = arith.constant 0 : i32
    return %arg0, %c0_i32 : i32, i32
  }
  func.func @transform_1(%arg0: i32) -> (i32, i32) {
    %c0_i32 = arith.constant 0 : i32
    %c0_i32_0 = arith.constant 0 : i32
    %c0_i32_1 = arith.constant 0 : i32
    return %c0_i32, %c0_i32_0 : i32, i32
  }
  func.func @transform_2(%arg0: i32) -> (i32, i32) {
    %c0_i32 = arith.constant 0 : i32
    %c0_i32_0 = arith.constant 0 : i32
    %c0_i32_1 = arith.constant 0 : i32
    return %c0_i32, %c0_i32_0 : i32, i32
  }
  func.func @transform_3(%arg0: i32) -> (i32, i32) {
    %c0_i32 = arith.constant 0 : i32
    %c0_i32_0 = arith.constant 0 : i32
    return %arg0, %c0_i32 : i32, i32
  }
}

module attributes {stable_mosaic.version = 11 : i64} {
  func.func @_matmul_stats_kernel(%arg0: i32, %arg1: memref<16x512xbf16, #tpu.memory_space<vmem>>, %arg2: memref<512x128xbf16, #tpu.memory_space<vmem>>, %arg3: memref<16x128xbf16, #tpu.memory_space<vmem>>, %arg4: memref<1x1x128xf32, #tpu.memory_space<vmem>>, %arg5: memref<1x1x128xf32, #tpu.memory_space<vmem>>) attributes {dimension_semantics = [#tpu.dimension_semantics<parallel>], iteration_bounds = array<i64: 2>, scalar_prefetch = 0 : i64, scratch_operands = 0 : i64, tpu.core_type = #tpu.core_type<tc>, window_params = [{transform_indices = @transform_0, window_bounds = array<i64: 16, 512>}, {pipeline_mode = #tpu.pipeline_mode<synchronous>, transform_indices = @transform_1, window_bounds = array<i64: 512, 128>}, {transform_indices = @transform_2, window_bounds = array<i64: 16, 128>}, {transform_indices = @transform_3, window_bounds = array<i64: 1, 1, 128>}, {transform_indices = @transform_4, window_bounds = array<i64: 1, 1, 128>}]} {
    %c0 = arith.constant 0 : index
    %c0_0 = arith.constant 0 : index
    %0 = vector.load %arg1[%c0, %c0_0] : memref<16x512xbf16, #tpu.memory_space<vmem>>, vector<16x512xbf16>
    %c0_1 = arith.constant 0 : index
    %c0_2 = arith.constant 0 : index
    %1 = vector.load %arg2[%c0_1, %c0_2] : memref<512x128xbf16, #tpu.memory_space<vmem>>, vector<512x128xbf16>
    %cst = arith.constant dense<0.000000e+00> : vector<16x128xf32>
    %2 = tpu.matmul %0, %1, %cst {dimension_numbers = #tpu.dot_dimension_numbers<[1], [0], [0], [1], [0, 0, 1, 1], [], []>} : vector<16x512xbf16>, vector<512x128xbf16>, vector<16x128xf32> -> vector<16x128xf32>
    %3 = arith.truncf %2 : vector<16x128xf32> to vector<16x128xbf16>
    %c0_3 = arith.constant 0 : index
    %c0_4 = arith.constant 0 : index
    %4 = vector.load %arg3[%c0_3, %c0_4] : memref<16x128xbf16, #tpu.memory_space<vmem>>, vector<16x128xbf16>
    tpu.vector_store %arg3[%c0_3, %c0_4], %3 {strides = array<i32>} : memref<16x128xbf16, #tpu.memory_space<vmem>>, vector<16x128xbf16>,
    %cst_5 = arith.constant dense<0.000000e+00> : vector<128xf32>
    %5 = vector.multi_reduction <add>, %2, %cst_5 [0] : vector<16x128xf32> to vector<128xf32>
    %6 = vector.shape_cast %5 : vector<128xf32> to vector<1x128xf32>
    %7 = vector.shape_cast %6 : vector<1x128xf32> to vector<1x1x128xf32>
    %c0_6 = arith.constant 0 : index
    %c0_7 = arith.constant 0 : index
    %c0_8 = arith.constant 0 : index
    %8 = vector.load %arg4[%c0_6, %c0_7, %c0_8] : memref<1x1x128xf32, #tpu.memory_space<vmem>>, vector<1x1x128xf32>
    tpu.vector_store %arg4[%c0_6, %c0_7, %c0_8], %7 {strides = array<i32>} : memref<1x1x128xf32, #tpu.memory_space<vmem>>, vector<1x1x128xf32>,
    %9 = arith.mulf %2, %2 : vector<16x128xf32>
    %cst_9 = arith.constant dense<0.000000e+00> : vector<128xf32>
    %10 = vector.multi_reduction <add>, %9, %cst_9 [0] : vector<16x128xf32> to vector<128xf32>
    %11 = vector.shape_cast %10 : vector<128xf32> to vector<1x128xf32>
    %12 = vector.shape_cast %11 : vector<1x128xf32> to vector<1x1x128xf32>
    %c0_10 = arith.constant 0 : index
    %c0_11 = arith.constant 0 : index
    %c0_12 = arith.constant 0 : index
    %13 = vector.load %arg5[%c0_10, %c0_11, %c0_12] : memref<1x1x128xf32, #tpu.memory_space<vmem>>, vector<1x1x128xf32>
    tpu.vector_store %arg5[%c0_10, %c0_11, %c0_12], %12 {strides = array<i32>} : memref<1x1x128xf32, #tpu.memory_space<vmem>>, vector<1x1x128xf32>,
    return
  }
  func.func @transform_0(%arg0: i32) -> (i32, i32) {
    %c0_i32 = arith.constant 0 : i32
    %c0_i32_0 = arith.constant 0 : i32
    return %arg0, %c0_i32 : i32, i32
  }
  func.func @transform_1(%arg0: i32) -> (i32, i32) {
    %c0_i32 = arith.constant 0 : i32
    %c0_i32_0 = arith.constant 0 : i32
    %c0_i32_1 = arith.constant 0 : i32
    return %c0_i32, %c0_i32_0 : i32, i32
  }
  func.func @transform_2(%arg0: i32) -> (i32, i32) {
    %c0_i32 = arith.constant 0 : i32
    %c0_i32_0 = arith.constant 0 : i32
    return %arg0, %c0_i32 : i32, i32
  }
  func.func @transform_3(%arg0: i32) -> (i32, i32, i32) {
    %c0_i32 = arith.constant 0 : i32
    %c0_i32_0 = arith.constant 0 : i32
    %c0_i32_1 = arith.constant 0 : i32
    return %arg0, %c0_i32, %c0_i32_0 : i32, i32, i32
  }
  func.func @transform_4(%arg0: i32) -> (i32, i32, i32) {
    %c0_i32 = arith.constant 0 : i32
    %c0_i32_0 = arith.constant 0 : i32
    %c0_i32_1 = arith.constant 0 : i32
    return %arg0, %c0_i32, %c0_i32_0 : i32, i32, i32
  }
}

module attributes {stable_mosaic.version = 11 : i64} {
  func.func @_affine_leaky_kernel(%arg0: i32, %arg1: memref<16x128xbf16, #tpu.memory_space<vmem>>, %arg2: memref<1x128xf32, #tpu.memory_space<vmem>>, %arg3: memref<1x128xf32, #tpu.memory_space<vmem>>, %arg4: memref<16x128xbf16, #tpu.memory_space<vmem>>) attributes {dimension_semantics = [#tpu.dimension_semantics<parallel>], iteration_bounds = array<i64: 2>, scalar_prefetch = 0 : i64, scratch_operands = 0 : i64, tpu.core_type = #tpu.core_type<tc>, window_params = [{transform_indices = @transform_0, window_bounds = array<i64: 16, 128>}, {pipeline_mode = #tpu.pipeline_mode<synchronous>, transform_indices = @transform_1, window_bounds = array<i64: 1, 128>}, {pipeline_mode = #tpu.pipeline_mode<synchronous>, transform_indices = @transform_2, window_bounds = array<i64: 1, 128>}, {transform_indices = @transform_3, window_bounds = array<i64: 16, 128>}]} {
    %c0 = arith.constant 0 : index
    %c0_0 = arith.constant 0 : index
    %0 = vector.load %arg1[%c0, %c0_0] : memref<16x128xbf16, #tpu.memory_space<vmem>>, vector<16x128xbf16>
    %1 = arith.extf %0 : vector<16x128xbf16> to vector<16x128xf32>
    %c0_1 = arith.constant 0 : index
    %c0_2 = arith.constant 0 : index
    %2 = vector.load %arg2[%c0_1, %c0_2] : memref<1x128xf32, #tpu.memory_space<vmem>>, vector<1x128xf32>
    %3 = vector.broadcast %2 : vector<1x128xf32> to vector<16x128xf32>
    %4 = arith.mulf %1, %3 : vector<16x128xf32>
    %c0_3 = arith.constant 0 : index
    %c0_4 = arith.constant 0 : index
    %5 = vector.load %arg3[%c0_3, %c0_4] : memref<1x128xf32, #tpu.memory_space<vmem>>, vector<1x128xf32>
    %6 = vector.broadcast %5 : vector<1x128xf32> to vector<16x128xf32>
    %7 = arith.addf %4, %6 : vector<16x128xf32>
    %cst = arith.constant 0.000000e+00 : f32
    %8 = vector.broadcast %cst : f32 to vector<16x128xf32>
    %9 = arith.cmpf oge, %7, %8 : vector<16x128xf32>
    %cst_5 = arith.constant 2.000000e-01 : f32
    %10 = vector.broadcast %cst_5 : f32 to vector<16x128xf32>
    %11 = arith.mulf %10, %7 : vector<16x128xf32>
    %12 = arith.select %9, %7, %11 : vector<16x128xi1>, vector<16x128xf32>
    %13 = arith.truncf %12 : vector<16x128xf32> to vector<16x128xbf16>
    %c0_6 = arith.constant 0 : index
    %c0_7 = arith.constant 0 : index
    %14 = vector.load %arg4[%c0_6, %c0_7] : memref<16x128xbf16, #tpu.memory_space<vmem>>, vector<16x128xbf16>
    tpu.vector_store %arg4[%c0_6, %c0_7], %13 {strides = array<i32>} : memref<16x128xbf16, #tpu.memory_space<vmem>>, vector<16x128xbf16>,
    return
  }
  func.func @transform_0(%arg0: i32) -> (i32, i32) {
    %c0_i32 = arith.constant 0 : i32
    %c0_i32_0 = arith.constant 0 : i32
    return %arg0, %c0_i32 : i32, i32
  }
  func.func @transform_1(%arg0: i32) -> (i32, i32) {
    %c0_i32 = arith.constant 0 : i32
    %c0_i32_0 = arith.constant 0 : i32
    %c0_i32_1 = arith.constant 0 : i32
    return %c0_i32, %c0_i32_0 : i32, i32
  }
  func.func @transform_2(%arg0: i32) -> (i32, i32) {
    %c0_i32 = arith.constant 0 : i32
    %c0_i32_0 = arith.constant 0 : i32
    %c0_i32_1 = arith.constant 0 : i32
    return %c0_i32, %c0_i32_0 : i32, i32
  }
  func.func @transform_3(%arg0: i32) -> (i32, i32) {
    %c0_i32 = arith.constant 0 : i32
    %c0_i32_0 = arith.constant 0 : i32
    return %arg0, %c0_i32 : i32, i32
  }
}

module attributes {stable_mosaic.version = 11 : i64} {
  func.func @_matmul_act_kernel(%arg0: i32, %arg1: memref<8x1024xbf16, #tpu.memory_space<vmem>>, %arg2: memref<1024x128xbf16, #tpu.memory_space<vmem>>, %arg3: memref<8x128xbf16, #tpu.memory_space<vmem>>) attributes {dimension_semantics = [#tpu.dimension_semantics<parallel>], iteration_bounds = array<i64: 1>, scalar_prefetch = 0 : i64, scratch_operands = 0 : i64, tpu.core_type = #tpu.core_type<tc>, window_params = [{transform_indices = @transform_0, window_bounds = array<i64: 8, 1024>}, {pipeline_mode = #tpu.pipeline_mode<synchronous>, transform_indices = @transform_1, window_bounds = array<i64: 1024, 128>}, {transform_indices = @transform_2, window_bounds = array<i64: 8, 128>}]} {
    %c0 = arith.constant 0 : index
    %c0_0 = arith.constant 0 : index
    %0 = vector.load %arg1[%c0, %c0_0] : memref<8x1024xbf16, #tpu.memory_space<vmem>>, vector<8x1024xbf16>
    %c0_1 = arith.constant 0 : index
    %c0_2 = arith.constant 0 : index
    %1 = vector.load %arg2[%c0_1, %c0_2] : memref<1024x128xbf16, #tpu.memory_space<vmem>>, vector<1024x128xbf16>
    %cst = arith.constant dense<0.000000e+00> : vector<8x128xf32>
    %2 = tpu.matmul %0, %1, %cst {dimension_numbers = #tpu.dot_dimension_numbers<[1], [0], [0], [1], [0, 0, 1, 1], [], []>} : vector<8x1024xbf16>, vector<1024x128xbf16>, vector<8x128xf32> -> vector<8x128xf32>
    %3 = arith.negf %2 : vector<8x128xf32>
    %4 = math.exp %3 : vector<8x128xf32>
    %cst_3 = arith.constant 1.000000e+00 : f32
    %5 = vector.broadcast %cst_3 : f32 to vector<8x128xf32>
    %6 = arith.addf %5, %4 : vector<8x128xf32>
    %7 = arith.divf %5, %6 : vector<8x128xf32>
    %8 = arith.truncf %7 : vector<8x128xf32> to vector<8x128xbf16>
    %c0_4 = arith.constant 0 : index
    %c0_5 = arith.constant 0 : index
    %9 = vector.load %arg3[%c0_4, %c0_5] : memref<8x128xbf16, #tpu.memory_space<vmem>>, vector<8x128xbf16>
    tpu.vector_store %arg3[%c0_4, %c0_5], %8 {strides = array<i32>} : memref<8x128xbf16, #tpu.memory_space<vmem>>, vector<8x128xbf16>,
    return
  }
  func.func @transform_0(%arg0: i32) -> (i32, i32) {
    %c0_i32 = arith.constant 0 : i32
    %c0_i32_0 = arith.constant 0 : i32
    return %arg0, %c0_i32 : i32, i32
  }
  func.func @transform_1(%arg0: i32) -> (i32, i32) {
    %c0_i32 = arith.constant 0 : i32
    %c0_i32_0 = arith.constant 0 : i32
    %c0_i32_1 = arith.constant 0 : i32
    return %c0_i32, %c0_i32_0 : i32, i32
  }
  func.func @transform_2(%arg0: i32) -> (i32, i32) {
    %c0_i32 = arith.constant 0 : i32
    %c0_i32_0 = arith.constant 0 : i32
    return %arg0, %c0_i32 : i32, i32
  }
}

</mosaic_0001>

<bundles_post_ra>
// kernel: discriminator_cycle_forward.8
= control target key start
LH: loop header
LB: loop body
LE: loop exit
PB: predicated region body
PF: predicated region fallthrough
CT: control target
= control target key end

     0   :  { %s5121_s9 = smov 0   ;;  %s5123_s10 = smov 0   ;;  %s5402_s0 = inlined_call_operand.vmem [shape: bf16[2,1056,128], index: 0, kind: input, shape index: {}]   ;;  %s5403_s1 = inlined_call_operand.vmem [shape: bf16[2,128,128], index: 1, kind: input, shape index: {}]   ;;  %s5404_s2 = inlined_call_operand.vmem [shape: bf16[2,1024,128], index: 2, kind: output, shape index: {}]  }
   0x1   :  { %s5125_s11 = smov 0  }
   0x2 LB: > { %s24_s12 = sadd.s32 1, %s5100_s10  ;;  %p3547_p0 = scmp.ge.s32.totalorder %s5104_s11, 1  ;;  %s5104_s11 = sphi %s5125_s11, %s12_s11   ;;  %s5100_s10 = sphi %s5123_s10, %s5406_s10   ;;  %s5096_s9 = sphi %s5121_s9, %s5405_s9  }
   0x3   : > { %p26_p1 = scmp.ge.s32.totalorder %s24_s12, 2  ;;  %p135_p2 = scmp.lt.s32.totalorder %s5104_s11, 3 }
   0x5   : > { %s5408_s12 = smov (%p26_p1, %s24_s12), 0  ;;  %p136_p3 = pnand %p3547_p0, %p135_p2 }
   0x6   : > { %v4938_v0 = vld [vmem:[%s5403_s1 + $0x40] sm:$0xff] (!%p136_p3)   ;;  %p164_p4 = scmp.lt.s32.totalorder (!%p136_p3), %s5096_s9, 1  ;;  %v4940_v2 = vld [vmem:[%s5403_s1 + $0x48] sm:$0xff] (!%p136_p3)   ;;  %v4942_v4 = vld [vmem:[%s5403_s1 + $0x50] sm:$0xff] (!%p136_p3)  }
   0x7   : > { %139 = sbr.rel (%p136_p3) target bundleno = 511 (0x1ff), region = 28  ;;  %v4939_v1 = vld [vmem:[%s5403_s1] sm:$0xff] (!%p136_p3)   ;;  %4497 = vmatprep.subr.bf16.mxu1 (!%p136_p3), %v4938_v0  ;;  %v4941_v3 = vld [vmem:[%s5403_s1 + $0x8] sm:$0xff] (!%p136_p3)   ;;  %v4943_v5 = vld [vmem:[%s5403_s1 + $0x10] sm:$0xff] (!%p136_p3)  }
   0x8   : > { %4641 = vmatprep.subr.bf16.mxu0 (!%p136_p3), %v4939_v1  ;;  %4498 = vmatpush3.bf16.msra.mxu1 (!%p136_p3), %v4938_v0  ;;  %v4944_v6 = vld [vmem:[%s5403_s1 + $0x58] sm:$0xff] (!%p136_p3)   ;;  %v4946_v8 = vld [vmem:[%s5403_s1 + $0x60] sm:$0xff] (!%p136_p3)   ;;  %v4948_v10 = vld [vmem:[%s5403_s1 + $0x68] sm:$0xff] (!%p136_p3)  }
   0x9   : > { %4642 = vmatpush3.bf16.msra.mxu0 (!%p136_p3), %v4939_v1  ;;  %4499 = vmatprep.subr.bf16.mxu1 (!%p136_p3), %v4940_v2  ;;  %v4945_v7 = vld [vmem:[%s5403_s1 + $0x18] sm:$0xff] (!%p136_p3)   ;;  %v4947_v9 = vld [vmem:[%s5403_s1 + $0x20] sm:$0xff] (!%p136_p3)   ;;  %v4949_v11 = vld [vmem:[%s5403_s1 + $0x28] sm:$0xff] (!%p136_p3)  }
   0xa   : > { %4643 = vmatprep.subr.bf16.mxu0 (!%p136_p3), %v4941_v3  ;;  %v4950_v14 = vld [vmem:[%s5403_s1 + $0x70] sm:$0xff] (!%p136_p3)   ;;  %v4952_v16 = vld [vmem:[%s5403_s1 + $0x78] sm:$0xff] (!%p136_p3)  }
   0xb   : > { %v4951_v15 = vld [vmem:[%s5403_s1 + $0x30] sm:$0xff] (!%p136_p3)   ;;  %v4953_v17 = vld [vmem:[%s5403_s1 + $0x38] sm:$0xff] (!%p136_p3)  }
   0xc   : > { %4500 = vmatpush3.bf16.msra.mxu1 (!%p136_p3), %v4940_v2 }
   0xd   : > { %4644 = vmatpush3.bf16.msra.mxu0 (!%p136_p3), %v4941_v3  ;;  %4501 = vmatprep.subr.bf16.mxu1 (!%p136_p3), %v4942_v4 }
   0xe   : > { %s5410_s9 = smov (!%p164_p4, %s5096_s9), 1  ;;  %4645 = vmatprep.subr.bf16.mxu0 %v4943_v5 }
   0xf   : > { %s4913_s29 = smul.u32 528, %s5410_s9  ;;  %s3841_s25 = sshll.u32 %s5410_s9, 9 }
  0x10   : > { %4502 = vmatpush3.bf16.msra.mxu1 %v4942_v4  ;;  %s5313_s28 = scalar_lea.vmem %s5404_s2, %s3841_s25 }
  0x11   : > { %4646 = vmatpush3.bf16.msra.mxu0 %v4943_v5  ;;  %4503 = vmatprep.subr.bf16.mxu1 %v4944_v6  ;;  %s5175_s8 = scalar_lea.vmem %s5402_s0, %s4913_s29 }
  0x12   : > { %4647 = vmatprep.subr.bf16.mxu0 %v4945_v7  ;;  %v4954_v12 = vld [vmem:[%s5175_s8 + $0x10] sm:$0xff]   ;;  %v4955_v13 = vld [vmem:[%s5175_s8] sm:$0xff]   ;;  %v4956_v18 = vld [vmem:[%s5175_s8 + $0x18] sm:$0xff]  }
  0x13   : > { %4513 = vmatprep.mubr.bf16.mxu1 %v4954_v12  ;;  %4657 = vmatprep.mubr.bf16.mxu0 %v4955_v13  ;;  %v4957_v19 = vld [vmem:[%s5175_s8 + $0x8] sm:$0xff]   ;;  %v4958_v20 = vld [vmem:[%s5175_s8 + $0x20] sm:$0xff]   ;;  %v4959_v21 = vld [vmem:[%s5175_s8 + $0x10] sm:$0xff]  }
  0x14   : > { %4504 = vmatpush3.bf16.msra.mxu1 %v4944_v6  ;;  %v4960_v22 = vld [vmem:[%s5175_s8 + $0x28] sm:$0xff]   ;;  %v4961_v23 = vld [vmem:[%s5175_s8 + $0x18] sm:$0xff]   ;;  %v4962_v24 = vld [vmem:[%s5175_s8 + $0x30] sm:$0xff]  }
  0x15   : > { %4648 = vmatpush3.bf16.msra.mxu0 %v4945_v7  ;;  %4505 = vmatprep.subr.bf16.mxu1 %v4946_v8  ;;  %v4963_v25 = vld [vmem:[%s5175_s8 + $0x20] sm:$0xff]   ;;  %v4964_v26 = vld [vmem:[%s5175_s8 + $0x38] sm:$0xff]   ;;  %v4965_v27 = vld [vmem:[%s5175_s8 + $0x28] sm:$0xff]  }
  0x16   : > { %4649 = vmatprep.subr.bf16.mxu0 %v4947_v9  ;;  %v4966_v28 = vld [vmem:[%s5175_s8 + $0x40] sm:$0xff]   ;;  %v4967_v29 = vld [vmem:[%s5175_s8 + $0x30] sm:$0xff]   ;;  %v4968_v30 = vld [vmem:[%s5175_s8 + $0x48] sm:$0xff]  }
  0x17   : > { %v4969_v31 = vld [vmem:[%s5175_s8 + $0x38] sm:$0xff]   ;;  %v4970_v32 = vld [vmem:[%s5175_s8 + $0x50] sm:$0xff]   ;;  %v4971_v33 = vld [vmem:[%s5175_s8 + $0x40] sm:$0xff]  }
  0x18   : > { %4506 = vmatpush3.bf16.msra.mxu1 %v4946_v8  ;;  %v4972_v34 = vld [vmem:[%s5175_s8 + $0x58] sm:$0xff]   ;;  %v4973_v35 = vld [vmem:[%s5175_s8 + $0x48] sm:$0xff]   ;;  %v4974_v36 = vld [vmem:[%s5175_s8 + $0x60] sm:$0xff]  }
  0x19   : > { %4650 = vmatpush3.bf16.msra.mxu0 %v4947_v9  ;;  %4507 = vmatprep.subr.bf16.mxu1 %v4948_v10  ;;  %v4975_v37 = vld [vmem:[%s5175_s8 + $0x50] sm:$0xff]   ;;  %v4976_v38 = vld [vmem:[%s5175_s8 + $0x68] sm:$0xff]   ;;  %v4977_v39 = vld [vmem:[%s5175_s8 + $0x58] sm:$0xff]  }
  0x1a   : > { %4651 = vmatprep.subr.bf16.mxu0 %v4949_v11  ;;  %v4978_v40 = vld [vmem:[%s5175_s8 + $0x70] sm:$0xff]   ;;  %v4979_v41 = vld [vmem:[%s5175_s8 + $0x60] sm:$0xff]   ;;  %v4980_v42 = vld [vmem:[%s5175_s8 + $0x78] sm:$0xff]  }
  0x1b   : > { %v4981_v43 = vld [vmem:[%s5175_s8 + $0x68] sm:$0xff]   ;;  %v4982_v44 = vld [vmem:[%s5175_s8 + $0x80] sm:$0xff]   ;;  %v4983_v45 = vld [vmem:[%s5175_s8 + $0x70] sm:$0xff]  }
  0x1c   : > { %4508 = vmatpush3.bf16.msra.mxu1 %v4948_v10  ;;  %v4984_v46 = vld [vmem:[%s5175_s8 + $0x88] sm:$0xff]   ;;  %v4985_v47 = vld [vmem:[%s5175_s8 + $0x78] sm:$0xff]   ;;  %v4986_v48 = vld [vmem:[%s5175_s8 + $0x90] sm:$0xff]  }
  0x1d   : > { %4652 = vmatpush3.bf16.msra.mxu0 %v4949_v11  ;;  %4509 = vmatprep.subr.bf16.mxu1 %v4950_v14  ;;  %v4987_v49 = vld [vmem:[%s5175_s8 + $0x80] sm:$0xff]   ;;  %v4988_v50 = vld [vmem:[%s5175_s8 + $0x98] sm:$0xff]   ;;  %v4989_v51 = vld [vmem:[%s5175_s8 + $0x88] sm:$0xff]  }
  0x1e   : > { %4653 = vmatprep.subr.bf16.mxu0 %v4951_v15  ;;  %v4990_v52 = vld [vmem:[%s5175_s8 + $0xa0] sm:$0xff]   ;;  %v4991_v53 = vld [vmem:[%s5175_s8 + $0x90] sm:$0xff]   ;;  %v4992_v54 = vld [vmem:[%s5175_s8 + $0xa8] sm:$0xff]  }
  0x1f   : > { %v4993_v55 = vld [vmem:[%s5175_s8 + $0x98] sm:$0xff]   ;;  %v4994_v56 = vld [vmem:[%s5175_s8 + $0xb0] sm:$0xff]   ;;  %v4995_v57 = vld [vmem:[%s5175_s8 + $0xa0] sm:$0xff]  }
  0x20   : > { %4510 = vmatpush3.bf16.msra.mxu1 %v4950_v14  ;;  %v4996_v58 = vld [vmem:[%s5175_s8 + $0xb8] sm:$0xff]   ;;  %v4997_v59 = vld [vmem:[%s5175_s8 + $0xa8] sm:$0xff]   ;;  %v4998_v60 = vld [vmem:[%s5175_s8 + $0xc0] sm:$0xff]  }
  0x21   : > { %4654 = vmatpush3.bf16.msra.mxu0 %v4951_v15  ;;  %4511 = vmatprep.subr.bf16.mxu1 %v4952_v16  ;;  %v4999_v61 = vld [vmem:[%s5175_s8 + $0xb0] sm:$0xff]   ;;  %v5000_v62 = vld [vmem:[%s5175_s8 + $0xc8] sm:$0xff]   ;;  %v5001_v63 = vld [vmem:[%s5175_s8 + $0xb8] sm:$0xff]  }
  0x22   : > { %4655 = vmatprep.subr.bf16.mxu0 %v4953_v17  ;;  %v5002_v0 = vld [vmem:[%s5175_s8 + $0xd0] sm:$0xff]   ;;  %v5003_v1 = vld [vmem:[%s5175_s8 + $0xc0] sm:$0xff]   ;;  %v5004_v2 = vld [vmem:[%s5175_s8 + $0xd8] sm:$0xff]  }
  0x23   : > { %v5005_v3 = vld [vmem:[%s5175_s8 + $0xc8] sm:$0xff]   ;;  %v5006_v4 = vld [vmem:[%s5175_s8 + $0xe0] sm:$0xff]   ;;  %v5007_v5 = vld [vmem:[%s5175_s8 + $0xd0] sm:$0xff]  }
  0x24   : > { %4512 = vmatpush3.bf16.msra.mxu1 %v4952_v16  ;;  %v5008_v6 = vld [vmem:[%s5175_s8 + $0xe8] sm:$0xff]   ;;  %v5009_v7 = vld [vmem:[%s5175_s8 + $0xd8] sm:$0xff]   ;;  %v5010_v8 = vld [vmem:[%s5175_s8 + $0xf0] sm:$0xff]  }
  0x25   : > { %4656 = vmatpush3.bf16.msra.mxu0 %v4953_v17  ;;  %v5011_v9 = vld [vmem:[%s5175_s8 + $0xe0] sm:$0xff]   ;;  %v5012_v10 = vld [vmem:[%s5175_s8 + $0xf8] sm:$0xff]   ;;  %v5013_v11 = vld [vmem:[%s5175_s8 + $0xe8] sm:$0xff]  }
  0x26   : > { %v5014_v12 = vld [vmem:[%s5175_s8 + $0x100] sm:$0xff]   ;;  %v5015_v13 = vld [vmem:[%s5175_s8 + $0xf0] sm:$0xff]   ;;  %v5016_v14 = vld [vmem:[%s5175_s8 + $0x108] sm:$0xff]  }
  0x27   : > { %4514 = vmatmul.mubr.bf16.vlgmr.msra.gmra.mrb[0].mxu1 %v4956_v18  ;;  %v5017_v15 = vld [vmem:[%s5175_s8 + $0xf8] sm:$0xff]   ;;  %v5018_v16 = vld [vmem:[%s5175_s8 + $0x110] sm:$0xff]   ;;  %v5019_v17 = vld [vmem:[%s5175_s8 + $0x100] sm:$0xff]  }
  0x28   : > { %4658 = vmatmul.mubr.bf16.vlgmr.msra.gmra.mrb[0].mxu0 %v4957_v19  ;;  %4517 = vmatprep.mubr.bf16.mxu1 %v4958_v20  ;;  %v5020_v18 = vld [vmem:[%s5175_s8 + $0x118] sm:$0xff]   ;;  %v5021_v19 = vld [vmem:[%s5175_s8 + $0x108] sm:$0xff]   ;;  %v5022_v20 = vld [vmem:[%s5175_s8 + $0x120] sm:$0xff]  }
  0x29   : > { %4661 = vmatprep.mubr.bf16.mxu0 %v4959_v21  ;;  %v5023_v21 = vld [vmem:[%s5175_s8 + $0x110] sm:$0xff]  }
  0x2f   : > { %4518 = vmatmul.mubr.bf16.gmra.mrb[4].mxu1 %v4960_v22  ;;  %v5024_v22 = vld [vmem:[%s5175_s8 + $0x128] sm:$0xff]  }
  0x30   : > { %4662 = vmatmul.mubr.bf16.gmra.mrb[4].mxu0 %v4961_v23  ;;  %4521 = vmatprep.mubr.bf16.mxu1 %v4962_v24  ;;  %v5025_v23 = vld [vmem:[%s5175_s8 + $0x118] sm:$0xff]   ;;  %v5026_v24 = vld [vmem:[%s5175_s8 + $0x130] sm:$0xff]  }
  0x31   : > { %4665 = vmatprep.mubr.bf16.mxu0 %v4963_v25  ;;  %v5027_v25 = vld [vmem:[%s5175_s8 + $0x120] sm:$0xff]  }
  0x37   : > { %4522 = vmatmul.mubr.bf16.gmra.mrb[8].mxu1 %v4964_v26  ;;  %v5028_v26 = vld [vmem:[%s5175_s8 + $0x138] sm:$0xff]  }
  0x38   : > { %4666 = vmatmul.mubr.bf16.gmra.mrb[8].mxu0 %v4965_v27  ;;  %4525 = vmatprep.mubr.bf16.mxu1 %v4966_v28  ;;  %v5029_v27 = vld [vmem:[%s5175_s8 + $0x128] sm:$0xff]   ;;  %v5030_v28 = vld [vmem:[%s5175_s8 + $0x140] sm:$0xff]  }
  0x39   : > { %4669 = vmatprep.mubr.bf16.mxu0 %v4967_v29  ;;  %v5031_v29 = vld [vmem:[%s5175_s8 + $0x130] sm:$0xff]  }
  0x3f   : > { %4526 = vmatmul.mubr.bf16.gmra.mrb[12].mxu1 %v4968_v30  ;;  %v5032_v30 = vld [vmem:[%s5175_s8 + $0x148] sm:$0xff]  }
  0x40   : > { %4670 = vmatmul.mubr.bf16.gmra.mrb[12].mxu0 %v4969_v31  ;;  %4529 = vmatprep.mubr.bf16.mxu1 %v4970_v32  ;;  %v5033_v31 = vld [vmem:[%s5175_s8 + $0x138] sm:$0xff]   ;;  %v5034_v32 = vld [vmem:[%s5175_s8 + $0x150] sm:$0xff]  }
  0x41   : > { %4673 = vmatprep.mubr.bf16.mxu0 %v4971_v33  ;;  %v5035_v33 = vld [vmem:[%s5175_s8 + $0x140] sm:$0xff]  }
  0x47   : > { %4530 = vmatmul.mubr.bf16.gmra.mrb[16].mxu1 %v4972_v34  ;;  %v5036_v34 = vld [vmem:[%s5175_s8 + $0x158] sm:$0xff]  }
  0x48   : > { %4674 = vmatmul.mubr.bf16.gmra.mrb[16].mxu0 %v4973_v35  ;;  %4533 = vmatprep.mubr.bf16.mxu1 %v4974_v36  ;;  %v5037_v35 = vld [vmem:[%s5175_s8 + $0x148] sm:$0xff]   ;;  %v5038_v36 = vld [vmem:[%s5175_s8 + $0x160] sm:$0xff]  }
  0x49   : > { %4677 = vmatprep.mubr.bf16.mxu0 %v4975_v37  ;;  %v5039_v37 = vld [vmem:[%s5175_s8 + $0x150] sm:$0xff]  }
  0x4f   : > { %4534 = vmatmul.mubr.bf16.gmra.mrb[20].mxu1 %v4976_v38  ;;  %v5040_v38 = vld [vmem:[%s5175_s8 + $0x168] sm:$0xff]  }
  0x50   : > { %4678 = vmatmul.mubr.bf16.gmra.mrb[20].mxu0 %v4977_v39  ;;  %4537 = vmatprep.mubr.bf16.mxu1 %v4978_v40  ;;  %v5041_v39 = vld [vmem:[%s5175_s8 + $0x158] sm:$0xff]   ;;  %v5042_v40 = vld [vmem:[%s5175_s8 + $0x170] sm:$0xff]  }
  0x51   : > { %4681 = vmatprep.mubr.bf16.mxu0 %v4979_v41  ;;  %v5043_v41 = vld [vmem:[%s5175_s8 + $0x160] sm:$0xff]  }
  0x57   : > { %4538 = vmatmul.mubr.bf16.gmra.mrb[24].mxu1 %v4980_v42  ;;  %v5044_v42 = vld [vmem:[%s5175_s8 + $0x178] sm:$0xff]  }
  0x58   : > { %4682 = vmatmul.mubr.bf16.gmra.mrb[24].mxu0 %v4981_v43  ;;  %4541 = vmatprep.mubr.bf16.mxu1 %v4982_v44  ;;  %v5045_v43 = vld [vmem:[%s5175_s8 + $0x168] sm:$0xff]   ;;  %v5046_v44 = vld [vmem:[%s5175_s8 + $0x180] sm:$0xff]  }
  0x59   : > { %4685 = vmatprep.mubr.bf16.mxu0 %v4983_v45  ;;  %v5047_v45 = vld [vmem:[%s5175_s8 + $0x170] sm:$0xff]  }
  0x5f   : > { %4542 = vmatmul.mubr.bf16.gmra.mrb[28].mxu1 %v4984_v46  ;;  %v5048_v46 = vld [vmem:[%s5175_s8 + $0x188] sm:$0xff]  }
  0x60   : > { %4686 = vmatmul.mubr.bf16.gmra.mrb[28].mxu0 %v4985_v47  ;;  %4545 = vmatprep.mubr.bf16.mxu1 %v4986_v48  ;;  %v5049_v47 = vld [vmem:[%s5175_s8 + $0x178] sm:$0xff]   ;;  %v5050_v48 = vld [vmem:[%s5175_s8 + $0x190] sm:$0xff]  }
  0x61   : > { %4689 = vmatprep.mubr.bf16.mxu0 %v4987_v49  ;;  %v5051_v49 = vld [vmem:[%s5175_s8 + $0x180] sm:$0xff]  }
  0x67   : > { %4546 = vmatmul.mubr.bf16.gmra.mrb[32].mxu1 %v4988_v50  ;;  %v5052_v50 = vld [vmem:[%s5175_s8 + $0x198] sm:$0xff]  }
  0x68   : > { %4690 = vmatmul.mubr.bf16.gmra.mrb[32].mxu0 %v4989_v51  ;;  %4549 = vmatprep.mubr.bf16.mxu1 %v4990_v52  ;;  %v5053_v51 = vld [vmem:[%s5175_s8 + $0x188] sm:$0xff]   ;;  %v5054_v52 = vld [vmem:[%s5175_s8 + $0x1a0] sm:$0xff]  }
  0x69   : > { %4693 = vmatprep.mubr.bf16.mxu0 %v4991_v53  ;;  %v5055_v53 = vld [vmem:[%s5175_s8 + $0x190] sm:$0xff]  }
  0x6f   : > { %4550 = vmatmul.mubr.bf16.gmra.mrb[36].mxu1 %v4992_v54  ;;  %v5056_v54 = vld [vmem:[%s5175_s8 + $0x1a8] sm:$0xff]  }
  0x70   : > { %4694 = vmatmul.mubr.bf16.gmra.mrb[36].mxu0 %v4993_v55  ;;  %4553 = vmatprep.mubr.bf16.mxu1 %v4994_v56  ;;  %v5057_v55 = vld [vmem:[%s5175_s8 + $0x198] sm:$0xff]   ;;  %v5058_v56 = vld [vmem:[%s5175_s8 + $0x1b0] sm:$0xff]  }
  0x71   : > { %4697 = vmatprep.mubr.bf16.mxu0 %v4995_v57  ;;  %v5059_v57 = vld [vmem:[%s5175_s8 + $0x1a0] sm:$0xff]  }
  0x77   : > { %4554 = vmatmul.mubr.bf16.gmra.mrb[40].mxu1 %v4996_v58  ;;  %v5060_v58 = vld [vmem:[%s5175_s8 + $0x1b8] sm:$0xff]  }
  0x78   : > { %4698 = vmatmul.mubr.bf16.gmra.mrb[40].mxu0 %v4997_v59  ;;  %4557 = vmatprep.mubr.bf16.mxu1 %v4998_v60  ;;  %v5061_v59 = vld [vmem:[%s5175_s8 + $0x1a8] sm:$0xff]   ;;  %v5062_v60 = vld [vmem:[%s5175_s8 + $0x1c0] sm:$0xff]  }
  0x79   : > { %4701 = vmatprep.mubr.bf16.mxu0 %v4999_v61  ;;  %v5063_v61 = vld [vmem:[%s5175_s8 + $0x1b0] sm:$0xff]  }
  0x7f   : > { %4558 = vmatmul.mubr.bf16.gmra.mrb[44].mxu1 %v5000_v62 }
  0x80   : > { %4702 = vmatmul.mubr.bf16.gmra.mrb[44].mxu0 %v5001_v63  ;;  %4561 = vmatprep.mubr.bf16.mxu1 %v5002_v0 }
  0x81   : > { %4705 = vmatprep.mubr.bf16.mxu0 %v5003_v1  ;;  %v5064_v1 = vld [vmem:[%s5175_s8 + $0x1c8] sm:$0xff]  }
  0x87   : > { %4562 = vmatmul.mubr.bf16.gmra.mrb[48].mxu1 %v5004_v2 }
  0x88   : > { %4706 = vmatmul.mubr.bf16.gmra.mrb[48].mxu0 %v5005_v3  ;;  %4565 = vmatprep.mubr.bf16.mxu1 %v5006_v4 }
  0x89   : > { %4709 = vmatprep.mubr.bf16.mxu0 %v5007_v5  ;;  %v5065_v5 = vld [vmem:[%s5175_s8 + $0x1b8] sm:$0xff]  }
  0x8f   : > { %4566 = vmatmul.mubr.bf16.gmra.mrb[52].mxu1 %v5008_v6  ;;  %v5066_v6 = vld [vmem:[%s5175_s8 + $0x1d0] sm:$0xff]  }
  0x90   : > { %4710 = vmatmul.mubr.bf16.gmra.mrb[52].mxu0 %v5009_v7  ;;  %4569 = vmatprep.mubr.bf16.mxu1 %v5010_v8 }
  0x91   : > { %4713 = vmatprep.mubr.bf16.mxu0 %v5011_v9 }
  0x97   : > { %4570 = vmatmul.mubr.bf16.gmra.mrb[56].mxu1 %v5012_v10  ;;  %v5067_v10 = vld [vmem:[%s5175_s8 + $0x1c0] sm:$0xff]  }
  0x98   : > { %4714 = vmatmul.mubr.bf16.gmra.mrb[56].mxu0 %v5013_v11  ;;  %4573 = vmatprep.mubr.bf16.mxu1 %v5014_v12 }
  0x99   : > { %4717 = vmatprep.mubr.bf16.mxu0 %v5015_v13 }
  0x9f   : > { %4574 = vmatmul.mubr.bf16.gmra.mrb[60].mxu1 %v5016_v14 }
  0xa0   : > { %4718 = vmatmul.mubr.bf16.gmra.mrb[60].mxu0 %v5017_v15  ;;  %4577 = vmatprep.mubr.bf16.mxu1 %v5018_v16 }
  0xa1   : > { %4721 = vmatprep.mubr.bf16.mxu0 %v5019_v17 }
  0xa7   : > { %4578 = vmatmul.mubr.bf16.gmra.mrb[64].mxu1 %v5020_v18 }
  0xa8   : > { %4722 = vmatmul.mubr.bf16.gmra.mrb[64].mxu0 %v5021_v19  ;;  %4581 = vmatprep.mubr.bf16.mxu1 %v5022_v20 }
  0xa9   : > { %4725 = vmatprep.mubr.bf16.mxu0 %v5023_v21 }
  0xaf   : > { %4582 = vmatmul.mubr.bf16.gmra.mrb[68].mxu1 %v5024_v22 }
  0xb0   : > { %4726 = vmatmul.mubr.bf16.gmra.mrb[68].mxu0 %v5025_v23  ;;  %4585 = vmatprep.mubr.bf16.mxu1 %v5026_v24 }
  0xb1   : > { %4729 = vmatprep.mubr.bf16.mxu0 %v5027_v25 }
  0xb7   : > { %4586 = vmatmul.mubr.bf16.gmra.mrb[72].mxu1 %v5028_v26  ;;  %v5068_v26 = vld [vmem:[%s5175_s8 + $0x1d8] sm:$0xff]  }
  0xb8   : > { %4730 = vmatmul.mubr.bf16.gmra.mrb[72].mxu0 %v5029_v27  ;;  %4589 = vmatprep.mubr.bf16.mxu1 %v5030_v28 }
  0xb9   : > { %4733 = vmatprep.mubr.bf16.mxu0 %v5031_v29 }
  0xbf   : > { %4590 = vmatmul.mubr.bf16.gmra.mrb[76].mxu1 %v5032_v30 }
  0xc0   : > { %4734 = vmatmul.mubr.bf16.gmra.mrb[76].mxu0 %v5033_v31  ;;  %4593 = vmatprep.mubr.bf16.mxu1 %v5034_v32  ;;  %v5069_v31 = vld [vmem:[%s5175_s8 + $0x1c8] sm:$0xff]   ;;  %v5070_v32 = vld [vmem:[%s5175_s8 + $0x1e0] sm:$0xff]  }
  0xc1   : > { %4737 = vmatprep.mubr.bf16.mxu0 %v5035_v33 }
  0xc7   : > { %4594 = vmatmul.mubr.bf16.gmra.mrb[80].mxu1 %v5036_v34 }
  0xc8   : > { %4738 = vmatmul.mubr.bf16.gmra.mrb[80].mxu0 %v5037_v35  ;;  %4597 = vmatprep.mubr.bf16.mxu1 %v5038_v36  ;;  %v5071_v36 = vld [vmem:[%s5175_s8 + $0x1d0] sm:$0xff]  }
  0xc9   : > { %4741 = vmatprep.mubr.bf16.mxu0 %v5039_v37 }
  0xcf   : > { %4598 = vmatmul.mubr.bf16.gmra.mrb[84].mxu1 %v5040_v38 }
  0xd0   : > { %4742 = vmatmul.mubr.bf16.gmra.mrb[84].mxu0 %v5041_v39  ;;  %4601 = vmatprep.mubr.bf16.mxu1 %v5042_v40 }
  0xd1   : > { %4745 = vmatprep.mubr.bf16.mxu0 %v5043_v41 }
  0xd7   : > { %4602 = vmatmul.mubr.bf16.gmra.mrb[88].mxu1 %v5044_v42 }
  0xd8   : > { %4746 = vmatmul.mubr.bf16.gmra.mrb[88].mxu0 %v5045_v43  ;;  %4605 = vmatprep.mubr.bf16.mxu1 %v5046_v44 }
  0xd9   : > { %4749 = vmatprep.mubr.bf16.mxu0 %v5047_v45 }
  0xdf   : > { %4606 = vmatmul.mubr.bf16.gmra.mrb[92].mxu1 %v5048_v46 }
  0xe0   : > { %4750 = vmatmul.mubr.bf16.gmra.mrb[92].mxu0 %v5049_v47  ;;  %4609 = vmatprep.mubr.bf16.mxu1 %v5050_v48 }
  0xe1   : > { %4753 = vmatprep.mubr.bf16.mxu0 %v5051_v49 }
  0xe7   : > { %4610 = vmatmul.mubr.bf16.gmra.mrb[96].mxu1 %v5052_v50 }
  0xe8   : > { %4754 = vmatmul.mubr.bf16.gmra.mrb[96].mxu0 %v5053_v51  ;;  %4613 = vmatprep.mubr.bf16.mxu1 %v5054_v52  ;;  %v5072_v52 = vld [vmem:[%s5175_s8 + $0x1e8] sm:$0xff]  }
  0xe9   : > { %4757 = vmatprep.mubr.bf16.mxu0 %v5055_v53 }
  0xef   : > { %4614 = vmatmul.mubr.bf16.gmra.mrb[100].mxu1 %v5056_v54 }
  0xf0   : > { %4758 = vmatmul.mubr.bf16.gmra.mrb[100].mxu0 %v5057_v55  ;;  %4617 = vmatprep.mubr.bf16.mxu1 %v5058_v56 }
  0xf1   : > { %4761 = vmatprep.mubr.bf16.mxu0 %v5059_v57  ;;  %v5073_v57 = vld [vmem:[%s5175_s8 + $0x1d8] sm:$0xff]  }
  0xf7   : > { %4618 = vmatmul.mubr.bf16.gmra.mrb[104].mxu1 %v5060_v58  ;;  %v5074_v58 = vld [vmem:[%s5175_s8 + $0x1f0] sm:$0xff]  }
  0xf8   : > { %4762 = vmatmul.mubr.bf16.gmra.mrb[104].mxu0 %v5061_v59  ;;  %4621 = vmatprep.mubr.bf16.mxu1 %v5062_v60 }
  0xf9   : > { %4765 = vmatprep.mubr.bf16.mxu0 %v5063_v61 }
  0xfa   : > { %v4515_v62 = vpop.f32.mrb[0].mxu1 }
  0xfb   : > { %v4659_v63 = vpop.f32.mrb[0].mxu0  ;;  %v937_v0 = vpop.f32.mrb[1].mxu1 }
  0xfc   : > { %v1923_v2 = vadd.f32 %v4659_v63, %v4515_v62  ;;  %v1914_v3 = vpop.f32.mrb[1].mxu0  ;;  %v4516_v4 = vpop.f32.mrb[2].mxu1  ;;  %v5075_v62 = vld [vmem:[%s5175_s8 + $0x1e0] sm:$0xff]  }
  0xfd   : > { %v1915_v7 = vadd.f32 %v1914_v3, %v937_v0  ;;  %v4660_v8 = vpop.f32.mrb[2].mxu0  ;;  %v940_v9 = vpop.f32.mrb[3].mxu1 }
  0xfe   : > { %v2555_v11 = vmul.f32 0.2, %v1923_v2  ;;  %v1926_v12 = vadd.f32 %v4660_v8, %v4516_v4  ;;  %v1917_v13 = vpop.f32.mrb[3].mxu0  ;;  %vm2427_vm0 = vcmp.ge.f32.partialorder %v1923_v2, 0.0 }
  0xff   : > { %v2553_v14 = vmul.f32 0.2, %v1915_v7  ;;  %v1918_v15 = vadd.f32 %v1917_v13, %v940_v9  ;;  %4622 = vmatmul.mubr.bf16.gmra.mrb[108].mxu1 %v5064_v1  ;;  %vm2425_vm1 = vcmp.ge.f32.partialorder %v1915_v7, 0.0 }
 0x100   : > { %vm2428_vm2 = vcmp.ge.f32.partialorder %v1926_v12, 0.0  ;;  %v2556_v16 = vmul.f32 0.2, %v1926_v12  ;;  %4766 = vmatmul.mubr.bf16.gmra.mrb[108].mxu0 %v5065_v5  ;;  %4625 = vmatprep.mubr.bf16.mxu1 %v5066_v6  ;;  %v2683_v18 = vsel %vm2427_vm0, %v1923_v2, %v2555_v11 }
 0x101   : > { %vm2426_vm3 = vcmp.ge.f32.partialorder %v1918_v15, 0.0  ;;  %v2554_v17 = vmul.f32 0.2, %v1918_v15  ;;  %4769 = vmatprep.mubr.bf16.mxu0 %v5067_v10  ;;  %v2681_v21 = vsel %vm2425_vm1, %v1915_v7, %v2553_v14  ;;  %v5076_v14 = vld [vmem:[%s5175_s8 + $0x1f8] sm:$0xff]  }
 0x102   : > { %v2684_v19 = vsel %vm2428_vm2, %v1926_v12, %v2556_v16  ;;  %v4519_v20 = vpop.f32.mrb[4].mxu1 }
 0x103   : > { %v3978_v22 = vpack.c.bf16 %v2684_v19, %v2683_v18  ;;  %v2682_v23 = vsel %vm2426_vm3, %v1918_v15, %v2554_v17  ;;  %v4663_v24 = vpop.f32.mrb[4].mxu0  ;;  %v953_v25 = vpop.f32.mrb[5].mxu1  ;;  %v5077_v19 = vld [vmem:[%s5175_s8 + $0x1e8] sm:$0xff]  }
 0x104   : > { %v3973_v27 = vpack.c.bf16 %v2682_v23, %v2681_v21  ;;  %v1939_v28 = vadd.f32 %v4663_v24, %v4519_v20  ;;  %v1930_v29 = vpop.f32.mrb[5].mxu0  ;;  %v4520_v30 = vpop.f32.mrb[6].mxu1  ;;  %v5078_v20 = vld [vmem:[%s5175_s8 + $0x200] sm:$0xff]   ;;  %v5079_v24 = vld [vmem:[%s5175_s8 + $0x1f0] sm:$0xff]  }
 0x105   : > { %4290 = vst [vmem:[%s5313_s28 + $0x8] sm:$0xff] %v3978_v22   ;;  %v1931_v33 = vadd.f32 %v1930_v29, %v953_v25  ;;  %v4664_v34 = vpop.f32.mrb[6].mxu0  ;;  %v956_v35 = vpop.f32.mrb[7].mxu1 }
 0x106   : > { %3974 = vst [vmem:[%s5313_s28] sm:$0xff] %v3973_v27   ;;  %v2559_v37 = vmul.f32 0.2, %v1939_v28  ;;  %v1942_v38 = vadd.f32 %v4664_v34, %v4520_v30  ;;  %v1933_v39 = vpop.f32.mrb[7].mxu0  ;;  %vm2431_vm4 = vcmp.ge.f32.partialorder %v1939_v28, 0.0 }
 0x107   : > { %v2557_v40 = vmul.f32 0.2, %v1931_v33  ;;  %v1934_v41 = vadd.f32 %v1933_v39, %v956_v35  ;;  %4626 = vmatmul.mubr.bf16.gmra.mrb[112].mxu1 %v5068_v26  ;;  %vm2429_vm5 = vcmp.ge.f32.partialorder %v1931_v33, 0.0 }
 0x108   : > { %vm2432_vm6 = vcmp.ge.f32.partialorder %v1942_v38, 0.0  ;;  %v2560_v42 = vmul.f32 0.2, %v1942_v38  ;;  %4770 = vmatmul.mubr.bf16.gmra.mrb[112].mxu0 %v5069_v31  ;;  %4629 = vmatprep.mubr.bf16.mxu1 %v5070_v32  ;;  %v2687_v44 = vsel %vm2431_vm4, %v1939_v28, %v2559_v37 }
 0x109   : > { %vm2430_vm7 = vcmp.ge.f32.partialorder %v1934_v41, 0.0  ;;  %v2558_v43 = vmul.f32 0.2, %v1934_v41  ;;  %4773 = vmatprep.mubr.bf16.mxu0 %v5071_v36  ;;  %v2685_v47 = vsel %vm2429_vm5, %v1931_v33, %v2557_v40  ;;  %v5080_v40 = vld [vmem:[%s5175_s8 + $0x208] sm:$0xff]  }
 0x10a   : > { %v2688_v45 = vsel %vm2432_vm6, %v1942_v38, %v2560_v42  ;;  %v4523_v46 = vpop.f32.mrb[8].mxu1 }
 0x10b   : > { %v3988_v48 = vpack.c.bf16 %v2688_v45, %v2687_v44  ;;  %v2686_v49 = vsel %vm2430_vm7, %v1934_v41, %v2558_v43  ;;  %v4667_v50 = vpop.f32.mrb[8].mxu0  ;;  %v969_v51 = vpop.f32.mrb[9].mxu1  ;;  %v5081_v45 = vld [vmem:[%s5175_s8 + $0x1f8] sm:$0xff]  }
 0x10c   : > { %v3983_v53 = vpack.c.bf16 %v2686_v49, %v2685_v47  ;;  %v1955_v54 = vadd.f32 %v4667_v50, %v4523_v46  ;;  %v1946_v55 = vpop.f32.mrb[9].mxu0  ;;  %v4524_v56 = vpop.f32.mrb[10].mxu1 }
 0x10d   : > { %4292 = vst [vmem:[%s5313_s28 + $0x18] sm:$0xff] %v3988_v48   ;;  %v1947_v59 = vadd.f32 %v1946_v55, %v969_v51  ;;  %v4668_v60 = vpop.f32.mrb[10].mxu0  ;;  %v972_v61 = vpop.f32.mrb[11].mxu1 }
 0x10e   : > { %4291 = vst [vmem:[%s5313_s28 + $0x10] sm:$0xff] %v3983_v53   ;;  %v2563_v63 = vmul.f32 0.2, %v1955_v54  ;;  %v1958_v0 = vadd.f32 %v4668_v60, %v4524_v56  ;;  %v1949_v1 = vpop.f32.mrb[11].mxu0  ;;  %vm2435_vm8 = vcmp.ge.f32.partialorder %v1955_v54, 0.0 }
 0x10f   : > { %v2561_v2 = vmul.f32 0.2, %v1947_v59  ;;  %v1950_v3 = vadd.f32 %v1949_v1, %v972_v61  ;;  %4630 = vmatmul.mubr.bf16.gmra.mrb[116].mxu1 %v5072_v52  ;;  %vm2433_vm9 = vcmp.ge.f32.partialorder %v1947_v59, 0.0 }
 0x110   : > { %vm2436_vm10 = vcmp.ge.f32.partialorder %v1958_v0, 0.0  ;;  %v2564_v4 = vmul.f32 0.2, %v1958_v0  ;;  %4774 = vmatmul.mubr.bf16.gmra.mrb[116].mxu0 %v5073_v57  ;;  %4633 = vmatprep.mubr.bf16.mxu1 %v5074_v58  ;;  %v2691_v6 = vsel %vm2435_vm8, %v1955_v54, %v2563_v63 }
 0x111   : > { %vm2434_vm11 = vcmp.ge.f32.partialorder %v1950_v3, 0.0  ;;  %v2562_v5 = vmul.f32 0.2, %v1950_v3  ;;  %4777 = vmatprep.mubr.bf16.mxu0 %v5075_v62  ;;  %v2689_v9 = vsel %vm2433_vm9, %v1947_v59, %v2561_v2 }
 0x112   : > { %v2692_v7 = vsel %vm2436_vm10, %v1958_v0, %v2564_v4  ;;  %v4527_v8 = vpop.f32.mrb[12].mxu1 }
 0x113   : > { %v3998_v10 = vpack.c.bf16 %v2692_v7, %v2691_v6  ;;  %v2690_v11 = vsel %vm2434_vm11, %v1950_v3, %v2562_v5  ;;  %v4671_v12 = vpop.f32.mrb[12].mxu0  ;;  %v985_v13 = vpop.f32.mrb[13].mxu1 }
 0x114   : > { %v3993_v15 = vpack.c.bf16 %v2690_v11, %v2689_v9  ;;  %v1971_v16 = vadd.f32 %v4671_v12, %v4527_v8  ;;  %v1962_v17 = vpop.f32.mrb[13].mxu0  ;;  %v4528_v18 = vpop.f32.mrb[14].mxu1 }
 0x115   : > { %4294 = vst [vmem:[%s5313_s28 + $0x28] sm:$0xff] %v3998_v10   ;;  %v1963_v21 = vadd.f32 %v1962_v17, %v985_v13  ;;  %v4672_v22 = vpop.f32.mrb[14].mxu0  ;;  %v988_v23 = vpop.f32.mrb[15].mxu1 }
 0x116   : > { %4293 = vst [vmem:[%s5313_s28 + $0x20] sm:$0xff] %v3993_v15   ;;  %v2567_v25 = vmul.f32 0.2, %v1971_v16  ;;  %v1974_v26 = vadd.f32 %v4672_v22, %v4528_v18  ;;  %v1965_v27 = vpop.f32.mrb[15].mxu0  ;;  %vm2439_vm12 = vcmp.ge.f32.partialorder %v1971_v16, 0.0 }
 0x117   : > { %v2565_v28 = vmul.f32 0.2, %v1963_v21  ;;  %v1966_v29 = vadd.f32 %v1965_v27, %v988_v23  ;;  %4634 = vmatmul.mubr.bf16.gmra.mrb[120].mxu1 %v5076_v14  ;;  %vm2437_vm13 = vcmp.ge.f32.partialorder %v1963_v21, 0.0 }
 0x118   : > { %vm2440_vm14 = vcmp.ge.f32.partialorder %v1974_v26, 0.0  ;;  %v2568_v30 = vmul.f32 0.2, %v1974_v26  ;;  %4778 = vmatmul.mubr.bf16.gmra.mrb[120].mxu0 %v5077_v19  ;;  %4637 = vmatprep.mubr.bf16.mxu1 %v5078_v20  ;;  %v2695_v32 = vsel %vm2439_vm12, %v1971_v16, %v2567_v25 }
 0x119   : > { %vm2438_vm15 = vcmp.ge.f32.partialorder %v1966_v29, 0.0  ;;  %v2566_v31 = vmul.f32 0.2, %v1966_v29  ;;  %4781 = vmatprep.mubr.bf16.mxu0 %v5079_v24  ;;  %v2693_v35 = vsel %vm2437_vm13, %v1963_v21, %v2565_v28 }
 0x11a   : > { %v2696_v33 = vsel %vm2440_vm14, %v1974_v26, %v2568_v30  ;;  %v4531_v34 = vpop.f32.mrb[16].mxu1 }
 0x11b   : > { %v4008_v36 = vpack.c.bf16 %v2696_v33, %v2695_v32  ;;  %v2694_v37 = vsel %vm2438_vm15, %v1966_v29, %v2566_v31  ;;  %v4675_v38 = vpop.f32.mrb[16].mxu0  ;;  %v1001_v39 = vpop.f32.mrb[17].mxu1 }
 0x11c   : > { %v4003_v41 = vpack.c.bf16 %v2694_v37, %v2693_v35  ;;  %v1987_v42 = vadd.f32 %v4675_v38, %v4531_v34  ;;  %v1978_v43 = vpop.f32.mrb[17].mxu0  ;;  %v4532_v44 = vpop.f32.mrb[18].mxu1 }
 0x11d   : > { %4296 = vst [vmem:[%s5313_s28 + $0x38] sm:$0xff] %v4008_v36   ;;  %v1979_v46 = vadd.f32 %v1978_v43, %v1001_v39  ;;  %v4676_v47 = vpop.f32.mrb[18].mxu0  ;;  %v1004_v48 = vpop.f32.mrb[19].mxu1 }
 0x11e   : > { %4295 = vst [vmem:[%s5313_s28 + $0x30] sm:$0xff] %v4003_v41   ;;  %v2571_v49 = vmul.f32 0.2, %v1987_v42  ;;  %v1990_v50 = vadd.f32 %v4676_v47, %v4532_v44  ;;  %v1981_v51 = vpop.f32.mrb[19].mxu0  ;;  %vm2443_vm0 = vcmp.ge.f32.partialorder %v1987_v42, 0.0 }
 0x11f   : > { %v2569_v52 = vmul.f32 0.2, %v1979_v46  ;;  %v1982_v53 = vadd.f32 %v1981_v51, %v1004_v48  ;;  %4638 = vmatmul.mubr.bf16.gmra.mrb[124].mxu1 %v5080_v40  ;;  %vm2441_vm1 = vcmp.ge.f32.partialorder %v1979_v46, 0.0 }
 0x120   : > { %vm2444_vm2 = vcmp.ge.f32.partialorder %v1990_v50, 0.0  ;;  %v2572_v54 = vmul.f32 0.2, %v1990_v50  ;;  %4782 = vmatmul.mubr.bf16.gmra.mrb[124].mxu0 %v5081_v45  ;;  %v2699_v56 = vsel %vm2443_vm0, %v1987_v42, %v2571_v49 }
 0x121   : > { %vm2442_vm3 = vcmp.ge.f32.partialorder %v1982_v53, 0.0  ;;  %v2570_v55 = vmul.f32 0.2, %v1982_v53  ;;  %v2697_v59 = vsel %vm2441_vm1, %v1979_v46, %v2569_v52 }
 0x122   : > { %v2700_v57 = vsel %vm2444_vm2, %v1990_v50, %v2572_v54  ;;  %v4535_v58 = vpop.f32.mrb[20].mxu1 }
 0x123   : > { %v4018_v60 = vpack.c.bf16 %v2700_v57, %v2699_v56  ;;  %v2698_v61 = vsel %vm2442_vm3, %v1982_v53, %v2570_v55  ;;  %v4679_v62 = vpop.f32.mrb[20].mxu0  ;;  %v1017_v63 = vpop.f32.mrb[21].mxu1 }
 0x124   : > { %v4013_v0 = vpack.c.bf16 %v2698_v61, %v2697_v59  ;;  %v2003_v1 = vadd.f32 %v4679_v62, %v4535_v58  ;;  %v1994_v2 = vpop.f32.mrb[21].mxu0  ;;  %v4536_v3 = vpop.f32.mrb[22].mxu1 }
 0x125   : > { %4298 = vst [vmem:[%s5313_s28 + $0x48] sm:$0xff] %v4018_v60   ;;  %v1995_v4 = vadd.f32 %v1994_v2, %v1017_v63  ;;  %v4680_v5 = vpop.f32.mrb[22].mxu0  ;;  %v1020_v6 = vpop.f32.mrb[23].mxu1 }
 0x126   : > { %4297 = vst [vmem:[%s5313_s28 + $0x40] sm:$0xff] %v4013_v0   ;;  %v2575_v7 = vmul.f32 0.2, %v2003_v1  ;;  %v2006_v8 = vadd.f32 %v4680_v5, %v4536_v3  ;;  %v1997_v9 = vpop.f32.mrb[23].mxu0  ;;  %vm2447_vm4 = vcmp.ge.f32.partialorder %v2003_v1, 0.0 }
 0x127   : > { %v2573_v10 = vmul.f32 0.2, %v1995_v4  ;;  %v1998_v11 = vadd.f32 %v1997_v9, %v1020_v6  ;;  %vm2445_vm5 = vcmp.ge.f32.partialorder %v1995_v4, 0.0 }
 0x128   : > { %vm2448_vm6 = vcmp.ge.f32.partialorder %v2006_v8, 0.0  ;;  %v2576_v12 = vmul.f32 0.2, %v2006_v8  ;;  %v2703_v14 = vsel %vm2447_vm4, %v2003_v1, %v2575_v7 }
 0x129   : > { %vm2446_vm7 = vcmp.ge.f32.partialorder %v1998_v11, 0.0  ;;  %v2574_v13 = vmul.f32 0.2, %v1998_v11  ;;  %v2701_v17 = vsel %vm2445_vm5, %v1995_v4, %v2573_v10 }
 0x12a   : > { %v2704_v15 = vsel %vm2448_vm6, %v2006_v8, %v2576_v12  ;;  %v4539_v16 = vpop.f32.mrb[24].mxu1 }
 0x12b   : > { %v4028_v18 = vpack.c.bf16 %v2704_v15, %v2703_v14  ;;  %v2702_v19 = vsel %vm2446_vm7, %v1998_v11, %v2574_v13  ;;  %v4683_v20 = vpop.f32.mrb[24].mxu0  ;;  %v1033_v21 = vpop.f32.mrb[25].mxu1 }
 0x12c   : > { %v4023_v22 = vpack.c.bf16 %v2702_v19, %v2701_v17  ;;  %v2019_v23 = vadd.f32 %v4683_v20, %v4539_v16  ;;  %v2010_v24 = vpop.f32.mrb[25].mxu0  ;;  %v4540_v25 = vpop.f32.mrb[26].mxu1 }
 0x12d   : > { %4300 = vst [vmem:[%s5313_s28 + $0x58] sm:$0xff] %v4028_v18   ;;  %v2011_v26 = vadd.f32 %v2010_v24, %v1033_v21  ;;  %v4684_v27 = vpop.f32.mrb[26].mxu0  ;;  %v1036_v28 = vpop.f32.mrb[27].mxu1 }
 0x12e   : > { %4299 = vst [vmem:[%s5313_s28 + $0x50] sm:$0xff] %v4023_v22   ;;  %v2579_v29 = vmul.f32 0.2, %v2019_v23  ;;  %v2022_v30 = vadd.f32 %v4684_v27, %v4540_v25  ;;  %v2013_v31 = vpop.f32.mrb[27].mxu0  ;;  %vm2451_vm8 = vcmp.ge.f32.partialorder %v2019_v23, 0.0 }
 0x12f   : > { %v2577_v32 = vmul.f32 0.2, %v2011_v26  ;;  %v2014_v33 = vadd.f32 %v2013_v31, %v1036_v28  ;;  %vm2449_vm9 = vcmp.ge.f32.partialorder %v2011_v26, 0.0 }
 0x130   : > { %vm2452_vm10 = vcmp.ge.f32.partialorder %v2022_v30, 0.0  ;;  %v2580_v34 = vmul.f32 0.2, %v2022_v30  ;;  %v2707_v36 = vsel %vm2451_vm8, %v2019_v23, %v2579_v29 }
 0x131   : > { %vm2450_vm11 = vcmp.ge.f32.partialorder %v2014_v33, 0.0  ;;  %v2578_v35 = vmul.f32 0.2, %v2014_v33  ;;  %v2705_v39 = vsel %vm2449_vm9, %v2011_v26, %v2577_v32 }
 0x132   : > { %v2708_v37 = vsel %vm2452_vm10, %v2022_v30, %v2580_v34  ;;  %v4543_v38 = vpop.f32.mrb[28].mxu1 }
 0x133   : > { %v4038_v40 = vpack.c.bf16 %v2708_v37, %v2707_v36  ;;  %v2706_v41 = vsel %vm2450_vm11, %v2014_v33, %v2578_v35  ;;  %v4687_v42 = vpop.f32.mrb[28].mxu0  ;;  %v1049_v43 = vpop.f32.mrb[29].mxu1 }
 0x134   : > { %v4033_v44 = vpack.c.bf16 %v2706_v41, %v2705_v39  ;;  %v2035_v45 = vadd.f32 %v4687_v42, %v4543_v38  ;;  %v2026_v46 = vpop.f32.mrb[29].mxu0  ;;  %v4544_v47 = vpop.f32.mrb[30].mxu1 }
 0x135   : > { %4302 = vst [vmem:[%s5313_s28 + $0x68] sm:$0xff] %v4038_v40   ;;  %v2027_v48 = vadd.f32 %v2026_v46, %v1049_v43  ;;  %v4688_v49 = vpop.f32.mrb[30].mxu0  ;;  %v1052_v50 = vpop.f32.mrb[31].mxu1 }
 0x136   : > { %4301 = vst [vmem:[%s5313_s28 + $0x60] sm:$0xff] %v4033_v44   ;;  %v2583_v51 = vmul.f32 0.2, %v2035_v45  ;;  %v2038_v52 = vadd.f32 %v4688_v49, %v4544_v47  ;;  %v2029_v53 = vpop.f32.mrb[31].mxu0  ;;  %vm2455_vm12 = vcmp.ge.f32.partialorder %v2035_v45, 0.0 }
 0x137   : > { %v2581_v54 = vmul.f32 0.2, %v2027_v48  ;;  %v2030_v55 = vadd.f32 %v2029_v53, %v1052_v50  ;;  %vm2453_vm13 = vcmp.ge.f32.partialorder %v2027_v48, 0.0 }
 0x138   : > { %vm2456_vm14 = vcmp.ge.f32.partialorder %v2038_v52, 0.0  ;;  %v2584_v56 = vmul.f32 0.2, %v2038_v52  ;;  %v2711_v58 = vsel %vm2455_vm12, %v2035_v45, %v2583_v51 }
 0x139   : > { %vm2454_vm15 = vcmp.ge.f32.partialorder %v2030_v55, 0.0  ;;  %v2582_v57 = vmul.f32 0.2, %v2030_v55  ;;  %v2709_v61 = vsel %vm2453_vm13, %v2027_v48, %v2581_v54 }
 0x13a   : > { %v2712_v59 = vsel %vm2456_vm14, %v2038_v52, %v2584_v56  ;;  %v4547_v60 = vpop.f32.mrb[32].mxu1 }
 0x13b   : > { %v4048_v62 = vpack.c.bf16 %v2712_v59, %v2711_v58  ;;  %v2710_v63 = vsel %vm2454_vm15, %v2030_v55, %v2582_v57  ;;  %v4691_v0 = vpop.f32.mrb[32].mxu0  ;;  %v1065_v1 = vpop.f32.mrb[33].mxu1 }
 0x13c   : > { %v4043_v2 = vpack.c.bf16 %v2710_v63, %v2709_v61  ;;  %v2051_v3 = vadd.f32 %v4691_v0, %v4547_v60  ;;  %v2042_v4 = vpop.f32.mrb[33].mxu0  ;;  %v4548_v5 = vpop.f32.mrb[34].mxu1 }
 0x13d   : > { %4304 = vst [vmem:[%s5313_s28 + $0x78] sm:$0xff] %v4048_v62   ;;  %v2043_v6 = vadd.f32 %v2042_v4, %v1065_v1  ;;  %v4692_v7 = vpop.f32.mrb[34].mxu0  ;;  %v1068_v8 = vpop.f32.mrb[35].mxu1 }
 0x13e   : > { %4303 = vst [vmem:[%s5313_s28 + $0x70] sm:$0xff] %v4043_v2   ;;  %v2587_v9 = vmul.f32 0.2, %v2051_v3  ;;  %v2054_v10 = vadd.f32 %v4692_v7, %v4548_v5  ;;  %v2045_v11 = vpop.f32.mrb[35].mxu0  ;;  %vm2459_vm0 = vcmp.ge.f32.partialorder %v2051_v3, 0.0 }
 0x13f   : > { %v2585_v12 = vmul.f32 0.2, %v2043_v6  ;;  %v2046_v13 = vadd.f32 %v2045_v11, %v1068_v8  ;;  %vm2457_vm1 = vcmp.ge.f32.partialorder %v2043_v6, 0.0 }
 0x140   : > { %vm2460_vm2 = vcmp.ge.f32.partialorder %v2054_v10, 0.0  ;;  %v2588_v14 = vmul.f32 0.2, %v2054_v10  ;;  %v2715_v16 = vsel %vm2459_vm0, %v2051_v3, %v2587_v9 }
 0x141   : > { %vm2458_vm3 = vcmp.ge.f32.partialorder %v2046_v13, 0.0  ;;  %v2586_v15 = vmul.f32 0.2, %v2046_v13  ;;  %v2713_v19 = vsel %vm2457_vm1, %v2043_v6, %v2585_v12 }
 0x142   : > { %v2716_v17 = vsel %vm2460_vm2, %v2054_v10, %v2588_v14  ;;  %v4551_v18 = vpop.f32.mrb[36].mxu1 }
 0x143   : > { %v4058_v20 = vpack.c.bf16 %v2716_v17, %v2715_v16  ;;  %v2714_v21 = vsel %vm2458_vm3, %v2046_v13, %v2586_v15  ;;  %v4695_v22 = vpop.f32.mrb[36].mxu0  ;;  %v1081_v23 = vpop.f32.mrb[37].mxu1 }
 0x144   : > { %v4053_v24 = vpack.c.bf16 %v2714_v21, %v2713_v19  ;;  %v2067_v25 = vadd.f32 %v4695_v22, %v4551_v18  ;;  %v2058_v26 = vpop.f32.mrb[37].mxu0  ;;  %v4552_v27 = vpop.f32.mrb[38].mxu1 }
 0x145   : > { %4306 = vst [vmem:[%s5313_s28 + $0x88] sm:$0xff] %v4058_v20   ;;  %v2059_v28 = vadd.f32 %v2058_v26, %v1081_v23  ;;  %v4696_v29 = vpop.f32.mrb[38].mxu0  ;;  %v1084_v30 = vpop.f32.mrb[39].mxu1 }
 0x146   : > { %4305 = vst [vmem:[%s5313_s28 + $0x80] sm:$0xff] %v4053_v24   ;;  %v2591_v31 = vmul.f32 0.2, %v2067_v25  ;;  %v2070_v32 = vadd.f32 %v4696_v29, %v4552_v27  ;;  %v2061_v33 = vpop.f32.mrb[39].mxu0  ;;  %vm2463_vm4 = vcmp.ge.f32.partialorder %v2067_v25, 0.0 }
 0x147   : > { %v2589_v34 = vmul.f32 0.2, %v2059_v28  ;;  %v2062_v35 = vadd.f32 %v2061_v33, %v1084_v30  ;;  %vm2461_vm5 = vcmp.ge.f32.partialorder %v2059_v28, 0.0 }
 0x148   : > { %vm2464_vm6 = vcmp.ge.f32.partialorder %v2070_v32, 0.0  ;;  %v2592_v36 = vmul.f32 0.2, %v2070_v32  ;;  %v2719_v38 = vsel %vm2463_vm4, %v2067_v25, %v2591_v31 }
 0x149   : > { %vm2462_vm7 = vcmp.ge.f32.partialorder %v2062_v35, 0.0  ;;  %v2590_v37 = vmul.f32 0.2, %v2062_v35  ;;  %v2717_v41 = vsel %vm2461_vm5, %v2059_v28, %v2589_v34 }
 0x14a   : > { %v2720_v39 = vsel %vm2464_vm6, %v2070_v32, %v2592_v36  ;;  %v4555_v40 = vpop.f32.mrb[40].mxu1 }
 0x14b   : > { %v4068_v42 = vpack.c.bf16 %v2720_v39, %v2719_v38  ;;  %v2718_v43 = vsel %vm2462_vm7, %v2062_v35, %v2590_v37  ;;  %v4699_v44 = vpop.f32.mrb[40].mxu0  ;;  %v1097_v45 = vpop.f32.mrb[41].mxu1 }
 0x14c   : > { %v4063_v46 = vpack.c.bf16 %v2718_v43, %v2717_v41  ;;  %v2083_v47 = vadd.f32 %v4699_v44, %v4555_v40  ;;  %v2074_v48 = vpop.f32.mrb[41].mxu0  ;;  %v4556_v49 = vpop.f32.mrb[42].mxu1 }
 0x14d   : > { %4308 = vst [vmem:[%s5313_s28 + $0x98] sm:$0xff] %v4068_v42   ;;  %v2075_v50 = vadd.f32 %v2074_v48, %v1097_v45  ;;  %v4700_v51 = vpop.f32.mrb[42].mxu0  ;;  %v1100_v52 = vpop.f32.mrb[43].mxu1 }
 0x14e   : > { %4307 = vst [vmem:[%s5313_s28 + $0x90] sm:$0xff] %v4063_v46   ;;  %v2595_v53 = vmul.f32 0.2, %v2083_v47  ;;  %v2086_v54 = vadd.f32 %v4700_v51, %v4556_v49  ;;  %v2077_v55 = vpop.f32.mrb[43].mxu0  ;;  %vm2467_vm8 = vcmp.ge.f32.partialorder %v2083_v47, 0.0 }
 0x14f   : > { %v2593_v56 = vmul.f32 0.2, %v2075_v50  ;;  %v2078_v57 = vadd.f32 %v2077_v55, %v1100_v52  ;;  %vm2465_vm9 = vcmp.ge.f32.partialorder %v2075_v50, 0.0 }
 0x150   : > { %vm2468_vm10 = vcmp.ge.f32.partialorder %v2086_v54, 0.0  ;;  %v2596_v58 = vmul.f32 0.2, %v2086_v54  ;;  %v2723_v60 = vsel %vm2467_vm8, %v2083_v47, %v2595_v53 }
 0x151   : > { %vm2466_vm11 = vcmp.ge.f32.partialorder %v2078_v57, 0.0  ;;  %v2594_v59 = vmul.f32 0.2, %v2078_v57  ;;  %v2721_v63 = vsel %vm2465_vm9, %v2075_v50, %v2593_v56 }
 0x152   : > { %v2724_v61 = vsel %vm2468_vm10, %v2086_v54, %v2596_v58  ;;  %v4559_v62 = vpop.f32.mrb[44].mxu1 }
 0x153   : > { %v4078_v0 = vpack.c.bf16 %v2724_v61, %v2723_v60  ;;  %v2722_v1 = vsel %vm2466_vm11, %v2078_v57, %v2594_v59  ;;  %v4703_v2 = vpop.f32.mrb[44].mxu0  ;;  %v1113_v3 = vpop.f32.mrb[45].mxu1 }
 0x154   : > { %v4073_v4 = vpack.c.bf16 %v2722_v1, %v2721_v63  ;;  %v2099_v5 = vadd.f32 %v4703_v2, %v4559_v62  ;;  %v2090_v6 = vpop.f32.mrb[45].mxu0  ;;  %v4560_v7 = vpop.f32.mrb[46].mxu1 }
 0x155   : > { %4310 = vst [vmem:[%s5313_s28 + $0xa8] sm:$0xff] %v4078_v0   ;;  %v2091_v8 = vadd.f32 %v2090_v6, %v1113_v3  ;;  %v4704_v9 = vpop.f32.mrb[46].mxu0  ;;  %v1116_v10 = vpop.f32.mrb[47].mxu1 }
 0x156   : > { %4309 = vst [vmem:[%s5313_s28 + $0xa0] sm:$0xff] %v4073_v4   ;;  %v2599_v11 = vmul.f32 0.2, %v2099_v5  ;;  %v2102_v12 = vadd.f32 %v4704_v9, %v4560_v7  ;;  %v2093_v13 = vpop.f32.mrb[47].mxu0  ;;  %vm2471_vm12 = vcmp.ge.f32.partialorder %v2099_v5, 0.0 }
 0x157   : > { %v2597_v14 = vmul.f32 0.2, %v2091_v8  ;;  %v2094_v15 = vadd.f32 %v2093_v13, %v1116_v10  ;;  %vm2469_vm13 = vcmp.ge.f32.partialorder %v2091_v8, 0.0 }
 0x158   : > { %vm2472_vm14 = vcmp.ge.f32.partialorder %v2102_v12, 0.0  ;;  %v2600_v16 = vmul.f32 0.2, %v2102_v12  ;;  %v2727_v18 = vsel %vm2471_vm12, %v2099_v5, %v2599_v11 }
 0x159   : > { %vm2470_vm15 = vcmp.ge.f32.partialorder %v2094_v15, 0.0  ;;  %v2598_v17 = vmul.f32 0.2, %v2094_v15  ;;  %v2725_v21 = vsel %vm2469_vm13, %v2091_v8, %v2597_v14 }
 0x15a   : > { %v2728_v19 = vsel %vm2472_vm14, %v2102_v12, %v2600_v16  ;;  %v4563_v20 = vpop.f32.mrb[48].mxu1 }
 0x15b   : > { %v4088_v22 = vpack.c.bf16 %v2728_v19, %v2727_v18  ;;  %v2726_v23 = vsel %vm2470_vm15, %v2094_v15, %v2598_v17  ;;  %v4707_v24 = vpop.f32.mrb[48].mxu0  ;;  %v1129_v25 = vpop.f32.mrb[49].mxu1 }
 0x15c   : > { %v4083_v26 = vpack.c.bf16 %v2726_v23, %v2725_v21  ;;  %v2115_v27 = vadd.f32 %v4707_v24, %v4563_v20  ;;  %v2106_v28 = vpop.f32.mrb[49].mxu0  ;;  %v4564_v29 = vpop.f32.mrb[50].mxu1 }
 0x15d   : > { %4312 = vst [vmem:[%s5313_s28 + $0xb8] sm:$0xff] %v4088_v22   ;;  %v2107_v30 = vadd.f32 %v2106_v28, %v1129_v25  ;;  %v4708_v31 = vpop.f32.mrb[50].mxu0  ;;  %v1132_v32 = vpop.f32.mrb[51].mxu1 }
 0x15e   : > { %4311 = vst [vmem:[%s5313_s28 + $0xb0] sm:$0xff] %v4083_v26   ;;  %v2603_v33 = vmul.f32 0.2, %v2115_v27  ;;  %v2118_v34 = vadd.f32 %v4708_v31, %v4564_v29  ;;  %v2109_v35 = vpop.f32.mrb[51].mxu0  ;;  %vm2475_vm0 = vcmp.ge.f32.partialorder %v2115_v27, 0.0 }
 0x15f   : > { %v2601_v36 = vmul.f32 0.2, %v2107_v30  ;;  %v2110_v37 = vadd.f32 %v2109_v35, %v1132_v32  ;;  %vm2473_vm1 = vcmp.ge.f32.partialorder %v2107_v30, 0.0 }
 0x160   : > { %vm2476_vm2 = vcmp.ge.f32.partialorder %v2118_v34, 0.0  ;;  %v2604_v38 = vmul.f32 0.2, %v2118_v34  ;;  %v2731_v40 = vsel %vm2475_vm0, %v2115_v27, %v2603_v33 }
 0x161   : > { %vm2474_vm3 = vcmp.ge.f32.partialorder %v2110_v37, 0.0  ;;  %v2602_v39 = vmul.f32 0.2, %v2110_v37  ;;  %v2729_v43 = vsel %vm2473_vm1, %v2107_v30, %v2601_v36 }
 0x162   : > { %v2732_v41 = vsel %vm2476_vm2, %v2118_v34, %v2604_v38  ;;  %v4567_v42 = vpop.f32.mrb[52].mxu1 }
 0x163   : > { %v4098_v44 = vpack.c.bf16 %v2732_v41, %v2731_v40  ;;  %v2730_v45 = vsel %vm2474_vm3, %v2110_v37, %v2602_v39  ;;  %v4711_v46 = vpop.f32.mrb[52].mxu0  ;;  %v1145_v47 = vpop.f32.mrb[53].mxu1 }
 0x164   : > { %v4093_v48 = vpack.c.bf16 %v2730_v45, %v2729_v43  ;;  %v2131_v49 = vadd.f32 %v4711_v46, %v4567_v42  ;;  %v2122_v50 = vpop.f32.mrb[53].mxu0  ;;  %v4568_v51 = vpop.f32.mrb[54].mxu1 }
 0x165   : > { %4314 = vst [vmem:[%s5313_s28 + $0xc8] sm:$0xff] %v4098_v44   ;;  %v2123_v52 = vadd.f32 %v2122_v50, %v1145_v47  ;;  %v4712_v53 = vpop.f32.mrb[54].mxu0  ;;  %v1148_v54 = vpop.f32.mrb[55].mxu1 }
 0x166   : > { %4313 = vst [vmem:[%s5313_s28 + $0xc0] sm:$0xff] %v4093_v48   ;;  %v2607_v55 = vmul.f32 0.2, %v2131_v49  ;;  %v2134_v56 = vadd.f32 %v4712_v53, %v4568_v51  ;;  %v2125_v57 = vpop.f32.mrb[55].mxu0  ;;  %vm2479_vm4 = vcmp.ge.f32.partialorder %v2131_v49, 0.0 }
 0x167   : > { %v2605_v58 = vmul.f32 0.2, %v2123_v52  ;;  %v2126_v59 = vadd.f32 %v2125_v57, %v1148_v54  ;;  %vm2477_vm5 = vcmp.ge.f32.partialorder %v2123_v52, 0.0 }
 0x168   : > { %vm2480_vm6 = vcmp.ge.f32.partialorder %v2134_v56, 0.0  ;;  %v2608_v60 = vmul.f32 0.2, %v2134_v56  ;;  %v2735_v62 = vsel %vm2479_vm4, %v2131_v49, %v2607_v55 }
 0x169   : > { %vm2478_vm7 = vcmp.ge.f32.partialorder %v2126_v59, 0.0  ;;  %v2606_v61 = vmul.f32 0.2, %v2126_v59  ;;  %v2733_v1 = vsel %vm2477_vm5, %v2123_v52, %v2605_v58 }
 0x16a   : > { %v2736_v63 = vsel %vm2480_vm6, %v2134_v56, %v2608_v60  ;;  %v4571_v0 = vpop.f32.mrb[56].mxu1 }
 0x16b   : > { %v4108_v2 = vpack.c.bf16 %v2736_v63, %v2735_v62  ;;  %v2734_v3 = vsel %vm2478_vm7, %v2126_v59, %v2606_v61  ;;  %v4715_v4 = vpop.f32.mrb[56].mxu0  ;;  %v1161_v5 = vpop.f32.mrb[57].mxu1 }
 0x16c   : > { %v4103_v6 = vpack.c.bf16 %v2734_v3, %v2733_v1  ;;  %v2147_v7 = vadd.f32 %v4715_v4, %v4571_v0  ;;  %v2138_v8 = vpop.f32.mrb[57].mxu0  ;;  %v4572_v9 = vpop.f32.mrb[58].mxu1 }
 0x16d   : > { %4316 = vst [vmem:[%s5313_s28 + $0xd8] sm:$0xff] %v4108_v2   ;;  %v2139_v10 = vadd.f32 %v2138_v8, %v1161_v5  ;;  %v4716_v11 = vpop.f32.mrb[58].mxu0  ;;  %v1164_v12 = vpop.f32.mrb[59].mxu1 }
 0x16e   : > { %4315 = vst [vmem:[%s5313_s28 + $0xd0] sm:$0xff] %v4103_v6   ;;  %v2611_v13 = vmul.f32 0.2, %v2147_v7  ;;  %v2150_v14 = vadd.f32 %v4716_v11, %v4572_v9  ;;  %v2141_v15 = vpop.f32.mrb[59].mxu0  ;;  %vm2483_vm8 = vcmp.ge.f32.partialorder %v2147_v7, 0.0 }
 0x16f   : > { %v2609_v16 = vmul.f32 0.2, %v2139_v10  ;;  %v2142_v17 = vadd.f32 %v2141_v15, %v1164_v12  ;;  %vm2481_vm9 = vcmp.ge.f32.partialorder %v2139_v10, 0.0 }
 0x170   : > { %vm2484_vm10 = vcmp.ge.f32.partialorder %v2150_v14, 0.0  ;;  %v2612_v18 = vmul.f32 0.2, %v2150_v14  ;;  %v2739_v20 = vsel %vm2483_vm8, %v2147_v7, %v2611_v13 }
 0x171   : > { %vm2482_vm11 = vcmp.ge.f32.partialorder %v2142_v17, 0.0  ;;  %v2610_v19 = vmul.f32 0.2, %v2142_v17  ;;  %v2737_v23 = vsel %vm2481_vm9, %v2139_v10, %v2609_v16 }
 0x172   : > { %v2740_v21 = vsel %vm2484_vm10, %v2150_v14, %v2612_v18  ;;  %v4575_v22 = vpop.f32.mrb[60].mxu1 }
 0x173   : > { %v4118_v24 = vpack.c.bf16 %v2740_v21, %v2739_v20  ;;  %v2738_v25 = vsel %vm2482_vm11, %v2142_v17, %v2610_v19  ;;  %v4719_v26 = vpop.f32.mrb[60].mxu0  ;;  %v1177_v27 = vpop.f32.mrb[61].mxu1 }
 0x174   : > { %v4113_v28 = vpack.c.bf16 %v2738_v25, %v2737_v23  ;;  %v2163_v29 = vadd.f32 %v4719_v26, %v4575_v22  ;;  %v2154_v30 = vpop.f32.mrb[61].mxu0  ;;  %v4576_v31 = vpop.f32.mrb[62].mxu1 }
 0x175   : > { %4318 = vst [vmem:[%s5313_s28 + $0xe8] sm:$0xff] %v4118_v24   ;;  %v2155_v32 = vadd.f32 %v2154_v30, %v1177_v27  ;;  %v4720_v33 = vpop.f32.mrb[62].mxu0  ;;  %v1180_v34 = vpop.f32.mrb[63].mxu1 }
 0x176   : > { %4317 = vst [vmem:[%s5313_s28 + $0xe0] sm:$0xff] %v4113_v28   ;;  %v2615_v35 = vmul.f32 0.2, %v2163_v29  ;;  %v2166_v36 = vadd.f32 %v4720_v33, %v4576_v31  ;;  %v2157_v37 = vpop.f32.mrb[63].mxu0  ;;  %vm2487_vm12 = vcmp.ge.f32.partialorder %v2163_v29, 0.0 }
 0x177   : > { %v2613_v38 = vmul.f32 0.2, %v2155_v32  ;;  %v2158_v39 = vadd.f32 %v2157_v37, %v1180_v34  ;;  %vm2485_vm13 = vcmp.ge.f32.partialorder %v2155_v32, 0.0 }
 0x178   : > { %vm2488_vm14 = vcmp.ge.f32.partialorder %v2166_v36, 0.0  ;;  %v2616_v40 = vmul.f32 0.2, %v2166_v36  ;;  %v2743_v42 = vsel %vm2487_vm12, %v2163_v29, %v2615_v35 }
 0x179   : > { %vm2486_vm15 = vcmp.ge.f32.partialorder %v2158_v39, 0.0  ;;  %v2614_v41 = vmul.f32 0.2, %v2158_v39  ;;  %v2741_v45 = vsel %vm2485_vm13, %v2155_v32, %v2613_v38 }
 0x17a   : > { %v2744_v43 = vsel %vm2488_vm14, %v2166_v36, %v2616_v40  ;;  %v4579_v44 = vpop.f32.mrb[64].mxu1 }
 0x17b   : > { %v4128_v46 = vpack.c.bf16 %v2744_v43, %v2743_v42  ;;  %v2742_v47 = vsel %vm2486_vm15, %v2158_v39, %v2614_v41  ;;  %v4723_v48 = vpop.f32.mrb[64].mxu0  ;;  %v1193_v49 = vpop.f32.mrb[65].mxu1 }
 0x17c   : > { %v4123_v50 = vpack.c.bf16 %v2742_v47, %v2741_v45  ;;  %v2179_v51 = vadd.f32 %v4723_v48, %v4579_v44  ;;  %v2170_v52 = vpop.f32.mrb[65].mxu0  ;;  %v4580_v53 = vpop.f32.mrb[66].mxu1 }
 0x17d   : > { %4320 = vst [vmem:[%s5313_s28 + $0xf8] sm:$0xff] %v4128_v46   ;;  %v2171_v54 = vadd.f32 %v2170_v52, %v1193_v49  ;;  %v4724_v55 = vpop.f32.mrb[66].mxu0  ;;  %v1196_v56 = vpop.f32.mrb[67].mxu1 }
 0x17e   : > { %4319 = vst [vmem:[%s5313_s28 + $0xf0] sm:$0xff] %v4123_v50   ;;  %v2619_v57 = vmul.f32 0.2, %v2179_v51  ;;  %v2182_v58 = vadd.f32 %v4724_v55, %v4580_v53  ;;  %v2173_v59 = vpop.f32.mrb[67].mxu0  ;;  %vm2491_vm0 = vcmp.ge.f32.partialorder %v2179_v51, 0.0 }
 0x17f   : > { %v2617_v60 = vmul.f32 0.2, %v2171_v54  ;;  %v2174_v61 = vadd.f32 %v2173_v59, %v1196_v56  ;;  %vm2489_vm1 = vcmp.ge.f32.partialorder %v2171_v54, 0.0 }
 0x180   : > { %vm2492_vm2 = vcmp.ge.f32.partialorder %v2182_v58, 0.0  ;;  %v2620_v62 = vmul.f32 0.2, %v2182_v58  ;;  %v2747_v0 = vsel %vm2491_vm0, %v2179_v51, %v2619_v57 }
 0x181   : > { %vm2490_vm3 = vcmp.ge.f32.partialorder %v2174_v61, 0.0  ;;  %v2618_v63 = vmul.f32 0.2, %v2174_v61  ;;  %v2745_v3 = vsel %vm2489_vm1, %v2171_v54, %v2617_v60 }
 0x182   : > { %v2748_v1 = vsel %vm2492_vm2, %v2182_v58, %v2620_v62  ;;  %v4583_v2 = vpop.f32.mrb[68].mxu1 }
 0x183   : > { %v4138_v4 = vpack.c.bf16 %v2748_v1, %v2747_v0  ;;  %v2746_v5 = vsel %vm2490_vm3, %v2174_v61, %v2618_v63  ;;  %v4727_v6 = vpop.f32.mrb[68].mxu0  ;;  %v1209_v7 = vpop.f32.mrb[69].mxu1 }
 0x184   : > { %v4133_v8 = vpack.c.bf16 %v2746_v5, %v2745_v3  ;;  %v2195_v9 = vadd.f32 %v4727_v6, %v4583_v2  ;;  %v2186_v10 = vpop.f32.mrb[69].mxu0  ;;  %v4584_v11 = vpop.f32.mrb[70].mxu1 }
 0x185   : > { %4322 = vst [vmem:[%s5313_s28 + $0x108] sm:$0xff] %v4138_v4   ;;  %v2187_v12 = vadd.f32 %v2186_v10, %v1209_v7  ;;  %v4728_v13 = vpop.f32.mrb[70].mxu0  ;;  %v1212_v14 = vpop.f32.mrb[71].mxu1 }
 0x186   : > { %4321 = vst [vmem:[%s5313_s28 + $0x100] sm:$0xff] %v4133_v8   ;;  %v2623_v15 = vmul.f32 0.2, %v2195_v9  ;;  %v2198_v16 = vadd.f32 %v4728_v13, %v4584_v11  ;;  %v2189_v17 = vpop.f32.mrb[71].mxu0  ;;  %vm2495_vm4 = vcmp.ge.f32.partialorder %v2195_v9, 0.0 }
 0x187   : > { %v2621_v18 = vmul.f32 0.2, %v2187_v12  ;;  %v2190_v19 = vadd.f32 %v2189_v17, %v1212_v14  ;;  %vm2493_vm5 = vcmp.ge.f32.partialorder %v2187_v12, 0.0 }
 0x188   : > { %vm2496_vm6 = vcmp.ge.f32.partialorder %v2198_v16, 0.0  ;;  %v2624_v20 = vmul.f32 0.2, %v2198_v16  ;;  %v2751_v22 = vsel %vm2495_vm4, %v2195_v9, %v2623_v15 }
 0x189   : > { %vm2494_vm7 = vcmp.ge.f32.partialorder %v2190_v19, 0.0  ;;  %v2622_v21 = vmul.f32 0.2, %v2190_v19  ;;  %v2749_v25 = vsel %vm2493_vm5, %v2187_v12, %v2621_v18 }
 0x18a   : > { %v2752_v23 = vsel %vm2496_vm6, %v2198_v16, %v2624_v20  ;;  %v4587_v24 = vpop.f32.mrb[72].mxu1 }
 0x18b   : > { %v4148_v26 = vpack.c.bf16 %v2752_v23, %v2751_v22  ;;  %v2750_v27 = vsel %vm2494_vm7, %v2190_v19, %v2622_v21  ;;  %v4731_v28 = vpop.f32.mrb[72].mxu0  ;;  %v1225_v29 = vpop.f32.mrb[73].mxu1 }
 0x18c   : > { %v4143_v30 = vpack.c.bf16 %v2750_v27, %v2749_v25  ;;  %v2211_v31 = vadd.f32 %v4731_v28, %v4587_v24  ;;  %v2202_v32 = vpop.f32.mrb[73].mxu0  ;;  %v4588_v33 = vpop.f32.mrb[74].mxu1 }
 0x18d   : > { %4324 = vst [vmem:[%s5313_s28 + $0x118] sm:$0xff] %v4148_v26   ;;  %v2203_v34 = vadd.f32 %v2202_v32, %v1225_v29  ;;  %v4732_v35 = vpop.f32.mrb[74].mxu0  ;;  %v1228_v36 = vpop.f32.mrb[75].mxu1 }
 0x18e   : > { %4323 = vst [vmem:[%s5313_s28 + $0x110] sm:$0xff] %v4143_v30   ;;  %v2627_v37 = vmul.f32 0.2, %v2211_v31  ;;  %v2214_v38 = vadd.f32 %v4732_v35, %v4588_v33  ;;  %v2205_v39 = vpop.f32.mrb[75].mxu0  ;;  %vm2499_vm8 = vcmp.ge.f32.partialorder %v2211_v31, 0.0 }
 0x18f   : > { %v2625_v40 = vmul.f32 0.2, %v2203_v34  ;;  %v2206_v41 = vadd.f32 %v2205_v39, %v1228_v36  ;;  %vm2497_vm9 = vcmp.ge.f32.partialorder %v2203_v34, 0.0 }
 0x190   : > { %vm2500_vm10 = vcmp.ge.f32.partialorder %v2214_v38, 0.0  ;;  %v2628_v42 = vmul.f32 0.2, %v2214_v38  ;;  %v2755_v44 = vsel %vm2499_vm8, %v2211_v31, %v2627_v37 }
 0x191   : > { %vm2498_vm11 = vcmp.ge.f32.partialorder %v2206_v41, 0.0  ;;  %v2626_v43 = vmul.f32 0.2, %v2206_v41  ;;  %v2753_v47 = vsel %vm2497_vm9, %v2203_v34, %v2625_v40 }
 0x192   : > { %v2756_v45 = vsel %vm2500_vm10, %v2214_v38, %v2628_v42  ;;  %v4591_v46 = vpop.f32.mrb[76].mxu1 }
 0x193   : > { %v4158_v48 = vpack.c.bf16 %v2756_v45, %v2755_v44  ;;  %v2754_v49 = vsel %vm2498_vm11, %v2206_v41, %v2626_v43  ;;  %v4735_v50 = vpop.f32.mrb[76].mxu0  ;;  %v1241_v51 = vpop.f32.mrb[77].mxu1 }
 0x194   : > { %v4153_v52 = vpack.c.bf16 %v2754_v49, %v2753_v47  ;;  %v2227_v53 = vadd.f32 %v4735_v50, %v4591_v46  ;;  %v2218_v54 = vpop.f32.mrb[77].mxu0  ;;  %v4592_v55 = vpop.f32.mrb[78].mxu1 }
 0x195   : > { %4326 = vst [vmem:[%s5313_s28 + $0x128] sm:$0xff] %v4158_v48   ;;  %v2219_v56 = vadd.f32 %v2218_v54, %v1241_v51  ;;  %v4736_v57 = vpop.f32.mrb[78].mxu0  ;;  %v1244_v58 = vpop.f32.mrb[79].mxu1 }
 0x196   : > { %4325 = vst [vmem:[%s5313_s28 + $0x120] sm:$0xff] %v4153_v52   ;;  %v2631_v59 = vmul.f32 0.2, %v2227_v53  ;;  %v2230_v60 = vadd.f32 %v4736_v57, %v4592_v55  ;;  %v2221_v61 = vpop.f32.mrb[79].mxu0  ;;  %vm2503_vm12 = vcmp.ge.f32.partialorder %v2227_v53, 0.0 }
 0x197   : > { %v2629_v62 = vmul.f32 0.2, %v2219_v56  ;;  %v2222_v63 = vadd.f32 %v2221_v61, %v1244_v58  ;;  %vm2501_vm13 = vcmp.ge.f32.partialorder %v2219_v56, 0.0 }
 0x198   : > { %vm2504_vm14 = vcmp.ge.f32.partialorder %v2230_v60, 0.0  ;;  %v2632_v0 = vmul.f32 0.2, %v2230_v60  ;;  %v2759_v2 = vsel %vm2503_vm12, %v2227_v53, %v2631_v59 }
 0x199   : > { %vm2502_vm15 = vcmp.ge.f32.partialorder %v2222_v63, 0.0  ;;  %v2630_v1 = vmul.f32 0.2, %v2222_v63  ;;  %v2757_v5 = vsel %vm2501_vm13, %v2219_v56, %v2629_v62 }
 0x19a   : > { %v2760_v3 = vsel %vm2504_vm14, %v2230_v60, %v2632_v0  ;;  %v4595_v4 = vpop.f32.mrb[80].mxu1 }
 0x19b   : > { %v4168_v6 = vpack.c.bf16 %v2760_v3, %v2759_v2  ;;  %v2758_v7 = vsel %vm2502_vm15, %v2222_v63, %v2630_v1  ;;  %v4739_v8 = vpop.f32.mrb[80].mxu0  ;;  %v1257_v9 = vpop.f32.mrb[81].mxu1 }
 0x19c   : > { %v4163_v10 = vpack.c.bf16 %v2758_v7, %v2757_v5  ;;  %v2243_v11 = vadd.f32 %v4739_v8, %v4595_v4  ;;  %v2234_v12 = vpop.f32.mrb[81].mxu0  ;;  %v4596_v13 = vpop.f32.mrb[82].mxu1 }
 0x19d   : > { %4328 = vst [vmem:[%s5313_s28 + $0x138] sm:$0xff] %v4168_v6   ;;  %v2235_v14 = vadd.f32 %v2234_v12, %v1257_v9  ;;  %v4740_v15 = vpop.f32.mrb[82].mxu0  ;;  %v1260_v16 = vpop.f32.mrb[83].mxu1 }
 0x19e   : > { %4327 = vst [vmem:[%s5313_s28 + $0x130] sm:$0xff] %v4163_v10   ;;  %v2635_v17 = vmul.f32 0.2, %v2243_v11  ;;  %v2246_v18 = vadd.f32 %v4740_v15, %v4596_v13  ;;  %v2237_v19 = vpop.f32.mrb[83].mxu0  ;;  %vm2507_vm0 = vcmp.ge.f32.partialorder %v2243_v11, 0.0 }
 0x19f   : > { %v2633_v20 = vmul.f32 0.2, %v2235_v14  ;;  %v2238_v21 = vadd.f32 %v2237_v19, %v1260_v16  ;;  %vm2505_vm1 = vcmp.ge.f32.partialorder %v2235_v14, 0.0 }
 0x1a0   : > { %vm2508_vm2 = vcmp.ge.f32.partialorder %v2246_v18, 0.0  ;;  %v2636_v22 = vmul.f32 0.2, %v2246_v18  ;;  %v2763_v24 = vsel %vm2507_vm0, %v2243_v11, %v2635_v17 }
 0x1a1   : > { %vm2506_vm3 = vcmp.ge.f32.partialorder %v2238_v21, 0.0  ;;  %v2634_v23 = vmul.f32 0.2, %v2238_v21  ;;  %v2761_v27 = vsel %vm2505_vm1, %v2235_v14, %v2633_v20 }
 0x1a2   : > { %v2764_v25 = vsel %vm2508_vm2, %v2246_v18, %v2636_v22  ;;  %v4599_v26 = vpop.f32.mrb[84].mxu1 }
 0x1a3   : > { %v4178_v28 = vpack.c.bf16 %v2764_v25, %v2763_v24  ;;  %v2762_v29 = vsel %vm2506_vm3, %v2238_v21, %v2634_v23  ;;  %v4743_v30 = vpop.f32.mrb[84].mxu0  ;;  %v1273_v31 = vpop.f32.mrb[85].mxu1 }
 0x1a4   : > { %v4173_v32 = vpack.c.bf16 %v2762_v29, %v2761_v27  ;;  %v2259_v33 = vadd.f32 %v4743_v30, %v4599_v26  ;;  %v2250_v34 = vpop.f32.mrb[85].mxu0  ;;  %v4600_v35 = vpop.f32.mrb[86].mxu1 }
 0x1a5   : > { %4330 = vst [vmem:[%s5313_s28 + $0x148] sm:$0xff] %v4178_v28   ;;  %v2251_v36 = vadd.f32 %v2250_v34, %v1273_v31  ;;  %v4744_v37 = vpop.f32.mrb[86].mxu0  ;;  %v1276_v38 = vpop.f32.mrb[87].mxu1 }
 0x1a6   : > { %4329 = vst [vmem:[%s5313_s28 + $0x140] sm:$0xff] %v4173_v32   ;;  %v2639_v39 = vmul.f32 0.2, %v2259_v33  ;;  %v2262_v40 = vadd.f32 %v4744_v37, %v4600_v35  ;;  %v2253_v41 = vpop.f32.mrb[87].mxu0  ;;  %vm2511_vm4 = vcmp.ge.f32.partialorder %v2259_v33, 0.0 }
 0x1a7   : > { %v2637_v42 = vmul.f32 0.2, %v2251_v36  ;;  %v2254_v43 = vadd.f32 %v2253_v41, %v1276_v38  ;;  %vm2509_vm5 = vcmp.ge.f32.partialorder %v2251_v36, 0.0 }
 0x1a8   : > { %vm2512_vm6 = vcmp.ge.f32.partialorder %v2262_v40, 0.0  ;;  %v2640_v44 = vmul.f32 0.2, %v2262_v40  ;;  %v2767_v46 = vsel %vm2511_vm4, %v2259_v33, %v2639_v39 }
 0x1a9   : > { %vm2510_vm7 = vcmp.ge.f32.partialorder %v2254_v43, 0.0  ;;  %v2638_v45 = vmul.f32 0.2, %v2254_v43  ;;  %v2765_v49 = vsel %vm2509_vm5, %v2251_v36, %v2637_v42 }
 0x1aa   : > { %v2768_v47 = vsel %vm2512_vm6, %v2262_v40, %v2640_v44  ;;  %v4603_v48 = vpop.f32.mrb[88].mxu1 }
 0x1ab   : > { %v4188_v50 = vpack.c.bf16 %v2768_v47, %v2767_v46  ;;  %v2766_v51 = vsel %vm2510_vm7, %v2254_v43, %v2638_v45  ;;  %v4747_v52 = vpop.f32.mrb[88].mxu0  ;;  %v1289_v53 = vpop.f32.mrb[89].mxu1 }
 0x1ac   : > { %v4183_v54 = vpack.c.bf16 %v2766_v51, %v2765_v49  ;;  %v2275_v55 = vadd.f32 %v4747_v52, %v4603_v48  ;;  %v2266_v56 = vpop.f32.mrb[89].mxu0  ;;  %v4604_v57 = vpop.f32.mrb[90].mxu1 }
 0x1ad   : > { %4332 = vst [vmem:[%s5313_s28 + $0x158] sm:$0xff] %v4188_v50   ;;  %v2267_v58 = vadd.f32 %v2266_v56, %v1289_v53  ;;  %v4748_v59 = vpop.f32.mrb[90].mxu0  ;;  %v1292_v60 = vpop.f32.mrb[91].mxu1 }
 0x1ae   : > { %4331 = vst [vmem:[%s5313_s28 + $0x150] sm:$0xff] %v4183_v54   ;;  %v2643_v61 = vmul.f32 0.2, %v2275_v55  ;;  %v2278_v62 = vadd.f32 %v4748_v59, %v4604_v57  ;;  %v2269_v63 = vpop.f32.mrb[91].mxu0  ;;  %vm2515_vm8 = vcmp.ge.f32.partialorder %v2275_v55, 0.0 }
 0x1af   : > { %v2641_v0 = vmul.f32 0.2, %v2267_v58  ;;  %v2270_v1 = vadd.f32 %v2269_v63, %v1292_v60  ;;  %vm2513_vm9 = vcmp.ge.f32.partialorder %v2267_v58, 0.0 }
 0x1b0   : > { %vm2516_vm10 = vcmp.ge.f32.partialorder %v2278_v62, 0.0  ;;  %v2644_v2 = vmul.f32 0.2, %v2278_v62  ;;  %v2771_v4 = vsel %vm2515_vm8, %v2275_v55, %v2643_v61 }
 0x1b1   : > { %vm2514_vm11 = vcmp.ge.f32.partialorder %v2270_v1, 0.0  ;;  %v2642_v3 = vmul.f32 0.2, %v2270_v1  ;;  %v2769_v7 = vsel %vm2513_vm9, %v2267_v58, %v2641_v0 }
 0x1b2   : > { %v2772_v5 = vsel %vm2516_vm10, %v2278_v62, %v2644_v2  ;;  %v4607_v6 = vpop.f32.mrb[92].mxu1 }
 0x1b3   : > { %v4198_v8 = vpack.c.bf16 %v2772_v5, %v2771_v4  ;;  %v2770_v9 = vsel %vm2514_vm11, %v2270_v1, %v2642_v3  ;;  %v4751_v10 = vpop.f32.mrb[92].mxu0  ;;  %v1305_v11 = vpop.f32.mrb[93].mxu1 }
 0x1b4   : > { %v4193_v12 = vpack.c.bf16 %v2770_v9, %v2769_v7  ;;  %v2291_v13 = vadd.f32 %v4751_v10, %v4607_v6  ;;  %v2282_v14 = vpop.f32.mrb[93].mxu0  ;;  %v4608_v15 = vpop.f32.mrb[94].mxu1 }
 0x1b5   : > { %4334 = vst [vmem:[%s5313_s28 + $0x168] sm:$0xff] %v4198_v8   ;;  %v2283_v16 = vadd.f32 %v2282_v14, %v1305_v11  ;;  %v4752_v17 = vpop.f32.mrb[94].mxu0  ;;  %v1308_v18 = vpop.f32.mrb[95].mxu1 }
 0x1b6   : > { %4333 = vst [vmem:[%s5313_s28 + $0x160] sm:$0xff] %v4193_v12   ;;  %v2647_v19 = vmul.f32 0.2, %v2291_v13  ;;  %v2294_v20 = vadd.f32 %v4752_v17, %v4608_v15  ;;  %v2285_v21 = vpop.f32.mrb[95].mxu0  ;;  %vm2519_vm12 = vcmp.ge.f32.partialorder %v2291_v13, 0.0 }
 0x1b7   : > { %v2645_v22 = vmul.f32 0.2, %v2283_v16  ;;  %v2286_v23 = vadd.f32 %v2285_v21, %v1308_v18  ;;  %vm2517_vm13 = vcmp.ge.f32.partialorder %v2283_v16, 0.0 }
 0x1b8   : > { %vm2520_vm14 = vcmp.ge.f32.partialorder %v2294_v20, 0.0  ;;  %v2648_v24 = vmul.f32 0.2, %v2294_v20  ;;  %v2775_v26 = vsel %vm2519_vm12, %v2291_v13, %v2647_v19 }
 0x1b9   : > { %vm2518_vm15 = vcmp.ge.f32.partialorder %v2286_v23, 0.0  ;;  %v2646_v25 = vmul.f32 0.2, %v2286_v23  ;;  %v2773_v29 = vsel %vm2517_vm13, %v2283_v16, %v2645_v22 }
 0x1ba   : > { %v2776_v27 = vsel %vm2520_vm14, %v2294_v20, %v2648_v24  ;;  %v4611_v28 = vpop.f32.mrb[96].mxu1 }
 0x1bb   : > { %v4208_v30 = vpack.c.bf16 %v2776_v27, %v2775_v26  ;;  %v2774_v31 = vsel %vm2518_vm15, %v2286_v23, %v2646_v25  ;;  %v4755_v32 = vpop.f32.mrb[96].mxu0  ;;  %v1321_v33 = vpop.f32.mrb[97].mxu1 }
 0x1bc   : > { %v4203_v34 = vpack.c.bf16 %v2774_v31, %v2773_v29  ;;  %v2307_v35 = vadd.f32 %v4755_v32, %v4611_v28  ;;  %v2298_v36 = vpop.f32.mrb[97].mxu0  ;;  %v4612_v37 = vpop.f32.mrb[98].mxu1 }
 0x1bd   : > { %4336 = vst [vmem:[%s5313_s28 + $0x178] sm:$0xff] %v4208_v30   ;;  %v2299_v38 = vadd.f32 %v2298_v36, %v1321_v33  ;;  %v4756_v39 = vpop.f32.mrb[98].mxu0  ;;  %v1324_v40 = vpop.f32.mrb[99].mxu1 }
 0x1be   : > { %4335 = vst [vmem:[%s5313_s28 + $0x170] sm:$0xff] %v4203_v34   ;;  %v2651_v41 = vmul.f32 0.2, %v2307_v35  ;;  %v2310_v42 = vadd.f32 %v4756_v39, %v4612_v37  ;;  %v2301_v43 = vpop.f32.mrb[99].mxu0  ;;  %vm2523_vm0 = vcmp.ge.f32.partialorder %v2307_v35, 0.0 }
 0x1bf   : > { %v2649_v44 = vmul.f32 0.2, %v2299_v38  ;;  %v2302_v45 = vadd.f32 %v2301_v43, %v1324_v40  ;;  %vm2521_vm1 = vcmp.ge.f32.partialorder %v2299_v38, 0.0 }
 0x1c0   : > { %vm2524_vm2 = vcmp.ge.f32.partialorder %v2310_v42, 0.0  ;;  %v2652_v46 = vmul.f32 0.2, %v2310_v42  ;;  %v2779_v48 = vsel %vm2523_vm0, %v2307_v35, %v2651_v41 }
 0x1c1   : > { %vm2522_vm3 = vcmp.ge.f32.partialorder %v2302_v45, 0.0  ;;  %v2650_v47 = vmul.f32 0.2, %v2302_v45  ;;  %v2777_v51 = vsel %vm2521_vm1, %v2299_v38, %v2649_v44 }
 0x1c2   : > { %v2780_v49 = vsel %vm2524_vm2, %v2310_v42, %v2652_v46  ;;  %v4615_v50 = vpop.f32.mrb[100].mxu1 }
 0x1c3   : > { %v4218_v52 = vpack.c.bf16 %v2780_v49, %v2779_v48  ;;  %v2778_v53 = vsel %vm2522_vm3, %v2302_v45, %v2650_v47  ;;  %v4759_v54 = vpop.f32.mrb[100].mxu0  ;;  %v1337_v55 = vpop.f32.mrb[101].mxu1 }
 0x1c4   : > { %v4213_v56 = vpack.c.bf16 %v2778_v53, %v2777_v51  ;;  %v2323_v57 = vadd.f32 %v4759_v54, %v4615_v50  ;;  %v2314_v58 = vpop.f32.mrb[101].mxu0  ;;  %v4616_v59 = vpop.f32.mrb[102].mxu1 }
 0x1c5   : > { %4338 = vst [vmem:[%s5313_s28 + $0x188] sm:$0xff] %v4218_v52   ;;  %v2315_v60 = vadd.f32 %v2314_v58, %v1337_v55  ;;  %v4760_v61 = vpop.f32.mrb[102].mxu0  ;;  %v1340_v62 = vpop.f32.mrb[103].mxu1 }
 0x1c6   : > { %4337 = vst [vmem:[%s5313_s28 + $0x180] sm:$0xff] %v4213_v56   ;;  %v2655_v63 = vmul.f32 0.2, %v2323_v57  ;;  %v2326_v0 = vadd.f32 %v4760_v61, %v4616_v59  ;;  %v2317_v1 = vpop.f32.mrb[103].mxu0  ;;  %vm2527_vm4 = vcmp.ge.f32.partialorder %v2323_v57, 0.0 }
 0x1c7   : > { %v2653_v2 = vmul.f32 0.2, %v2315_v60  ;;  %v2318_v3 = vadd.f32 %v2317_v1, %v1340_v62  ;;  %vm2525_vm5 = vcmp.ge.f32.partialorder %v2315_v60, 0.0 }
 0x1c8   : > { %vm2528_vm6 = vcmp.ge.f32.partialorder %v2326_v0, 0.0  ;;  %v2656_v4 = vmul.f32 0.2, %v2326_v0  ;;  %v2783_v6 = vsel %vm2527_vm4, %v2323_v57, %v2655_v63 }
 0x1c9   : > { %vm2526_vm7 = vcmp.ge.f32.partialorder %v2318_v3, 0.0  ;;  %v2654_v5 = vmul.f32 0.2, %v2318_v3  ;;  %v2781_v9 = vsel %vm2525_vm5, %v2315_v60, %v2653_v2 }
 0x1ca   : > { %v2784_v7 = vsel %vm2528_vm6, %v2326_v0, %v2656_v4  ;;  %v4619_v8 = vpop.f32.mrb[104].mxu1 }
 0x1cb   : > { %v4228_v10 = vpack.c.bf16 %v2784_v7, %v2783_v6  ;;  %v2782_v11 = vsel %vm2526_vm7, %v2318_v3, %v2654_v5  ;;  %v4763_v12 = vpop.f32.mrb[104].mxu0  ;;  %v1353_v13 = vpop.f32.mrb[105].mxu1 }
 0x1cc   : > { %v4223_v14 = vpack.c.bf16 %v2782_v11, %v2781_v9  ;;  %v2339_v15 = vadd.f32 %v4763_v12, %v4619_v8  ;;  %v2330_v16 = vpop.f32.mrb[105].mxu0  ;;  %v4620_v17 = vpop.f32.mrb[106].mxu1 }
 0x1cd   : > { %4340 = vst [vmem:[%s5313_s28 + $0x198] sm:$0xff] %v4228_v10   ;;  %v2331_v18 = vadd.f32 %v2330_v16, %v1353_v13  ;;  %v4764_v19 = vpop.f32.mrb[106].mxu0  ;;  %v1356_v20 = vpop.f32.mrb[107].mxu1 }
 0x1ce   : > { %4339 = vst [vmem:[%s5313_s28 + $0x190] sm:$0xff] %v4223_v14   ;;  %v2659_v21 = vmul.f32 0.2, %v2339_v15  ;;  %v2342_v22 = vadd.f32 %v4764_v19, %v4620_v17  ;;  %v2333_v23 = vpop.f32.mrb[107].mxu0  ;;  %vm2531_vm8 = vcmp.ge.f32.partialorder %v2339_v15, 0.0 }
 0x1cf   : > { %v2657_v24 = vmul.f32 0.2, %v2331_v18  ;;  %v2334_v25 = vadd.f32 %v2333_v23, %v1356_v20  ;;  %vm2529_vm9 = vcmp.ge.f32.partialorder %v2331_v18, 0.0 }
 0x1d0   : > { %vm2532_vm10 = vcmp.ge.f32.partialorder %v2342_v22, 0.0  ;;  %v2660_v26 = vmul.f32 0.2, %v2342_v22  ;;  %v2787_v28 = vsel %vm2531_vm8, %v2339_v15, %v2659_v21 }
 0x1d1   : > { %vm2530_vm11 = vcmp.ge.f32.partialorder %v2334_v25, 0.0  ;;  %v2658_v27 = vmul.f32 0.2, %v2334_v25  ;;  %v2785_v31 = vsel %vm2529_vm9, %v2331_v18, %v2657_v24 }
 0x1d2   : > { %v2788_v29 = vsel %vm2532_vm10, %v2342_v22, %v2660_v26  ;;  %v4623_v30 = vpop.f32.mrb[108].mxu1 }
 0x1d3   : > { %v4238_v32 = vpack.c.bf16 %v2788_v29, %v2787_v28  ;;  %v2786_v33 = vsel %vm2530_vm11, %v2334_v25, %v2658_v27  ;;  %v4767_v34 = vpop.f32.mrb[108].mxu0  ;;  %v1369_v35 = vpop.f32.mrb[109].mxu1 }
 0x1d4   : > { %v4233_v36 = vpack.c.bf16 %v2786_v33, %v2785_v31  ;;  %v2355_v37 = vadd.f32 %v4767_v34, %v4623_v30  ;;  %v2346_v38 = vpop.f32.mrb[109].mxu0  ;;  %v4624_v39 = vpop.f32.mrb[110].mxu1 }
 0x1d5   : > { %4342 = vst [vmem:[%s5313_s28 + $0x1a8] sm:$0xff] %v4238_v32   ;;  %v2347_v40 = vadd.f32 %v2346_v38, %v1369_v35  ;;  %v4768_v41 = vpop.f32.mrb[110].mxu0  ;;  %v1372_v42 = vpop.f32.mrb[111].mxu1 }
 0x1d6   : > { %4341 = vst [vmem:[%s5313_s28 + $0x1a0] sm:$0xff] %v4233_v36   ;;  %v2663_v43 = vmul.f32 0.2, %v2355_v37  ;;  %v2358_v44 = vadd.f32 %v4768_v41, %v4624_v39  ;;  %v2349_v45 = vpop.f32.mrb[111].mxu0  ;;  %vm2535_vm12 = vcmp.ge.f32.partialorder %v2355_v37, 0.0 }
 0x1d7   : > { %v2661_v46 = vmul.f32 0.2, %v2347_v40  ;;  %v2350_v47 = vadd.f32 %v2349_v45, %v1372_v42  ;;  %vm2533_vm13 = vcmp.ge.f32.partialorder %v2347_v40, 0.0 }
 0x1d8   : > { %vm2536_vm14 = vcmp.ge.f32.partialorder %v2358_v44, 0.0  ;;  %v2664_v48 = vmul.f32 0.2, %v2358_v44  ;;  %v2791_v50 = vsel %vm2535_vm12, %v2355_v37, %v2663_v43 }
 0x1d9   : > { %vm2534_vm15 = vcmp.ge.f32.partialorder %v2350_v47, 0.0  ;;  %v2662_v49 = vmul.f32 0.2, %v2350_v47  ;;  %v2789_v53 = vsel %vm2533_vm13, %v2347_v40, %v2661_v46 }
 0x1da   : > { %v2792_v51 = vsel %vm2536_vm14, %v2358_v44, %v2664_v48  ;;  %v4627_v52 = vpop.f32.mrb[112].mxu1 }
 0x1db   : > { %v4248_v54 = vpack.c.bf16 %v2792_v51, %v2791_v50  ;;  %v2790_v55 = vsel %vm2534_vm15, %v2350_v47, %v2662_v49  ;;  %v4771_v56 = vpop.f32.mrb[112].mxu0  ;;  %v1385_v57 = vpop.f32.mrb[113].mxu1 }
 0x1dc   : > { %v4243_v58 = vpack.c.bf16 %v2790_v55, %v2789_v53  ;;  %v2371_v59 = vadd.f32 %v4771_v56, %v4627_v52  ;;  %v2362_v60 = vpop.f32.mrb[113].mxu0  ;;  %v4628_v61 = vpop.f32.mrb[114].mxu1 }
 0x1dd   : > { %4344 = vst [vmem:[%s5313_s28 + $0x1b8] sm:$0xff] %v4248_v54   ;;  %v2363_v62 = vadd.f32 %v2362_v60, %v1385_v57  ;;  %v4772_v63 = vpop.f32.mrb[114].mxu0  ;;  %v1388_v0 = vpop.f32.mrb[115].mxu1 }
 0x1de   : > { %4343 = vst [vmem:[%s5313_s28 + $0x1b0] sm:$0xff] %v4243_v58   ;;  %v2667_v1 = vmul.f32 0.2, %v2371_v59  ;;  %v2374_v2 = vadd.f32 %v4772_v63, %v4628_v61  ;;  %v2365_v3 = vpop.f32.mrb[115].mxu0  ;;  %vm2539_vm0 = vcmp.ge.f32.partialorder %v2371_v59, 0.0 }
 0x1df   : > { %v2665_v4 = vmul.f32 0.2, %v2363_v62  ;;  %v2366_v5 = vadd.f32 %v2365_v3, %v1388_v0  ;;  %vm2537_vm1 = vcmp.ge.f32.partialorder %v2363_v62, 0.0 }
 0x1e0   : > { %vm2540_vm2 = vcmp.ge.f32.partialorder %v2374_v2, 0.0  ;;  %v2668_v6 = vmul.f32 0.2, %v2374_v2  ;;  %v2795_v8 = vsel %vm2539_vm0, %v2371_v59, %v2667_v1 }
 0x1e1   : > { %vm2538_vm3 = vcmp.ge.f32.partialorder %v2366_v5, 0.0  ;;  %v2666_v7 = vmul.f32 0.2, %v2366_v5  ;;  %v2793_v11 = vsel %vm2537_vm1, %v2363_v62, %v2665_v4 }
 0x1e2   : > { %v2796_v9 = vsel %vm2540_vm2, %v2374_v2, %v2668_v6  ;;  %v4631_v10 = vpop.f32.mrb[116].mxu1 }
 0x1e3   : > { %v4258_v12 = vpack.c.bf16 %v2796_v9, %v2795_v8  ;;  %v2794_v13 = vsel %vm2538_vm3, %v2366_v5, %v2666_v7  ;;  %v4775_v14 = vpop.f32.mrb[116].mxu0  ;;  %v1401_v15 = vpop.f32.mrb[117].mxu1 }
 0x1e4   : > { %v4253_v16 = vpack.c.bf16 %v2794_v13, %v2793_v11  ;;  %v2387_v17 = vadd.f32 %v4775_v14, %v4631_v10  ;;  %v2378_v18 = vpop.f32.mrb[117].mxu0  ;;  %v4632_v19 = vpop.f32.mrb[118].mxu1 }
 0x1e5   : > { %4346 = vst [vmem:[%s5313_s28 + $0x1c8] sm:$0xff] %v4258_v12   ;;  %v2379_v20 = vadd.f32 %v2378_v18, %v1401_v15  ;;  %v4776_v21 = vpop.f32.mrb[118].mxu0  ;;  %v1404_v22 = vpop.f32.mrb[119].mxu1 }
 0x1e6   : > { %4345 = vst [vmem:[%s5313_s28 + $0x1c0] sm:$0xff] %v4253_v16   ;;  %v2671_v23 = vmul.f32 0.2, %v2387_v17  ;;  %v2390_v24 = vadd.f32 %v4776_v21, %v4632_v19  ;;  %v2381_v25 = vpop.f32.mrb[119].mxu0  ;;  %vm2543_vm4 = vcmp.ge.f32.partialorder %v2387_v17, 0.0 }
 0x1e7   : > { %v2669_v26 = vmul.f32 0.2, %v2379_v20  ;;  %v2382_v27 = vadd.f32 %v2381_v25, %v1404_v22  ;;  %vm2541_vm5 = vcmp.ge.f32.partialorder %v2379_v20, 0.0 }
 0x1e8   : > { %vm2544_vm6 = vcmp.ge.f32.partialorder %v2390_v24, 0.0  ;;  %v2672_v28 = vmul.f32 0.2, %v2390_v24  ;;  %v2799_v30 = vsel %vm2543_vm4, %v2387_v17, %v2671_v23 }
 0x1e9   : > { %vm2542_vm7 = vcmp.ge.f32.partialorder %v2382_v27, 0.0  ;;  %v2670_v29 = vmul.f32 0.2, %v2382_v27  ;;  %v2797_v33 = vsel %vm2541_vm5, %v2379_v20, %v2669_v26 }
 0x1ea   : > { %v2800_v31 = vsel %vm2544_vm6, %v2390_v24, %v2672_v28  ;;  %v4635_v32 = vpop.f32.mrb[120].mxu1 }
 0x1eb   : > { %v4268_v34 = vpack.c.bf16 %v2800_v31, %v2799_v30  ;;  %v2798_v35 = vsel %vm2542_vm7, %v2382_v27, %v2670_v29  ;;  %v4779_v36 = vpop.f32.mrb[120].mxu0  ;;  %v1417_v37 = vpop.f32.mrb[121].mxu1 }
 0x1ec   : > { %v4263_v38 = vpack.c.bf16 %v2798_v35, %v2797_v33  ;;  %v2403_v39 = vadd.f32 %v4779_v36, %v4635_v32  ;;  %v2394_v40 = vpop.f32.mrb[121].mxu0  ;;  %v4636_v41 = vpop.f32.mrb[122].mxu1 }
 0x1ed   : > { %4348 = vst [vmem:[%s5313_s28 + $0x1d8] sm:$0xff] %v4268_v34   ;;  %v2395_v42 = vadd.f32 %v2394_v40, %v1417_v37  ;;  %v4780_v43 = vpop.f32.mrb[122].mxu0  ;;  %v1420_v44 = vpop.f32.mrb[123].mxu1 }
 0x1ee   : > { %4347 = vst [vmem:[%s5313_s28 + $0x1d0] sm:$0xff] %v4263_v38   ;;  %v2675_v45 = vmul.f32 0.2, %v2403_v39  ;;  %v2406_v46 = vadd.f32 %v4780_v43, %v4636_v41  ;;  %v2397_v47 = vpop.f32.mrb[123].mxu0  ;;  %vm2547_vm8 = vcmp.ge.f32.partialorder %v2403_v39, 0.0 }
 0x1ef   : > { %v2673_v48 = vmul.f32 0.2, %v2395_v42  ;;  %v2398_v49 = vadd.f32 %v2397_v47, %v1420_v44  ;;  %vm2545_vm9 = vcmp.ge.f32.partialorder %v2395_v42, 0.0 }
 0x1f0   : > { %vm2548_vm10 = vcmp.ge.f32.partialorder %v2406_v46, 0.0  ;;  %v2676_v50 = vmul.f32 0.2, %v2406_v46  ;;  %v2803_v52 = vsel %vm2547_vm8, %v2403_v39, %v2675_v45 }
 0x1f1   : > { %vm2546_vm11 = vcmp.ge.f32.partialorder %v2398_v49, 0.0  ;;  %v2674_v51 = vmul.f32 0.2, %v2398_v49  ;;  %v2801_v55 = vsel %vm2545_vm9, %v2395_v42, %v2673_v48 }
 0x1f2   : > { %v2804_v53 = vsel %vm2548_vm10, %v2406_v46, %v2676_v50  ;;  %v4639_v54 = vpop.f32.mrb[124].mxu1 }
 0x1f3   : > { %v4278_v56 = vpack.c.bf16 %v2804_v53, %v2803_v52  ;;  %v2802_v57 = vsel %vm2546_vm11, %v2398_v49, %v2674_v51  ;;  %v4783_v58 = vpop.f32.mrb[124].mxu0  ;;  %v1433_v59 = vpop.f32.mrb[125].mxu1 }
 0x1f4   : > { %v4273_v60 = vpack.c.bf16 %v2802_v57, %v2801_v55  ;;  %v2419_v61 = vadd.f32 %v4783_v58, %v4639_v54  ;;  %v2410_v62 = vpop.f32.mrb[125].mxu0  ;;  %v4640_v63 = vpop.f32.mrb[126].mxu1 }
 0x1f5   : > { %4350 = vst [vmem:[%s5313_s28 + $0x1e8] sm:$0xff] %v4278_v56   ;;  %v2411_v0 = vadd.f32 %v2410_v62, %v1433_v59  ;;  %v4784_v1 = vpop.f32.mrb[126].mxu0  ;;  %v1436_v2 = vpop.f32.mrb[127].mxu1 }
 0x1f6   : > { %4349 = vst [vmem:[%s5313_s28 + $0x1e0] sm:$0xff] %v4273_v60   ;;  %v2679_v3 = vmul.f32 0.2, %v2419_v61  ;;  %v2422_v4 = vadd.f32 %v4784_v1, %v4640_v63  ;;  %v2413_v5 = vpop.f32.mrb[127].mxu0  ;;  %vm2551_vm12 = vcmp.ge.f32.partialorder %v2419_v61, 0.0 }
 0x1f7   : > { %v2677_v6 = vmul.f32 0.2, %v2411_v0  ;;  %v2414_v7 = vadd.f32 %v2413_v5, %v1436_v2  ;;  %vm2549_vm13 = vcmp.ge.f32.partialorder %v2411_v0, 0.0 }
 0x1f8   : > { %vm2552_vm14 = vcmp.ge.f32.partialorder %v2422_v4, 0.0  ;;  %v2680_v8 = vmul.f32 0.2, %v2422_v4  ;;  %v2807_v10 = vsel %vm2551_vm12, %v2419_v61, %v2679_v3 }
 0x1f9   : > { %vm2550_vm15 = vcmp.ge.f32.partialorder %v2414_v7, 0.0  ;;  %v2678_v9 = vmul.f32 0.2, %v2414_v7  ;;  %v2805_v12 = vsel %vm2549_vm13, %v2411_v0, %v2677_v6 }
 0x1fa   : > { %v2808_v11 = vsel %vm2552_vm14, %v2422_v4, %v2680_v8 }
 0x1fb   : > { %v4288_v13 = vpack.c.bf16 %v2808_v11, %v2807_v10  ;;  %v2806_v14 = vsel %vm2550_vm15, %v2414_v7, %v2678_v9 }
 0x1fc   : > { %v4283_v15 = vpack.c.bf16 %v2806_v14, %v2805_v12 }
 0x1fd   : > { %4352 = vst [vmem:[%s5313_s28 + $0x1f8] sm:$0xff] %v4288_v13  }
 0x1fe   : > { %4351 = vst [vmem:[%s5313_s28 + $0x1f0] sm:$0xff] %v4283_v15  }
 0x1ff PF: > { %s12_s11 = sadd.s32 1, %s5104_s11   ;;  %s5405_s9 = smov %s5100_s10 }
 0x200   : > { %p9_p5 = scmp.ge.s32.totalorder %s12_s11, 4   ;;  %s5406_s10 = smov %s5408_s12 }
 0x202   :  { %11 = sbr.rel (!%p9_p5) target bundleno = 2 (0x2), region = 62 }

// kernel: discriminator_cycle_forward.9
= control target key start
LH: loop header
LB: loop body
LE: loop exit
PB: predicated region body
PF: predicated region fallthrough
CT: control target
= control target key end

     0   :  { %s1940_s15 = smov 0   ;;  %s1942_s16 = smov 0   ;;  %s2085_s0 = inlined_call_operand.vmem [shape: bf16[2,272,128], index: 0, kind: input, shape index: {}]   ;;  %s2086_s1 = inlined_call_operand.vmem [shape: bf16[2,128,128], index: 1, kind: input, shape index: {}]   ;;  %s2087_s2 = inlined_call_operand.vmem [shape: bf16[2,256,128], index: 2, kind: output, shape index: {0}]   ;;  %s2088_s3 = inlined_call_operand.vmem [shape: f32[2,1,128], index: 3, kind: output, shape index: {1}]   ;;  %s2089_s4 = inlined_call_operand.vmem [shape: f32[2,1,128], index: 4, kind: output, shape index: {2}]  }
   0x1   :  { %s1944_s17 = smov 0  }
   0x2 LB: > { %s27_s18 = sadd.s32 1, %s1909_s16  ;;  %p1412_p0 = scmp.ge.s32.totalorder %s1913_s17, 1  ;;  %s1913_s17 = sphi %s1944_s17, %s15_s17   ;;  %s1909_s16 = sphi %s1942_s16, %s2091_s16   ;;  %s1905_s15 = sphi %s1940_s15, %s2090_s15  }
   0x3   : > { %p29_p1 = scmp.ge.s32.totalorder %s27_s18, 2  ;;  %p194_p2 = scmp.lt.s32.totalorder %s1913_s17, 3 }
   0x5   : > { %s2093_s18 = smov (%p29_p1, %s27_s18), 0  ;;  %p195_p3 = pnand %p1412_p0, %p194_p2 }
   0x6   : > { %v1843_v0 = vld [vmem:[%s2086_s1 + $0x40] sm:$0xff] (!%p195_p3)   ;;  %p239_p4 = scmp.lt.s32.totalorder (!%p195_p3), %s1905_s15, 1  ;;  %v1845_v2 = vld [vmem:[%s2086_s1 + $0x48] sm:$0xff] (!%p195_p3)   ;;  %v1847_v4 = vld [vmem:[%s2086_s1 + $0x50] sm:$0xff] (!%p195_p3)  }
   0x7   : > { %198 = sbr.rel (%p195_p3) target bundleno = 334 (0x14e), region = 28  ;;  %v1844_v1 = vld [vmem:[%s2086_s1] sm:$0xff] (!%p195_p3)   ;;  %1690 = vmatprep.subr.bf16.mxu1 (!%p195_p3), %v1843_v0  ;;  %v1846_v3 = vld [vmem:[%s2086_s1 + $0x8] sm:$0xff] (!%p195_p3)   ;;  %v1848_v5 = vld [vmem:[%s2086_s1 + $0x10] sm:$0xff] (!%p195_p3)  }
   0x8   : > { %1738 = vmatprep.subr.bf16.mxu0 (!%p195_p3), %v1844_v1  ;;  %1691 = vmatpush3.bf16.msra.mxu1 (!%p195_p3), %v1843_v0  ;;  %v1849_v6 = vld [vmem:[%s2086_s1 + $0x58] sm:$0xff] (!%p195_p3)   ;;  %v1851_v8 = vld [vmem:[%s2086_s1 + $0x60] sm:$0xff] (!%p195_p3)   ;;  %v1853_v10 = vld [vmem:[%s2086_s1 + $0x68] sm:$0xff] (!%p195_p3)  }
   0x9   : > { %1739 = vmatpush3.bf16.msra.mxu0 (!%p195_p3), %v1844_v1  ;;  %1692 = vmatprep.subr.bf16.mxu1 (!%p195_p3), %v1845_v2  ;;  %v1850_v7 = vld [vmem:[%s2086_s1 + $0x18] sm:$0xff] (!%p195_p3)   ;;  %v1852_v9 = vld [vmem:[%s2086_s1 + $0x20] sm:$0xff] (!%p195_p3)   ;;  %v1854_v11 = vld [vmem:[%s2086_s1 + $0x28] sm:$0xff] (!%p195_p3)  }
   0xa   : > { %1740 = vmatprep.subr.bf16.mxu0 (!%p195_p3), %v1846_v3  ;;  %v1855_v14 = vld [vmem:[%s2086_s1 + $0x70] sm:$0xff] (!%p195_p3)   ;;  %v1857_v16 = vld [vmem:[%s2086_s1 + $0x78] sm:$0xff] (!%p195_p3)  }
   0xb   : > { %v1856_v15 = vld [vmem:[%s2086_s1 + $0x30] sm:$0xff] (!%p195_p3)   ;;  %v1858_v17 = vld [vmem:[%s2086_s1 + $0x38] sm:$0xff] (!%p195_p3)  }
   0xc   : > { %1693 = vmatpush3.bf16.msra.mxu1 (!%p195_p3), %v1845_v2 }
   0xd   : > { %1741 = vmatpush3.bf16.msra.mxu0 (!%p195_p3), %v1846_v3  ;;  %1694 = vmatprep.subr.bf16.mxu1 (!%p195_p3), %v1847_v4 }
   0xe   : > { %s2095_s15 = smov (!%p239_p4, %s1905_s15), 1  ;;  %1742 = vmatprep.subr.bf16.mxu0 %v1848_v5 }
   0xf   : > { %s1818_s9 = smul.u32 136, %s2095_s15  ;;  %s1514_s7 = sshll.u32 %s2095_s15, 7 }
  0x10   : > { %1695 = vmatpush3.bf16.msra.mxu1 %v1847_v4  ;;  %s2050_s10 = scalar_lea.vmem %s2087_s2, %s1514_s7  ;;  %s261_s13 = scalar_lea.vmem %s2088_s3, %s2095_s15 }
  0x11   : > { %1743 = vmatpush3.bf16.msra.mxu0 %v1848_v5  ;;  %1696 = vmatprep.subr.bf16.mxu1 %v1849_v6  ;;  %s1994_s20 = scalar_lea.vmem %s2085_s0, %s1818_s9 }
  0x12   : > { %1744 = vmatprep.subr.bf16.mxu0 %v1850_v7  ;;  %v1859_v12 = vld [vmem:[%s1994_s20 + $0x8] sm:$0xff]   ;;  %v1860_v13 = vld [vmem:[%s1994_s20] sm:$0xff]   ;;  %v1861_v18 = vld [vmem:[%s1994_s20 + $0x10] sm:$0xff]  }
  0x13   : > { %1706 = vmatprep.mubr.bf16.mxu1 %v1859_v12  ;;  %1754 = vmatprep.mubr.bf16.mxu0 %v1860_v13  ;;  %v1862_v19 = vld [vmem:[%s1994_s20 + $0x8] sm:$0xff]   ;;  %v1863_v20 = vld [vmem:[%s1994_s20 + $0x18] sm:$0xff]   ;;  %v1864_v21 = vld [vmem:[%s1994_s20 + $0x10] sm:$0xff]  }
  0x14   : > { %1697 = vmatpush3.bf16.msra.mxu1 %v1849_v6  ;;  %v1865_v22 = vld [vmem:[%s1994_s20 + $0x20] sm:$0xff]   ;;  %v1866_v23 = vld [vmem:[%s1994_s20 + $0x18] sm:$0xff]   ;;  %v1867_v24 = vld [vmem:[%s1994_s20 + $0x28] sm:$0xff]  }
  0x15   : > { %1745 = vmatpush3.bf16.msra.mxu0 %v1850_v7  ;;  %1698 = vmatprep.subr.bf16.mxu1 %v1851_v8  ;;  %v1868_v25 = vld [vmem:[%s1994_s20 + $0x20] sm:$0xff]   ;;  %v1869_v26 = vld [vmem:[%s1994_s20 + $0x30] sm:$0xff]   ;;  %v1870_v27 = vld [vmem:[%s1994_s20 + $0x28] sm:$0xff]  }
  0x16   : > { %1746 = vmatprep.subr.bf16.mxu0 %v1852_v9  ;;  %v1871_v28 = vld [vmem:[%s1994_s20 + $0x38] sm:$0xff]   ;;  %v1872_v29 = vld [vmem:[%s1994_s20 + $0x30] sm:$0xff]   ;;  %v1873_v30 = vld [vmem:[%s1994_s20 + $0x40] sm:$0xff]  }
  0x17   : > { %v1874_v31 = vld [vmem:[%s1994_s20 + $0x38] sm:$0xff]   ;;  %v1875_v32 = vld [vmem:[%s1994_s20 + $0x48] sm:$0xff]   ;;  %v1876_v33 = vld [vmem:[%s1994_s20 + $0x40] sm:$0xff]  }
  0x18   : > { %1699 = vmatpush3.bf16.msra.mxu1 %v1851_v8  ;;  %v1877_v34 = vld [vmem:[%s1994_s20 + $0x50] sm:$0xff]   ;;  %v1878_v35 = vld [vmem:[%s1994_s20 + $0x48] sm:$0xff]   ;;  %v1879_v36 = vld [vmem:[%s1994_s20 + $0x58] sm:$0xff]  }
  0x19   : > { %1747 = vmatpush3.bf16.msra.mxu0 %v1852_v9  ;;  %1700 = vmatprep.subr.bf16.mxu1 %v1853_v10  ;;  %v1880_v37 = vld [vmem:[%s1994_s20 + $0x50] sm:$0xff]   ;;  %v1881_v38 = vld [vmem:[%s1994_s20 + $0x60] sm:$0xff]   ;;  %v1882_v39 = vld [vmem:[%s1994_s20 + $0x58] sm:$0xff]  }
  0x1a   : > { %1748 = vmatprep.subr.bf16.mxu0 %v1854_v11  ;;  %v1883_v40 = vld [vmem:[%s1994_s20 + $0x68] sm:$0xff]   ;;  %v1884_v41 = vld [vmem:[%s1994_s20 + $0x60] sm:$0xff]   ;;  %v1885_v42 = vld [vmem:[%s1994_s20 + $0x70] sm:$0xff]  }
  0x1b   : > { %v1886_v43 = vld [vmem:[%s1994_s20 + $0x68] sm:$0xff]   ;;  %v1887_v44 = vld [vmem:[%s1994_s20 + $0x78] sm:$0xff]   ;;  %v1888_v45 = vld [vmem:[%s1994_s20 + $0x70] sm:$0xff]  }
  0x1c   : > { %1701 = vmatpush3.bf16.msra.mxu1 %v1853_v10  ;;  %v1889_v46 = vld [vmem:[%s1994_s20 + $0x80] sm:$0xff]   ;;  %v1890_v47 = vld [vmem:[%s1994_s20 + $0x78] sm:$0xff]   ;;  %s267_s20 = scalar_lea.vmem %s2089_s4, %s2095_s15 }
  0x1d   : > { %1749 = vmatpush3.bf16.msra.mxu0 %v1854_v11  ;;  %1702 = vmatprep.subr.bf16.mxu1 %v1855_v14 }
  0x1e   : > { %1750 = vmatprep.subr.bf16.mxu0 %v1856_v15 }
  0x20   : > { %1703 = vmatpush3.bf16.msra.mxu1 %v1855_v14 }
  0x21   : > { %1751 = vmatpush3.bf16.msra.mxu0 %v1856_v15  ;;  %1704 = vmatprep.subr.bf16.mxu1 %v1857_v16 }
  0x22   : > { %1752 = vmatprep.subr.bf16.mxu0 %v1858_v17 }
  0x24   : > { %1705 = vmatpush3.bf16.msra.mxu1 %v1857_v16 }
  0x25   : > { %1753 = vmatpush3.bf16.msra.mxu0 %v1858_v17 }
  0x27   : > { %1707 = vmatmul.mubr.bf16.vlgmr.msra.gmra.mrb[0].mxu1 %v1861_v18 }
  0x28   : > { %1755 = vmatmul.mubr.bf16.vlgmr.msra.gmra.mrb[0].mxu0 %v1862_v19  ;;  %1710 = vmatprep.mubr.bf16.mxu1 %v1863_v20 }
  0x29   : > { %1758 = vmatprep.mubr.bf16.mxu0 %v1864_v21 }
  0x2f   : > { %1711 = vmatmul.mubr.bf16.gmra.mrb[4].mxu1 %v1865_v22 }
  0x30   : > { %1759 = vmatmul.mubr.bf16.gmra.mrb[4].mxu0 %v1866_v23  ;;  %1714 = vmatprep.mubr.bf16.mxu1 %v1867_v24 }
  0x31   : > { %1762 = vmatprep.mubr.bf16.mxu0 %v1868_v25 }
  0x37   : > { %1715 = vmatmul.mubr.bf16.gmra.mrb[8].mxu1 %v1869_v26 }
  0x38   : > { %1763 = vmatmul.mubr.bf16.gmra.mrb[8].mxu0 %v1870_v27  ;;  %1718 = vmatprep.mubr.bf16.mxu1 %v1871_v28 }
  0x39   : > { %1766 = vmatprep.mubr.bf16.mxu0 %v1872_v29 }
  0x3f   : > { %1719 = vmatmul.mubr.bf16.gmra.mrb[12].mxu1 %v1873_v30 }
  0x40   : > { %1767 = vmatmul.mubr.bf16.gmra.mrb[12].mxu0 %v1874_v31  ;;  %1722 = vmatprep.mubr.bf16.mxu1 %v1875_v32 }
  0x41   : > { %1770 = vmatprep.mubr.bf16.mxu0 %v1876_v33 }
  0x47   : > { %1723 = vmatmul.mubr.bf16.gmra.mrb[16].mxu1 %v1877_v34 }
  0x48   : > { %1771 = vmatmul.mubr.bf16.gmra.mrb[16].mxu0 %v1878_v35  ;;  %1726 = vmatprep.mubr.bf16.mxu1 %v1879_v36 }
  0x49   : > { %1774 = vmatprep.mubr.bf16.mxu0 %v1880_v37 }
  0x4f   : > { %1727 = vmatmul.mubr.bf16.gmra.mrb[20].mxu1 %v1881_v38 }
  0x50   : > { %1775 = vmatmul.mubr.bf16.gmra.mrb[20].mxu0 %v1882_v39  ;;  %1730 = vmatprep.mubr.bf16.mxu1 %v1883_v40 }
  0x51   : > { %1778 = vmatprep.mubr.bf16.mxu0 %v1884_v41 }
  0x57   : > { %1731 = vmatmul.mubr.bf16.gmra.mrb[24].mxu1 %v1885_v42 }
  0x58   : > { %1779 = vmatmul.mubr.bf16.gmra.mrb[24].mxu0 %v1886_v43  ;;  %1734 = vmatprep.mubr.bf16.mxu1 %v1887_v44 }
  0x59   : > { %1782 = vmatprep.mubr.bf16.mxu0 %v1888_v45 }
  0x5f   : > { %1735 = vmatmul.mubr.bf16.gmra.mrb[28].mxu1 %v1889_v46 }
  0x60   : > { %1783 = vmatmul.mubr.bf16.gmra.mrb[28].mxu0 %v1890_v47 }
  0xfa   : > { %v1708_v48 = vpop.f32.mrb[0].mxu1 }
  0xfb   : > { %v1756_v49 = vpop.f32.mrb[0].mxu0  ;;  %v544_v50 = vpop.f32.mrb[1].mxu1 }
  0xfc   : > { %v858_v51 = vadd.f32 %v1756_v49, %v1708_v48  ;;  %v849_v52 = vpop.f32.mrb[1].mxu0  ;;  %v1709_v53 = vpop.f32.mrb[2].mxu1 }
  0xfd   : > { %v850_v54 = vadd.f32 %v849_v52, %v544_v50  ;;  %v1757_v55 = vpop.f32.mrb[2].mxu0  ;;  %v547_v56 = vpop.f32.mrb[3].mxu1 }
  0xfe   : > { %v861_v57 = vadd.f32 %v1757_v55, %v1709_v53  ;;  %v852_v58 = vpop.f32.mrb[3].mxu0  ;;  %v1176_v2 = vmul.f32 %v858_v51, %v858_v51 }
  0xff   : > { %v853_v59 = vadd.f32 %v852_v58, %v547_v56  ;;  %v1174_v61 = vmul.f32 %v850_v54, %v850_v54 }
 0x100   : > { %v1555_v60 = vpack.c.bf16 %v861_v57, %v858_v51  ;;  %v1177_v10 = vmul.f32 %v861_v57, %v861_v57 }
 0x101   : > { %v1550_v62 = vpack.c.bf16 %v853_v59, %v850_v54  ;;  %v1136_v63 = vadd.f32 %v853_v59, %v850_v54  ;;  %v1175_v0 = vmul.f32 %v853_v59, %v853_v59 }
 0x102   : > { %1627 = vst [vmem:[%s2050_s10 + $0x8] sm:$0xff] %v1555_v60   ;;  %v1712_v1 = vpop.f32.mrb[4].mxu1 }
 0x103   : > { %1551 = vst [vmem:[%s2050_s10] sm:$0xff] %v1550_v62   ;;  %v1137_v3 = vadd.f32 %v1136_v63, %v858_v51  ;;  %v1206_v4 = vadd.f32 %v1175_v0, %v1174_v61  ;;  %v1760_v5 = vpop.f32.mrb[4].mxu0  ;;  %v560_v6 = vpop.f32.mrb[5].mxu1 }
 0x104   : > { %v874_v7 = vadd.f32 %v1760_v5, %v1712_v1  ;;  %v865_v8 = vpop.f32.mrb[5].mxu0  ;;  %v1713_v9 = vpop.f32.mrb[6].mxu1 }
 0x105   : > { %v1207_v11 = vadd.f32 %v1206_v4, %v1176_v2  ;;  %v866_v12 = vadd.f32 %v865_v8, %v560_v6  ;;  %v1138_v13 = vadd.f32 %v1137_v3, %v861_v57  ;;  %v1761_v14 = vpop.f32.mrb[6].mxu0  ;;  %v563_v15 = vpop.f32.mrb[7].mxu1 }
 0x106   : > { %v877_v16 = vadd.f32 %v1761_v14, %v1713_v9  ;;  %v868_v17 = vpop.f32.mrb[7].mxu0  ;;  %v1180_v28 = vmul.f32 %v874_v7, %v874_v7 }
 0x107   : > { %v1139_v18 = vadd.f32 %v1138_v13, %v866_v12  ;;  %v1178_v19 = vmul.f32 %v866_v12, %v866_v12  ;;  %v1208_v20 = vadd.f32 %v1207_v11, %v1177_v10  ;;  %v869_v21 = vadd.f32 %v868_v17, %v563_v15 }
 0x108   : > { %v1565_v22 = vpack.c.bf16 %v877_v16, %v874_v7  ;;  %v1181_v36 = vmul.f32 %v877_v16, %v877_v16 }
 0x109   : > { %v1209_v23 = vadd.f32 %v1208_v20, %v1178_v19  ;;  %v1560_v24 = vpack.c.bf16 %v869_v21, %v866_v12  ;;  %v1140_v25 = vadd.f32 %v1139_v18, %v869_v21  ;;  %v1179_v26 = vmul.f32 %v869_v21, %v869_v21 }
 0x10a   : > { %1629 = vst [vmem:[%s2050_s10 + $0x18] sm:$0xff] %v1565_v22   ;;  %v1716_v27 = vpop.f32.mrb[8].mxu1 }
 0x10b   : > { %1628 = vst [vmem:[%s2050_s10 + $0x10] sm:$0xff] %v1560_v24   ;;  %v1141_v29 = vadd.f32 %v1140_v25, %v874_v7  ;;  %v1210_v30 = vadd.f32 %v1209_v23, %v1179_v26  ;;  %v1764_v31 = vpop.f32.mrb[8].mxu0  ;;  %v576_v32 = vpop.f32.mrb[9].mxu1 }
 0x10c   : > { %v890_v33 = vadd.f32 %v1764_v31, %v1716_v27  ;;  %v881_v34 = vpop.f32.mrb[9].mxu0  ;;  %v1717_v35 = vpop.f32.mrb[10].mxu1 }
 0x10d   : > { %v1211_v37 = vadd.f32 %v1210_v30, %v1180_v28  ;;  %v882_v38 = vadd.f32 %v881_v34, %v576_v32  ;;  %v1142_v39 = vadd.f32 %v1141_v29, %v877_v16  ;;  %v1765_v40 = vpop.f32.mrb[10].mxu0  ;;  %v579_v41 = vpop.f32.mrb[11].mxu1 }
 0x10e   : > { %v893_v42 = vadd.f32 %v1765_v40, %v1717_v35  ;;  %v884_v43 = vpop.f32.mrb[11].mxu0  ;;  %v1184_v54 = vmul.f32 %v890_v33, %v890_v33 }
 0x10f   : > { %v1143_v44 = vadd.f32 %v1142_v39, %v882_v38  ;;  %v1182_v45 = vmul.f32 %v882_v38, %v882_v38  ;;  %v1212_v46 = vadd.f32 %v1211_v37, %v1181_v36  ;;  %v885_v47 = vadd.f32 %v884_v43, %v579_v41 }
 0x110   : > { %v1575_v48 = vpack.c.bf16 %v893_v42, %v890_v33  ;;  %v1185_v62 = vmul.f32 %v893_v42, %v893_v42 }
 0x111   : > { %v1213_v49 = vadd.f32 %v1212_v46, %v1182_v45  ;;  %v1570_v50 = vpack.c.bf16 %v885_v47, %v882_v38  ;;  %v1144_v51 = vadd.f32 %v1143_v44, %v885_v47  ;;  %v1183_v52 = vmul.f32 %v885_v47, %v885_v47 }
 0x112   : > { %1631 = vst [vmem:[%s2050_s10 + $0x28] sm:$0xff] %v1575_v48   ;;  %v1720_v53 = vpop.f32.mrb[12].mxu1 }
 0x113   : > { %1630 = vst [vmem:[%s2050_s10 + $0x20] sm:$0xff] %v1570_v50   ;;  %v1145_v55 = vadd.f32 %v1144_v51, %v890_v33  ;;  %v1214_v56 = vadd.f32 %v1213_v49, %v1183_v52  ;;  %v1768_v57 = vpop.f32.mrb[12].mxu0  ;;  %v592_v58 = vpop.f32.mrb[13].mxu1 }
 0x114   : > { %v906_v59 = vadd.f32 %v1768_v57, %v1720_v53  ;;  %v897_v60 = vpop.f32.mrb[13].mxu0  ;;  %v1721_v61 = vpop.f32.mrb[14].mxu1 }
 0x115   : > { %v1215_v63 = vadd.f32 %v1214_v56, %v1184_v54  ;;  %v898_v0 = vadd.f32 %v897_v60, %v592_v58  ;;  %v1146_v1 = vadd.f32 %v1145_v55, %v893_v42  ;;  %v1769_v2 = vpop.f32.mrb[14].mxu0  ;;  %v595_v3 = vpop.f32.mrb[15].mxu1 }
 0x116   : > { %v909_v4 = vadd.f32 %v1769_v2, %v1721_v61  ;;  %v900_v5 = vpop.f32.mrb[15].mxu0  ;;  %v1188_v16 = vmul.f32 %v906_v59, %v906_v59 }
 0x117   : > { %v1147_v6 = vadd.f32 %v1146_v1, %v898_v0  ;;  %v1186_v7 = vmul.f32 %v898_v0, %v898_v0  ;;  %v1216_v8 = vadd.f32 %v1215_v63, %v1185_v62  ;;  %v901_v9 = vadd.f32 %v900_v5, %v595_v3 }
 0x118   : > { %v1585_v10 = vpack.c.bf16 %v909_v4, %v906_v59  ;;  %v1189_v24 = vmul.f32 %v909_v4, %v909_v4 }
 0x119   : > { %v1217_v11 = vadd.f32 %v1216_v8, %v1186_v7  ;;  %v1580_v12 = vpack.c.bf16 %v901_v9, %v898_v0  ;;  %v1148_v13 = vadd.f32 %v1147_v6, %v901_v9  ;;  %v1187_v14 = vmul.f32 %v901_v9, %v901_v9 }
 0x11a   : > { %1633 = vst [vmem:[%s2050_s10 + $0x38] sm:$0xff] %v1585_v10   ;;  %v1724_v15 = vpop.f32.mrb[16].mxu1 }
 0x11b   : > { %1632 = vst [vmem:[%s2050_s10 + $0x30] sm:$0xff] %v1580_v12   ;;  %v1149_v17 = vadd.f32 %v1148_v13, %v906_v59  ;;  %v1218_v18 = vadd.f32 %v1217_v11, %v1187_v14  ;;  %v1772_v19 = vpop.f32.mrb[16].mxu0  ;;  %v608_v20 = vpop.f32.mrb[17].mxu1 }
 0x11c   : > { %v922_v21 = vadd.f32 %v1772_v19, %v1724_v15  ;;  %v913_v22 = vpop.f32.mrb[17].mxu0  ;;  %v1725_v23 = vpop.f32.mrb[18].mxu1 }
 0x11d   : > { %v1219_v25 = vadd.f32 %v1218_v18, %v1188_v16  ;;  %v914_v26 = vadd.f32 %v913_v22, %v608_v20  ;;  %v1150_v27 = vadd.f32 %v1149_v17, %v909_v4  ;;  %v1773_v28 = vpop.f32.mrb[18].mxu0  ;;  %v611_v29 = vpop.f32.mrb[19].mxu1 }
 0x11e   : > { %v925_v30 = vadd.f32 %v1773_v28, %v1725_v23  ;;  %v916_v31 = vpop.f32.mrb[19].mxu0  ;;  %v1192_v42 = vmul.f32 %v922_v21, %v922_v21 }
 0x11f   : > { %v1151_v32 = vadd.f32 %v1150_v27, %v914_v26  ;;  %v1190_v33 = vmul.f32 %v914_v26, %v914_v26  ;;  %v1220_v34 = vadd.f32 %v1219_v25, %v1189_v24  ;;  %v917_v35 = vadd.f32 %v916_v31, %v611_v29 }
 0x120   : > { %v1595_v36 = vpack.c.bf16 %v925_v30, %v922_v21  ;;  %v1193_v50 = vmul.f32 %v925_v30, %v925_v30 }
 0x121   : > { %v1221_v37 = vadd.f32 %v1220_v34, %v1190_v33  ;;  %v1590_v38 = vpack.c.bf16 %v917_v35, %v914_v26  ;;  %v1152_v39 = vadd.f32 %v1151_v32, %v917_v35  ;;  %v1191_v40 = vmul.f32 %v917_v35, %v917_v35 }
 0x122   : > { %1635 = vst [vmem:[%s2050_s10 + $0x48] sm:$0xff] %v1595_v36   ;;  %v1728_v41 = vpop.f32.mrb[20].mxu1 }
 0x123   : > { %1634 = vst [vmem:[%s2050_s10 + $0x40] sm:$0xff] %v1590_v38   ;;  %v1153_v43 = vadd.f32 %v1152_v39, %v922_v21  ;;  %v1222_v44 = vadd.f32 %v1221_v37, %v1191_v40  ;;  %v1776_v45 = vpop.f32.mrb[20].mxu0  ;;  %v624_v46 = vpop.f32.mrb[21].mxu1 }
 0x124   : > { %v938_v47 = vadd.f32 %v1776_v45, %v1728_v41  ;;  %v929_v48 = vpop.f32.mrb[21].mxu0  ;;  %v1729_v49 = vpop.f32.mrb[22].mxu1 }
 0x125   : > { %v1223_v51 = vadd.f32 %v1222_v44, %v1192_v42  ;;  %v930_v52 = vadd.f32 %v929_v48, %v624_v46  ;;  %v1154_v53 = vadd.f32 %v1153_v43, %v925_v30  ;;  %v1777_v54 = vpop.f32.mrb[22].mxu0  ;;  %v627_v55 = vpop.f32.mrb[23].mxu1 }
 0x126   : > { %v941_v56 = vadd.f32 %v1777_v54, %v1729_v49  ;;  %v932_v57 = vpop.f32.mrb[23].mxu0  ;;  %v1196_v4 = vmul.f32 %v938_v47, %v938_v47 }
 0x127   : > { %v1155_v58 = vadd.f32 %v1154_v53, %v930_v52  ;;  %v1194_v59 = vmul.f32 %v930_v52, %v930_v52  ;;  %v1224_v60 = vadd.f32 %v1223_v51, %v1193_v50  ;;  %v933_v61 = vadd.f32 %v932_v57, %v627_v55 }
 0x128   : > { %v1605_v62 = vpack.c.bf16 %v941_v56, %v938_v47  ;;  %v1197_v12 = vmul.f32 %v941_v56, %v941_v56 }
 0x129   : > { %v1225_v63 = vadd.f32 %v1224_v60, %v1194_v59  ;;  %v1600_v0 = vpack.c.bf16 %v933_v61, %v930_v52  ;;  %v1156_v1 = vadd.f32 %v1155_v58, %v933_v61  ;;  %v1195_v2 = vmul.f32 %v933_v61, %v933_v61 }
 0x12a   : > { %1637 = vst [vmem:[%s2050_s10 + $0x58] sm:$0xff] %v1605_v62   ;;  %v1732_v3 = vpop.f32.mrb[24].mxu1 }
 0x12b   : > { %1636 = vst [vmem:[%s2050_s10 + $0x50] sm:$0xff] %v1600_v0   ;;  %v1157_v5 = vadd.f32 %v1156_v1, %v938_v47  ;;  %v1226_v6 = vadd.f32 %v1225_v63, %v1195_v2  ;;  %v1780_v7 = vpop.f32.mrb[24].mxu0  ;;  %v640_v8 = vpop.f32.mrb[25].mxu1 }
 0x12c   : > { %v954_v9 = vadd.f32 %v1780_v7, %v1732_v3  ;;  %v945_v10 = vpop.f32.mrb[25].mxu0  ;;  %v1733_v11 = vpop.f32.mrb[26].mxu1 }
 0x12d   : > { %v1227_v13 = vadd.f32 %v1226_v6, %v1196_v4  ;;  %v946_v14 = vadd.f32 %v945_v10, %v640_v8  ;;  %v1158_v15 = vadd.f32 %v1157_v5, %v941_v56  ;;  %v1781_v16 = vpop.f32.mrb[26].mxu0  ;;  %v643_v17 = vpop.f32.mrb[27].mxu1 }
 0x12e   : > { %v957_v18 = vadd.f32 %v1781_v16, %v1733_v11  ;;  %v948_v19 = vpop.f32.mrb[27].mxu0  ;;  %v1200_v30 = vmul.f32 %v954_v9, %v954_v9 }
 0x12f   : > { %v1159_v20 = vadd.f32 %v1158_v15, %v946_v14  ;;  %v1198_v21 = vmul.f32 %v946_v14, %v946_v14  ;;  %v1228_v22 = vadd.f32 %v1227_v13, %v1197_v12  ;;  %v949_v23 = vadd.f32 %v948_v19, %v643_v17 }
 0x130   : > { %v1615_v24 = vpack.c.bf16 %v957_v18, %v954_v9  ;;  %v1201_v38 = vmul.f32 %v957_v18, %v957_v18 }
 0x131   : > { %v1229_v25 = vadd.f32 %v1228_v22, %v1198_v21  ;;  %v1610_v26 = vpack.c.bf16 %v949_v23, %v946_v14  ;;  %v1160_v27 = vadd.f32 %v1159_v20, %v949_v23  ;;  %v1199_v28 = vmul.f32 %v949_v23, %v949_v23 }
 0x132   : > { %1639 = vst [vmem:[%s2050_s10 + $0x68] sm:$0xff] %v1615_v24   ;;  %v1736_v29 = vpop.f32.mrb[28].mxu1 }
 0x133   : > { %1638 = vst [vmem:[%s2050_s10 + $0x60] sm:$0xff] %v1610_v26   ;;  %v1161_v31 = vadd.f32 %v1160_v27, %v954_v9  ;;  %v1230_v32 = vadd.f32 %v1229_v25, %v1199_v28  ;;  %v1784_v33 = vpop.f32.mrb[28].mxu0  ;;  %v656_v34 = vpop.f32.mrb[29].mxu1 }
 0x134   : > { %v970_v35 = vadd.f32 %v1784_v33, %v1736_v29  ;;  %v961_v36 = vpop.f32.mrb[29].mxu0  ;;  %v1737_v37 = vpop.f32.mrb[30].mxu1 }
 0x135   : > { %v1231_v39 = vadd.f32 %v1230_v32, %v1200_v30  ;;  %v962_v40 = vadd.f32 %v961_v36, %v656_v34  ;;  %v1162_v41 = vadd.f32 %v1161_v31, %v957_v18  ;;  %v1785_v42 = vpop.f32.mrb[30].mxu0  ;;  %v659_v43 = vpop.f32.mrb[31].mxu1 }
 0x136   : > { %v973_v44 = vadd.f32 %v1785_v42, %v1737_v37  ;;  %v964_v45 = vpop.f32.mrb[31].mxu0  ;;  %v1204_v55 = vmul.f32 %v970_v35, %v970_v35 }
 0x137   : > { %v1163_v46 = vadd.f32 %v1162_v41, %v962_v40  ;;  %v1202_v47 = vmul.f32 %v962_v40, %v962_v40  ;;  %v1232_v48 = vadd.f32 %v1231_v39, %v1201_v38  ;;  %v965_v49 = vadd.f32 %v964_v45, %v659_v43 }
 0x138   : > { %v1625_v50 = vpack.c.bf16 %v973_v44, %v970_v35  ;;  %v1205_v58 = vmul.f32 %v973_v44, %v973_v44 }
 0x139   : > { %v1233_v51 = vadd.f32 %v1232_v48, %v1202_v47  ;;  %v1620_v52 = vpack.c.bf16 %v965_v49, %v962_v40  ;;  %v1164_v53 = vadd.f32 %v1163_v46, %v965_v49  ;;  %v1203_v54 = vmul.f32 %v965_v49, %v965_v49 }
 0x13a   : > { %1641 = vst [vmem:[%s2050_s10 + $0x78] sm:$0xff] %v1625_v50  }
 0x13b   : > { %1640 = vst [vmem:[%s2050_s10 + $0x70] sm:$0xff] %v1620_v52   ;;  %v1165_v56 = vadd.f32 %v1164_v53, %v970_v35  ;;  %v1234_v57 = vadd.f32 %v1233_v51, %v1203_v54 }
 0x13d   : > { %v1166_v59 = vadd.f32 %v1165_v56, %v973_v44  ;;  %v1235_v60 = vadd.f32 %v1234_v57, %v1204_v55 }
 0x13f   : > { %v1167_v61 = vrot.slane %v1166_v59, 4  ;;  %v1236_v62 = vadd.f32 %v1235_v60, %v1205_v58 }
 0x141   : > { %v1168_v63 = vadd.f32 %v1167_v61, %v1166_v59  ;;  %v1237_v0 = vrot.slane %v1236_v62, 4 }
 0x143   : > { %v1169_v1 = vrot.slane %v1168_v63, 2  ;;  %v1238_v2 = vadd.f32 %v1237_v0, %v1236_v62 }
 0x145   : > { %v1170_v3 = vadd.f32 %v1169_v1, %v1168_v63  ;;  %v1239_v4 = vrot.slane %v1238_v2, 2 }
 0x147   : > { %v1171_v5 = vrot.slane %v1170_v3, 1  ;;  %v1240_v6 = vadd.f32 %v1239_v4, %v1238_v2 }
 0x149   : > { %v1172_v7 = vadd.f32 %v1171_v5, %v1170_v3  ;;  %v1241_v8 = vrot.slane %v1240_v6, 1 }
 0x14b   : > { %1173 = vst [vmem:[%s261_s13] sm:$0x1] %v1172_v7  ;;  %v1242_v9 = vadd.f32 %v1241_v8, %v1240_v6 }
 0x14d   : > { %1243 = vst [vmem:[%s267_s20] sm:$0x1] %v1242_v9 }
 0x14e PF: > { %s15_s17 = sadd.s32 1, %s1913_s17   ;;  %s2090_s15 = smov %s1909_s16 }
 0x14f   : > { %p12_p5 = scmp.ge.s32.totalorder %s15_s17, 4   ;;  %s2091_s16 = smov %s2093_s18 }
 0x151   :  { %14 = sbr.rel (!%p12_p5) target bundleno = 2 (0x2), region = 86 }

// kernel: discriminator_cycle_forward.10
= control target key start
LH: loop header
LB: loop body
LE: loop exit
PB: predicated region body
PF: predicated region fallthrough
CT: control target
= control target key end

     0   :  { %s915_s12 = smov 0   ;;  %s1050_s0 = inlined_call_operand.vmem [shape: bf16[512,128], index: 0, kind: input, shape index: {}]   ;;  %s1051_s1 = inlined_call_operand.vmem [shape: f32[1,128], index: 1, kind: input, shape index: {}]   ;;  %s1052_s2 = inlined_call_operand.vmem [shape: f32[1,128], index: 2, kind: input, shape index: {}]   ;;  %s1053_s3 = inlined_call_operand.vmem [shape: bf16[512,128], index: 3, kind: output, shape index: {}]  }
   0x1 LB: > { %s628_s13 = sadd.s32 4294967295, %s893_s12   ;;  %p632_p0 = scmp.ge.s32.totalorder %s893_s12, 1  ;;  %s893_s12 = sphi %s915_s12, %s13_s12  }
   0x2   : > { %p138_p1 = scmp.lt.s32.totalorder %s893_s12, 3 }
   0x4   : > { %p139_p2 = pnand %p632_p0, %p138_p1 }
   0x5   : > { %s633_s14 = sshll.u32 (!%p139_p2), %s628_s13, 5  ;;  %v936_v0 = vld [vmem:[%s1051_s1] ss:$0 sm:$0xff] (!%p139_p2) }
   0x6   : > { %142 = sbr.rel (%p139_p2) target bundleno = 76 (0x4c), region = 32  ;;  %p163_p3 = scmp.lt.s32.totalorder (!%p139_p2), %s633_s14, 63  ;;  %v945_v9 = vld [vmem:[%s1052_s2] ss:$0 sm:$0xff] (!%p139_p2) }
   0xd   : > { %s1055_s14 = smov (!%p163_p3, %s633_s14), 63 }
   0xe   : > { %s634_s15 = sshll.u32 %s1055_s14, 2 }
   0xf   : > { %s931_s18 = scalar_lea.vmem %s1050_s0, %s634_s15  ;;  %s968_s25 = scalar_lea.vmem %s1053_s3, %s634_s15 }
  0x10   : > { %v706_v1 = vld [vmem:[%s931_s18] sm:$0xff]   ;;  %v849_v2 = vld [vmem:[%s931_s18 + $0x8] sm:$0xff]   ;;  %v850_v3 = vld [vmem:[%s931_s18 + $0x10] sm:$0xff]  }
  0x11   : > { %v707_v4 = vunpack.c.l.bf16 %v706_v1  ;;  %v708_v5 = vunpack.c.h.bf16 %v706_v1  ;;  %v711_v6 = vunpack.c.l.bf16 %v849_v2  ;;  %v712_v7 = vunpack.c.h.bf16 %v849_v2  ;;  %v851_v8 = vld [vmem:[%s931_s18 + $0x18] sm:$0xff]   ;;  %v852_v36 = vld [vmem:[%s931_s18 + $0x20] sm:$0xff]   ;;  %v853_v41 = vld [vmem:[%s931_s18 + $0x28] sm:$0xff]  }
  0x12   : > { %v715_v10 = vunpack.c.l.bf16 %v850_v3  ;;  %v716_v11 = vunpack.c.h.bf16 %v850_v3  ;;  %v719_v12 = vunpack.c.l.bf16 %v851_v8  ;;  %v720_v13 = vunpack.c.h.bf16 %v851_v8  ;;  %v854_v52 = vld [vmem:[%s931_s18 + $0x30] sm:$0xff]   ;;  %v855_v53 = vld [vmem:[%s931_s18 + $0x38] sm:$0xff]  }
  0x13   : > { %v245_v14 = vmul.f32 %v707_v4, %v936_v0  ;;  %v246_v15 = vmul.f32 %v708_v5, %v936_v0  ;;  %v247_v16 = vmul.f32 %v711_v6, %v936_v0  ;;  %v248_v17 = vmul.f32 %v712_v7, %v936_v0 }
  0x14   : > { %v249_v18 = vmul.f32 %v715_v10, %v936_v0  ;;  %v250_v19 = vmul.f32 %v716_v11, %v936_v0  ;;  %v251_v20 = vmul.f32 %v719_v12, %v936_v0  ;;  %v252_v21 = vmul.f32 %v720_v13, %v936_v0 }
  0x15   : > { %v284_v22 = vadd.f32 %v945_v9, %v245_v14  ;;  %v285_v23 = vadd.f32 %v945_v9, %v246_v15  ;;  %v286_v24 = vadd.f32 %v945_v9, %v247_v16  ;;  %v287_v25 = vadd.f32 %v945_v9, %v248_v17 }
  0x16   : > { %v288_v26 = vadd.f32 %v945_v9, %v249_v18  ;;  %v289_v27 = vadd.f32 %v945_v9, %v250_v19  ;;  %v290_v28 = vadd.f32 %v945_v9, %v251_v20  ;;  %v291_v29 = vadd.f32 %v945_v9, %v252_v21  ;;  %v856_v20 = vld [vmem:[%s931_s18 + $0x40] sm:$0xff]  }
  0x17   : > { %vm316_vm0 = vcmp.ge.f32.partialorder %v284_v22, 0.0  ;;  %vm317_vm1 = vcmp.ge.f32.partialorder %v285_v23, 0.0  ;;  %v348_v30 = vmul.f32 0.2, %v284_v22  ;;  %v349_v31 = vmul.f32 0.2, %v285_v23 }
  0x18   : > { %vm318_vm2 = vcmp.ge.f32.partialorder %v286_v24, 0.0  ;;  %vm319_vm3 = vcmp.ge.f32.partialorder %v287_v25, 0.0  ;;  %v350_v32 = vmul.f32 0.2, %v286_v24  ;;  %v351_v33 = vmul.f32 0.2, %v287_v25 }
  0x19   : > { %v380_v34 = vsel %vm316_vm0, %v284_v22, %v348_v30  ;;  %v381_v35 = vsel %vm317_vm1, %v285_v23, %v349_v31  ;;  %vm320_vm4 = vcmp.ge.f32.partialorder %v288_v26, 0.0  ;;  %vm321_vm5 = vcmp.ge.f32.partialorder %v289_v27, 0.0 }
  0x1a   : > { %v772_v37 = vpack.c.bf16 %v381_v35, %v380_v34  ;;  %v382_v38 = vsel %vm318_vm2, %v286_v24, %v350_v32  ;;  %v383_v39 = vsel %vm319_vm3, %v287_v25, %v351_v33  ;;  %v352_v40 = vmul.f32 0.2, %v288_v26  ;;  %v857_v24 = vld [vmem:[%s931_s18 + $0x48] sm:$0xff]  }
  0x1b   : > { %v777_v42 = vpack.c.bf16 %v383_v39, %v382_v38  ;;  %v353_v43 = vmul.f32 0.2, %v289_v27  ;;  %vm322_vm6 = vcmp.ge.f32.partialorder %v290_v28, 0.0  ;;  %vm323_vm7 = vcmp.ge.f32.partialorder %v291_v29, 0.0 }
  0x1c   : > { %773 = vst [vmem:[%s968_s25] sm:$0xff] %v772_v37   ;;  %v384_v44 = vsel %vm320_vm4, %v288_v26, %v352_v40  ;;  %v354_v45 = vmul.f32 0.2, %v290_v28  ;;  %v355_v46 = vmul.f32 0.2, %v291_v29  ;;  %v723_v47 = vunpack.c.l.bf16 %v852_v36 }
  0x1d   : > { %864 = vst [vmem:[%s968_s25 + $0x8] sm:$0xff] %v777_v42   ;;  %v385_v48 = vsel %vm321_vm5, %v289_v27, %v353_v43  ;;  %v724_v49 = vunpack.c.h.bf16 %v852_v36  ;;  %v727_v50 = vunpack.c.l.bf16 %v853_v41  ;;  %v728_v51 = vunpack.c.h.bf16 %v853_v41  ;;  %v858_v36 = vld [vmem:[%s931_s18 + $0x50] sm:$0xff]  }
  0x1e   : > { %v782_v54 = vpack.c.bf16 %v385_v48, %v384_v44  ;;  %v386_v55 = vsel %vm322_vm6, %v290_v28, %v354_v45  ;;  %v387_v56 = vsel %vm323_vm7, %v291_v29, %v355_v46  ;;  %v253_v57 = vmul.f32 %v723_v47, %v936_v0 }
  0x1f   : > { %v787_v58 = vpack.c.bf16 %v387_v56, %v386_v55  ;;  %v254_v59 = vmul.f32 %v724_v49, %v936_v0  ;;  %v255_v60 = vmul.f32 %v727_v50, %v936_v0  ;;  %v256_v61 = vmul.f32 %v728_v51, %v936_v0  ;;  %v859_v55 = vld [vmem:[%s931_s18 + $0x58] sm:$0xff]  }
  0x20   : > { %865 = vst [vmem:[%s968_s25 + $0x10] sm:$0xff] %v782_v54   ;;  %v292_v62 = vadd.f32 %v945_v9, %v253_v57  ;;  %v731_v63 = vunpack.c.l.bf16 %v854_v52  ;;  %v732_v1 = vunpack.c.h.bf16 %v854_v52  ;;  %v735_v2 = vunpack.c.l.bf16 %v855_v53 }
  0x21   : > { %866 = vst [vmem:[%s968_s25 + $0x18] sm:$0xff] %v787_v58   ;;  %v293_v3 = vadd.f32 %v945_v9, %v254_v59  ;;  %v294_v4 = vadd.f32 %v945_v9, %v255_v60  ;;  %v295_v5 = vadd.f32 %v945_v9, %v256_v61  ;;  %v736_v6 = vunpack.c.h.bf16 %v855_v53 }
  0x22   : > { %vm324_vm8 = vcmp.ge.f32.partialorder %v292_v62, 0.0  ;;  %v356_v7 = vmul.f32 0.2, %v292_v62  ;;  %v257_v8 = vmul.f32 %v731_v63, %v936_v0  ;;  %v258_v10 = vmul.f32 %v732_v1, %v936_v0  ;;  %v860_v1 = vld [vmem:[%s931_s18 + $0x60] sm:$0xff]  }
  0x23   : > { %vm325_vm9 = vcmp.ge.f32.partialorder %v293_v3, 0.0  ;;  %v357_v11 = vmul.f32 0.2, %v293_v3  ;;  %vm326_vm10 = vcmp.ge.f32.partialorder %v294_v4, 0.0  ;;  %vm327_vm11 = vcmp.ge.f32.partialorder %v295_v5, 0.0 }
  0x24   : > { %v388_v12 = vsel %vm324_vm8, %v292_v62, %v356_v7  ;;  %v358_v13 = vmul.f32 0.2, %v294_v4  ;;  %v359_v14 = vmul.f32 0.2, %v295_v5  ;;  %v296_v15 = vadd.f32 %v945_v9, %v257_v8 }
  0x25   : > { %v389_v16 = vsel %vm325_vm9, %v293_v3, %v357_v11  ;;  %v297_v17 = vadd.f32 %v945_v9, %v258_v10  ;;  %v259_v18 = vmul.f32 %v735_v2, %v936_v0  ;;  %v260_v19 = vmul.f32 %v736_v6, %v936_v0  ;;  %v861_v6 = vld [vmem:[%s931_s18 + $0x68] sm:$0xff]  }
  0x26   : > { %v792_v21 = vpack.c.bf16 %v389_v16, %v388_v12  ;;  %v390_v22 = vsel %vm326_vm10, %v294_v4, %v358_v13  ;;  %v391_v23 = vsel %vm327_vm11, %v295_v5, %v359_v14  ;;  %vm328_vm12 = vcmp.ge.f32.partialorder %v296_v15, 0.0 }
  0x27   : > { %v797_v25 = vpack.c.bf16 %v391_v23, %v390_v22  ;;  %vm329_vm13 = vcmp.ge.f32.partialorder %v297_v17, 0.0  ;;  %v360_v26 = vmul.f32 0.2, %v296_v15  ;;  %v361_v27 = vmul.f32 0.2, %v297_v17  ;;  %v862_v22 = vld [vmem:[%s931_s18 + $0x70] sm:$0xff]  }
  0x28   : > { %867 = vst [vmem:[%s968_s25 + $0x20] sm:$0xff] %v792_v21   ;;  %v298_v28 = vadd.f32 %v945_v9, %v259_v18  ;;  %v299_v29 = vadd.f32 %v945_v9, %v260_v19  ;;  %v739_v30 = vunpack.c.l.bf16 %v856_v20  ;;  %v740_v31 = vunpack.c.h.bf16 %v856_v20 }
  0x29   : > { %868 = vst [vmem:[%s968_s25 + $0x28] sm:$0xff] %v797_v25   ;;  %v392_v32 = vsel %vm328_vm12, %v296_v15, %v360_v26  ;;  %v393_v33 = vsel %vm329_vm13, %v297_v17, %v361_v27  ;;  %v743_v34 = vunpack.c.l.bf16 %v857_v24  ;;  %v744_v35 = vunpack.c.h.bf16 %v857_v24 }
  0x2a   : > { %v802_v37 = vpack.c.bf16 %v393_v33, %v392_v32  ;;  %vm330_vm14 = vcmp.ge.f32.partialorder %v298_v28, 0.0  ;;  %vm331_vm15 = vcmp.ge.f32.partialorder %v299_v29, 0.0  ;;  %v362_v38 = vmul.f32 0.2, %v298_v28 }
  0x2b   : > { %v363_v39 = vmul.f32 0.2, %v299_v29  ;;  %v261_v40 = vmul.f32 %v739_v30, %v936_v0  ;;  %v262_v41 = vmul.f32 %v740_v31, %v936_v0  ;;  %v263_v42 = vmul.f32 %v743_v34, %v936_v0 }
  0x2c   : > { %869 = vst [vmem:[%s968_s25 + $0x30] sm:$0xff] %v802_v37   ;;  %v394_v43 = vsel %vm330_vm14, %v298_v28, %v362_v38  ;;  %v264_v44 = vmul.f32 %v744_v35, %v936_v0  ;;  %v747_v45 = vunpack.c.l.bf16 %v858_v36  ;;  %v748_v46 = vunpack.c.h.bf16 %v858_v36 }
  0x2d   : > { %v395_v47 = vsel %vm331_vm15, %v299_v29, %v363_v39  ;;  %v300_v48 = vadd.f32 %v945_v9, %v261_v40  ;;  %v301_v49 = vadd.f32 %v945_v9, %v262_v41  ;;  %v302_v50 = vadd.f32 %v945_v9, %v263_v42  ;;  %v863_v41 = vld [vmem:[%s931_s18 + $0x78] sm:$0xff]  }
  0x2e   : > { %v807_v51 = vpack.c.bf16 %v395_v47, %v394_v43  ;;  %v303_v52 = vadd.f32 %v945_v9, %v264_v44  ;;  %v265_v53 = vmul.f32 %v747_v45, %v936_v0  ;;  %v266_v54 = vmul.f32 %v748_v46, %v936_v0 }
  0x2f   : > { %vm332_vm0 = vcmp.ge.f32.partialorder %v300_v48, 0.0  ;;  %vm333_vm1 = vcmp.ge.f32.partialorder %v301_v49, 0.0  ;;  %v364_v56 = vmul.f32 0.2, %v300_v48  ;;  %v365_v57 = vmul.f32 0.2, %v301_v49 }
  0x30   : > { %870 = vst [vmem:[%s968_s25 + $0x38] sm:$0xff] %v807_v51   ;;  %vm334_vm2 = vcmp.ge.f32.partialorder %v302_v50, 0.0  ;;  %vm335_vm3 = vcmp.ge.f32.partialorder %v303_v52, 0.0  ;;  %v366_v58 = vmul.f32 0.2, %v302_v50  ;;  %v304_v62 = vadd.f32 %v945_v9, %v265_v53 }
  0x31   : > { %v367_v59 = vmul.f32 0.2, %v303_v52  ;;  %v396_v60 = vsel %vm332_vm0, %v300_v48, %v364_v56  ;;  %v397_v61 = vsel %vm333_vm1, %v301_v49, %v365_v57  ;;  %v305_v63 = vadd.f32 %v945_v9, %v266_v54 }
  0x32   : > { %v812_v2 = vpack.c.bf16 %v397_v61, %v396_v60  ;;  %v398_v3 = vsel %vm334_vm2, %v302_v50, %v366_v58  ;;  %v751_v5 = vunpack.c.l.bf16 %v859_v55  ;;  %vm336_vm4 = vcmp.ge.f32.partialorder %v304_v62, 0.0 }
  0x33   : > { %v399_v4 = vsel %vm335_vm3, %v303_v52, %v367_v59  ;;  %vm337_vm5 = vcmp.ge.f32.partialorder %v305_v63, 0.0  ;;  %v368_v8 = vmul.f32 0.2, %v304_v62  ;;  %v369_v10 = vmul.f32 0.2, %v305_v63 }
  0x34   : > { %v817_v7 = vpack.c.bf16 %v399_v4, %v398_v3  ;;  %871 = vst [vmem:[%s968_s25 + $0x40] sm:$0xff] %v812_v2   ;;  %v752_v11 = vunpack.c.h.bf16 %v859_v55  ;;  %v267_v12 = vmul.f32 %v751_v5, %v936_v0  ;;  %v755_v13 = vunpack.c.l.bf16 %v860_v1 }
  0x35   : > { %v400_v14 = vsel %vm336_vm4, %v304_v62, %v368_v8  ;;  %v756_v15 = vunpack.c.h.bf16 %v860_v1  ;;  %v759_v16 = vunpack.c.l.bf16 %v861_v6  ;;  %v760_v17 = vunpack.c.h.bf16 %v861_v6 }
  0x36   : > { %872 = vst [vmem:[%s968_s25 + $0x48] sm:$0xff] %v817_v7   ;;  %v401_v18 = vsel %vm337_vm5, %v305_v63, %v369_v10  ;;  %v268_v19 = vmul.f32 %v752_v11, %v936_v0  ;;  %v306_v20 = vadd.f32 %v945_v9, %v267_v12  ;;  %v269_v21 = vmul.f32 %v755_v13, %v936_v0 }
  0x37   : > { %v822_v23 = vpack.c.bf16 %v401_v18, %v400_v14  ;;  %v270_v24 = vmul.f32 %v756_v15, %v936_v0  ;;  %v271_v25 = vmul.f32 %v759_v16, %v936_v0  ;;  %v272_v26 = vmul.f32 %v760_v17, %v936_v0 }
  0x38   : > { %v307_v27 = vadd.f32 %v945_v9, %v268_v19  ;;  %vm338_vm6 = vcmp.ge.f32.partialorder %v306_v20, 0.0  ;;  %v370_v28 = vmul.f32 0.2, %v306_v20  ;;  %v308_v29 = vadd.f32 %v945_v9, %v269_v21 }
  0x39   : > { %873 = vst [vmem:[%s968_s25 + $0x50] sm:$0xff] %v822_v23   ;;  %v309_v30 = vadd.f32 %v945_v9, %v270_v24  ;;  %v310_v31 = vadd.f32 %v945_v9, %v271_v25  ;;  %v311_v32 = vadd.f32 %v945_v9, %v272_v26  ;;  %v763_v33 = vunpack.c.l.bf16 %v862_v22 }
  0x3a   : > { %vm339_vm7 = vcmp.ge.f32.partialorder %v307_v27, 0.0  ;;  %v371_v34 = vmul.f32 0.2, %v307_v27  ;;  %v402_v35 = vsel %vm338_vm6, %v306_v20, %v370_v28  ;;  %vm340_vm8 = vcmp.ge.f32.partialorder %v308_v29, 0.0 }
  0x3b   : > { %vm341_vm9 = vcmp.ge.f32.partialorder %v309_v30, 0.0  ;;  %v372_v36 = vmul.f32 0.2, %v308_v29  ;;  %v373_v37 = vmul.f32 0.2, %v309_v30  ;;  %vm342_vm10 = vcmp.ge.f32.partialorder %v310_v31, 0.0 }
  0x3c   : > { %v403_v38 = vsel %vm339_vm7, %v307_v27, %v371_v34  ;;  %vm343_vm11 = vcmp.ge.f32.partialorder %v311_v32, 0.0  ;;  %v374_v39 = vmul.f32 0.2, %v310_v31  ;;  %v375_v40 = vmul.f32 0.2, %v311_v32 }
  0x3d   : > { %v827_v42 = vpack.c.bf16 %v403_v38, %v402_v35  ;;  %v404_v43 = vsel %vm340_vm8, %v308_v29, %v372_v36  ;;  %v405_v44 = vsel %vm341_vm9, %v309_v30, %v373_v37  ;;  %v764_v45 = vunpack.c.h.bf16 %v862_v22 }
  0x3e   : > { %v832_v46 = vpack.c.bf16 %v405_v44, %v404_v43  ;;  %v406_v47 = vsel %vm342_vm10, %v310_v31, %v374_v39  ;;  %v407_v48 = vsel %vm343_vm11, %v311_v32, %v375_v40  ;;  %v273_v49 = vmul.f32 %v763_v33, %v936_v0 }
  0x3f   : > { %874 = vst [vmem:[%s968_s25 + $0x58] sm:$0xff] %v827_v42   ;;  %v837_v50 = vpack.c.bf16 %v407_v48, %v406_v47  ;;  %v274_v51 = vmul.f32 %v764_v45, %v936_v0  ;;  %v767_v52 = vunpack.c.l.bf16 %v863_v41  ;;  %v768_v53 = vunpack.c.h.bf16 %v863_v41 }
  0x40   : > { %875 = vst [vmem:[%s968_s25 + $0x60] sm:$0xff] %v832_v46   ;;  %v312_v54 = vadd.f32 %v945_v9, %v273_v49 }
  0x41   : > { %876 = vst [vmem:[%s968_s25 + $0x68] sm:$0xff] %v837_v50   ;;  %v313_v55 = vadd.f32 %v945_v9, %v274_v51  ;;  %v275_v56 = vmul.f32 %v767_v52, %v936_v0  ;;  %v276_v57 = vmul.f32 %v768_v53, %v936_v0 }
  0x42   : > { %vm344_vm12 = vcmp.ge.f32.partialorder %v312_v54, 0.0  ;;  %v376_v58 = vmul.f32 0.2, %v312_v54 }
  0x43   : > { %vm345_vm13 = vcmp.ge.f32.partialorder %v313_v55, 0.0  ;;  %v377_v59 = vmul.f32 0.2, %v313_v55  ;;  %v314_v60 = vadd.f32 %v945_v9, %v275_v56  ;;  %v315_v61 = vadd.f32 %v945_v9, %v276_v57 }
  0x44   : > { %v408_v62 = vsel %vm344_vm12, %v312_v54, %v376_v58 }
  0x45   : > { %v409_v63 = vsel %vm345_vm13, %v313_v55, %v377_v59  ;;  %vm346_vm14 = vcmp.ge.f32.partialorder %v314_v60, 0.0  ;;  %vm347_vm15 = vcmp.ge.f32.partialorder %v315_v61, 0.0  ;;  %v378_v1 = vmul.f32 0.2, %v314_v60 }
  0x46   : > { %v842_v2 = vpack.c.bf16 %v409_v63, %v408_v62  ;;  %v379_v3 = vmul.f32 0.2, %v315_v61 }
  0x47   : > { %v410_v4 = vsel %vm346_vm14, %v314_v60, %v378_v1 }
  0x48   : > { %877 = vst [vmem:[%s968_s25 + $0x70] sm:$0xff] %v842_v2   ;;  %v411_v5 = vsel %vm347_vm15, %v315_v61, %v379_v3 }
  0x49   : > { %v847_v0 = vpack.c.bf16 %v411_v5, %v410_v4 }
  0x4b   : > { %878 = vst [vmem:[%s968_s25 + $0x78] sm:$0xff] %v847_v0  }
  0x4c PF: > { %s13_s12 = sadd.s32 1, %s893_s12  }
  0x4d   : > { %p10_p4 = scmp.ge.s32.totalorder %s13_s12, 4  }
  0x4f   :  { %12 = sbr.rel (!%p10_p4) target bundleno = 1 (0x1), region = 62 }

// kernel: discriminator_cycle_forward.11
= control target key start
LH: loop header
LB: loop body
LE: loop exit
PB: predicated region body
PF: predicated region fallthrough
CT: control target
= control target key end

     0   :  { %s846_s15 = smov 0   ;;  %s942_s0 = inlined_call_operand.vmem [shape: bf16[128,256], index: 0, kind: input, shape index: {}]   ;;  %s943_s1 = inlined_call_operand.vmem [shape: bf16[256,128], index: 1, kind: input, shape index: {}]   ;;  %s944_s2 = inlined_call_operand.vmem [shape: bf16[128,128], index: 2, kind: output, shape index: {0}]   ;;  %s945_s3 = inlined_call_operand.vmem [shape: f32[2,1,128], index: 3, kind: output, shape index: {1}]   ;;  %s946_s4 = inlined_call_operand.vmem [shape: f32[2,1,128], index: 4, kind: output, shape index: {2}]  }
   0x1 LB: > { %s852_s16 = sadd.s32 4294967295, %s819_s15   ;;  %p649_p0 = scmp.ge.s32.totalorder %s819_s15, 1  ;;  %s819_s15 = sphi %s846_s15, %s15_s15  }
   0x2   : > { %p169_p1 = scmp.lt.s32.totalorder %s819_s15, 3 }
   0x4   : > { %p170_p2 = pnand %p649_p0, %p169_p1 }
   0x5   : > { %v785_v0 = vld [vmem:[%s943_s1 + $0x40] sm:$0xff] (!%p170_p2)   ;;  %s650_s19 = sshll.u32 (!%p170_p2), %s852_s16, 3  ;;  %v787_v2 = vld [vmem:[%s943_s1 + $0x48] sm:$0xff] (!%p170_p2)   ;;  %v789_v4 = vld [vmem:[%s943_s1 + $0x50] sm:$0xff] (!%p170_p2)   ;;  %p215_p4 = scmp.lt.s32.totalorder (!%p170_p2), %s852_s16, 1 }
   0x6   : > { %173 = sbr.rel (%p170_p2) target bundleno = 288 (0x120), region = 28  ;;  %v786_v1 = vld [vmem:[%s943_s1] sm:$0xff] (!%p170_p2)   ;;  %721 = vmatprep.subr.bf16.mxu0 (!%p170_p2), %v785_v0  ;;  %761 = vmatprep.subr.bf16.mxu1 (!%p170_p2), %v785_v0  ;;  %v788_v3 = vld [vmem:[%s943_s1 + $0x8] sm:$0xff] (!%p170_p2)   ;;  %p203_p3 = scmp.lt.s32.totalorder (!%p170_p2), %s650_s19, 15  ;;  %v790_v5 = vld [vmem:[%s943_s1 + $0x10] sm:$0xff] (!%p170_p2)  }
   0x7   : > { %722 = vmatpush3.bf16.msra.mxu0 (!%p170_p2), %v786_v1  ;;  %769 = vmatpush3.bf16.msra.mxu1 (!%p170_p2), %v786_v1  ;;  %v791_v6 = vld [vmem:[%s943_s1 + $0x58] sm:$0xff] (!%p170_p2)   ;;  %v793_v8 = vld [vmem:[%s943_s1 + $0x60] sm:$0xff] (!%p170_p2)   ;;  %v795_v10 = vld [vmem:[%s943_s1 + $0x68] sm:$0xff] (!%p170_p2)  }
   0x8   : > { %723 = vmatprep.subr.bf16.mxu0 (!%p170_p2), %v787_v2  ;;  %762 = vmatprep.subr.bf16.mxu1 (!%p170_p2), %v787_v2  ;;  %v792_v7 = vld [vmem:[%s943_s1 + $0x18] sm:$0xff] (!%p170_p2)   ;;  %v794_v9 = vld [vmem:[%s943_s1 + $0x20] sm:$0xff] (!%p170_p2)   ;;  %v796_v13 = vld [vmem:[%s943_s1 + $0x28] sm:$0xff] (!%p170_p2)  }
   0x9   : > { %v797_v14 = vld [vmem:[%s943_s1 + $0x70] sm:$0xff] (!%p170_p2)   ;;  %v799_v16 = vld [vmem:[%s943_s1 + $0x78] sm:$0xff] (!%p170_p2)  }
   0xa   : > { %v798_v15 = vld [vmem:[%s943_s1 + $0x30] sm:$0xff] (!%p170_p2)   ;;  %v800_v17 = vld [vmem:[%s943_s1 + $0x38] sm:$0xff] (!%p170_p2)  }
   0xb   : > { %724 = vmatpush3.bf16.msra.mxu0 (!%p170_p2), %v788_v3  ;;  %770 = vmatpush3.bf16.msra.mxu1 (!%p170_p2), %v788_v3 }
   0xc   : > { %725 = vmatprep.subr.bf16.mxu0 (!%p170_p2), %v789_v4  ;;  %763 = vmatprep.subr.bf16.mxu1 (!%p170_p2), %v789_v4 }
   0xd   : > { %s948_s19 = smov (!%p203_p3, %s650_s19), 15  ;;  %s950_s16 = smov (!%p215_p4, %s852_s16), 1 }
   0xe   : > { %s689_s8 = sshll.u32 %s948_s19, 3  ;;  %s654_s5 = sshll.u32 %s948_s19, 2 }
   0xf   : > { %726 = vmatpush3.bf16.msra.mxu0 %v790_v5  ;;  %771 = vmatpush3.bf16.msra.mxu1 %v790_v5  ;;  %s890_s13 = scalar_lea.vmem %s942_s0, %s689_s8  ;;  %s925_s8 = scalar_lea.vmem %s944_s2, %s654_s5 }
  0x10   : > { %727 = vmatprep.subr.bf16.mxu0 %v791_v6  ;;  %764 = vmatprep.subr.bf16.mxu1 %v791_v6  ;;  %v803_v11 = vld [vmem:[%s890_s13 + $0x4] ss:$8 sps:$4 sm:$0xff]   ;;  %v801_v18 = vld [vmem:[%s890_s13] ss:$8 sps:$4 sm:$0xff]   ;;  %v807_v20 = vld [vmem:[%s890_s13 + $0x14] ss:$8 sps:$4 sm:$0xff]   ;;  %s217_s10 = scalar_lea.vmem %s945_s3, %s950_s16 }
  0x11   : > { %v806_v12 = vld [vmem:[%s890_s13 + $0x24] ss:$8 sps:$4 sm:$0xff]   ;;  %430 = vmatprep.mubr.bf16.mxu0 %v803_v11  ;;  %v804_v19 = vld [vmem:[%s890_s13 + $0x20] ss:$8 sps:$4 sm:$0xff]   ;;  %v810_v21 = vld [vmem:[%s890_s13 + $0x34] ss:$8 sps:$4 sm:$0xff]  }
  0x12   : > { %446 = vmatprep.mubr.bf16.mxu1 %v806_v12  ;;  %v809_v22 = vld [vmem:[%s890_s13 + $0x10] ss:$8 sps:$4 sm:$0xff]  }
  0x13   : > { %728 = vmatpush3.bf16.msra.mxu0 %v792_v7  ;;  %772 = vmatpush3.bf16.msra.mxu1 %v792_v7  ;;  %v812_v23 = vld [vmem:[%s890_s13 + $0x30] ss:$8 sps:$4 sm:$0xff]   ;;  %s220_s13 = scalar_lea.vmem %s946_s4, %s950_s16 }
  0x14   : > { %729 = vmatprep.subr.bf16.mxu0 %v793_v8  ;;  %765 = vmatprep.subr.bf16.mxu1 %v793_v8 }
  0x17   : > { %730 = vmatpush3.bf16.msra.mxu0 %v794_v9  ;;  %773 = vmatpush3.bf16.msra.mxu1 %v794_v9 }
  0x18   : > { %731 = vmatprep.subr.bf16.mxu0 %v795_v10  ;;  %766 = vmatprep.subr.bf16.mxu1 %v795_v10 }
  0x1b   : > { %732 = vmatpush3.bf16.msra.mxu0 %v796_v13  ;;  %774 = vmatpush3.bf16.msra.mxu1 %v796_v13 }
  0x1c   : > { %733 = vmatprep.subr.bf16.mxu0 %v797_v14  ;;  %767 = vmatprep.subr.bf16.mxu1 %v797_v14 }
  0x1f   : > { %734 = vmatpush3.bf16.msra.mxu0 %v798_v15  ;;  %775 = vmatpush3.bf16.msra.mxu1 %v798_v15 }
  0x20   : > { %735 = vmatprep.subr.bf16.mxu0 %v799_v16  ;;  %768 = vmatprep.subr.bf16.mxu1 %v799_v16 }
  0x23   : > { %736 = vmatpush3.bf16.msra.mxu0 %v800_v17  ;;  %776 = vmatpush3.bf16.msra.mxu1 %v800_v17 }
  0x26   : > { %431 = vmatmul.mubr.bf16.vlgmr.msra.gmra.mrb[0].mxu0 %v801_v18  ;;  %447 = vmatmul.mubr.bf16.vlgmr.msra.gmra.mrb[0].mxu1 %v804_v19 }
  0x27   : > { %438 = vmatprep.mubr.bf16.mxu0 %v807_v20  ;;  %454 = vmatprep.mubr.bf16.mxu1 %v810_v21 }
  0x2e   : > { %439 = vmatmul.mubr.bf16.gmra.mrb[4].mxu0 %v809_v22  ;;  %455 = vmatmul.mubr.bf16.gmra.mrb[4].mxu1 %v812_v23 }
  0xf9   : > { %v737_v24 = vpop.f32.mrb[0].mxu0  ;;  %v749_v25 = vpop.f32.mrb[0].mxu1 }
  0xfa   : > { %v738_v26 = vpop.f32.mrb[1].mxu0  ;;  %v750_v27 = vpop.f32.mrb[1].mxu1 }
  0xfb   : > { %v739_v28 = vadd.f32 %v738_v26, %v737_v24  ;;  %v740_v29 = vpop.f32.mrb[2].mxu0  ;;  %v751_v30 = vadd.f32 %v750_v27, %v749_v25  ;;  %v752_v31 = vpop.f32.mrb[2].mxu1 }
  0xfc   : > { %v741_v32 = vpop.f32.mrb[3].mxu0  ;;  %v753_v33 = vpop.f32.mrb[3].mxu1 }
  0xfd   : > { %v742_v34 = vadd.f32 %v741_v32, %v740_v29  ;;  %v754_v35 = vadd.f32 %v753_v33, %v752_v31  ;;  %v517_v36 = vmul.f32 %v739_v28, %v739_v28  ;;  %v521_v61 = vmul.f32 %v751_v30, %v751_v30 }
  0xff   : > { %v701_v37 = vpack.c.bf16 %v742_v34, %v739_v28  ;;  %v503_v38 = vadd.f32 %v742_v34, %v739_v28  ;;  %v518_v39 = vmul.f32 %v742_v34, %v742_v34  ;;  %v711_v40 = vpack.c.bf16 %v754_v35, %v751_v30 }
 0x100   : > { %v522_v0 = vmul.f32 %v754_v35, %v754_v35 }
 0x101   : > { %702 = vst [vmem:[%s925_s8] sm:$0xff] %v701_v37   ;;  %v525_v41 = vadd.f32 %v518_v39, %v517_v36  ;;  %v743_v42 = vpop.f32.mrb[4].mxu0  ;;  %719 = vst [vmem:[%s925_s8 + $0x10] sm:$0xff] %v711_v40   ;;  %v755_v43 = vpop.f32.mrb[4].mxu1 }
 0x102   : > { %v744_v44 = vpop.f32.mrb[5].mxu0  ;;  %v756_v45 = vpop.f32.mrb[5].mxu1 }
 0x103   : > { %v745_v46 = vadd.f32 %v744_v44, %v743_v42  ;;  %v746_v47 = vpop.f32.mrb[6].mxu0  ;;  %v757_v48 = vadd.f32 %v756_v45, %v755_v43  ;;  %v758_v49 = vpop.f32.mrb[6].mxu1 }
 0x104   : > { %v747_v50 = vpop.f32.mrb[7].mxu0  ;;  %v759_v51 = vpop.f32.mrb[7].mxu1 }
 0x105   : > { %v504_v52 = vadd.f32 %v745_v46, %v503_v38  ;;  %v519_v53 = vmul.f32 %v745_v46, %v745_v46  ;;  %v748_v54 = vadd.f32 %v747_v50, %v746_v47  ;;  %v760_v55 = vadd.f32 %v759_v51, %v758_v49 }
 0x106   : > { %v523_v3 = vmul.f32 %v757_v48, %v757_v48 }
 0x107   : > { %v526_v56 = vadd.f32 %v525_v41, %v519_v53  ;;  %v706_v57 = vpack.c.bf16 %v748_v54, %v745_v46  ;;  %v505_v58 = vadd.f32 %v748_v54, %v504_v52  ;;  %v520_v59 = vmul.f32 %v748_v54, %v748_v54 }
 0x108   : > { %v716_v60 = vpack.c.bf16 %v760_v55, %v757_v48  ;;  %v524_v8 = vmul.f32 %v760_v55, %v760_v55 }
 0x109   : > { %718 = vst [vmem:[%s925_s8 + $0x8] sm:$0xff] %v706_v57   ;;  %v506_v62 = vadd.f32 %v751_v30, %v505_v58  ;;  %v527_v63 = vadd.f32 %v526_v56, %v520_v59 }
 0x10a   : > { %720 = vst [vmem:[%s925_s8 + $0x18] sm:$0xff] %v716_v60  }
 0x10b   : > { %v528_v1 = vadd.f32 %v527_v63, %v521_v61  ;;  %v507_v2 = vadd.f32 %v754_v35, %v506_v62 }
 0x10d   : > { %v508_v4 = vadd.f32 %v757_v48, %v507_v2  ;;  %v529_v5 = vadd.f32 %v528_v1, %v522_v0 }
 0x10f   : > { %v530_v6 = vadd.f32 %v529_v5, %v523_v3  ;;  %v509_v7 = vadd.f32 %v760_v55, %v508_v4 }
 0x111   : > { %v510_v9 = vrot.slane %v509_v7, 4  ;;  %v531_v10 = vadd.f32 %v530_v6, %v524_v8 }
 0x113   : > { %v511_v11 = vadd.f32 %v510_v9, %v509_v7  ;;  %v532_v12 = vrot.slane %v531_v10, 4 }
 0x115   : > { %v512_v13 = vrot.slane %v511_v11, 2  ;;  %v533_v14 = vadd.f32 %v532_v12, %v531_v10 }
 0x117   : > { %v513_v15 = vadd.f32 %v512_v13, %v511_v11  ;;  %v534_v16 = vrot.slane %v533_v14, 2 }
 0x119   : > { %v514_v17 = vrot.slane %v513_v15, 1  ;;  %v535_v18 = vadd.f32 %v534_v16, %v533_v14 }
 0x11b   : > { %v515_v19 = vadd.f32 %v514_v17, %v513_v15  ;;  %v536_v20 = vrot.slane %v535_v18, 1 }
 0x11d   : > { %516 = vst [vmem:[%s217_s10] sm:$0x1] %v515_v19  ;;  %v537_v21 = vadd.f32 %v536_v20, %v535_v18 }
 0x11f   : > { %538 = vst [vmem:[%s220_s13] sm:$0x1] %v537_v21 }
 0x120 PF: > { %s15_s15 = sadd.s32 1, %s819_s15  }
 0x121   : > { %p12_p5 = scmp.ge.s32.totalorder %s15_s15, 4  }
 0x123   :  { %14 = sbr.rel (!%p12_p5) target bundleno = 1 (0x1), region = 82 }

// kernel: discriminator_cycle_forward.12
= control target key start
LH: loop header
LB: loop body
LE: loop exit
PB: predicated region body
PF: predicated region fallthrough
CT: control target
= control target key end

     0   :  { %s447_s12 = smov 0   ;;  %s477_s0 = inlined_call_operand.vmem [shape: bf16[128,128], index: 0, kind: input, shape index: {}]   ;;  %s478_s1 = inlined_call_operand.vmem [shape: f32[1,128], index: 1, kind: input, shape index: {}]   ;;  %s479_s2 = inlined_call_operand.vmem [shape: f32[1,128], index: 2, kind: input, shape index: {}]   ;;  %s480_s3 = inlined_call_operand.vmem [shape: bf16[128,128], index: 3, kind: output, shape index: {}]  }
   0x1 LB: > { %s340_s13 = sadd.s32 4294967295, %s425_s12   ;;  %p344_p0 = scmp.ge.s32.totalorder %s425_s12, 1  ;;  %s425_s12 = sphi %s447_s12, %s13_s12  }
   0x2   : > { %p138_p1 = scmp.lt.s32.totalorder %s425_s12, 3 }
   0x4   : > { %p139_p2 = pnand %p344_p0, %p138_p1 }
   0x5   : > { %s345_s14 = sshll.u32 (!%p139_p2), %s340_s13, 3  ;;  %v349_v0 = vld [vmem:[%s478_s1] ss:$0 sm:$0xff] (!%p139_p2) }
   0x6   : > { %142 = sbr.rel (%p139_p2) target bundleno = 34 (0x22), region = 32  ;;  %p163_p3 = scmp.lt.s32.totalorder (!%p139_p2), %s345_s14, 15  ;;  %v350_v13 = vld [vmem:[%s479_s2] ss:$0 sm:$0xff] (!%p139_p2) }
   0xd   : > { %s482_s14 = smov (!%p163_p3, %s345_s14), 15 }
   0xe   : > { %s346_s15 = sshll.u32 %s482_s14, 2 }
   0xf   : > { %s166_s18 = scalar_lea.vmem %s477_s0, %s346_s15  ;;  %s172_s25 = scalar_lea.vmem %s480_s3, %s346_s15 }
  0x10   : > { %v370_v1 = vld [vmem:[%s166_s18] sm:$0xff]   ;;  %v405_v2 = vld [vmem:[%s166_s18 + $0x8] sm:$0xff]   ;;  %v406_v3 = vld [vmem:[%s166_s18 + $0x10] sm:$0xff]  }
  0x11   : > { %v371_v4 = vunpack.c.l.bf16 %v370_v1  ;;  %v372_v5 = vunpack.c.h.bf16 %v370_v1  ;;  %v375_v6 = vunpack.c.l.bf16 %v405_v2  ;;  %v376_v7 = vunpack.c.h.bf16 %v405_v2  ;;  %v407_v8 = vld [vmem:[%s166_s18 + $0x18] sm:$0xff]  }
  0x12   : > { %v379_v9 = vunpack.c.l.bf16 %v406_v3  ;;  %v380_v10 = vunpack.c.h.bf16 %v406_v3  ;;  %v383_v11 = vunpack.c.l.bf16 %v407_v8  ;;  %v384_v12 = vunpack.c.h.bf16 %v407_v8 }
  0x13   : > { %v197_v14 = vmul.f32 %v371_v4, %v349_v0  ;;  %v198_v15 = vmul.f32 %v372_v5, %v349_v0  ;;  %v199_v16 = vmul.f32 %v375_v6, %v349_v0  ;;  %v200_v17 = vmul.f32 %v376_v7, %v349_v0 }
  0x14   : > { %v201_v18 = vmul.f32 %v379_v9, %v349_v0  ;;  %v202_v19 = vmul.f32 %v380_v10, %v349_v0  ;;  %v203_v20 = vmul.f32 %v383_v11, %v349_v0  ;;  %v204_v21 = vmul.f32 %v384_v12, %v349_v0 }
  0x15   : > { %v212_v22 = vadd.f32 %v350_v13, %v197_v14  ;;  %v213_v23 = vadd.f32 %v350_v13, %v198_v15  ;;  %v214_v24 = vadd.f32 %v350_v13, %v199_v16  ;;  %v215_v25 = vadd.f32 %v350_v13, %v200_v17 }
  0x16   : > { %v216_v26 = vadd.f32 %v350_v13, %v201_v18  ;;  %v217_v27 = vadd.f32 %v350_v13, %v202_v19  ;;  %v218_v28 = vadd.f32 %v350_v13, %v203_v20  ;;  %v219_v29 = vadd.f32 %v350_v13, %v204_v21 }
  0x17   : > { %vm220_vm0 = vcmp.ge.f32.partialorder %v212_v22, 0.0  ;;  %vm221_vm1 = vcmp.ge.f32.partialorder %v213_v23, 0.0  ;;  %v228_v30 = vmul.f32 0.2, %v212_v22  ;;  %v229_v31 = vmul.f32 0.2, %v213_v23 }
  0x18   : > { %vm222_vm2 = vcmp.ge.f32.partialorder %v214_v24, 0.0  ;;  %vm223_vm3 = vcmp.ge.f32.partialorder %v215_v25, 0.0  ;;  %v230_v32 = vmul.f32 0.2, %v214_v24  ;;  %v231_v33 = vmul.f32 0.2, %v215_v25 }
  0x19   : > { %v236_v34 = vsel %vm220_vm0, %v212_v22, %v228_v30  ;;  %v237_v35 = vsel %vm221_vm1, %v213_v23, %v229_v31  ;;  %vm224_vm4 = vcmp.ge.f32.partialorder %v216_v26, 0.0  ;;  %vm225_vm5 = vcmp.ge.f32.partialorder %v217_v27, 0.0 }
  0x1a   : > { %v388_v36 = vpack.c.bf16 %v237_v35, %v236_v34  ;;  %v238_v37 = vsel %vm222_vm2, %v214_v24, %v230_v32  ;;  %v239_v38 = vsel %vm223_vm3, %v215_v25, %v231_v33  ;;  %v232_v39 = vmul.f32 0.2, %v216_v26 }
  0x1b   : > { %v393_v40 = vpack.c.bf16 %v239_v38, %v238_v37  ;;  %v233_v41 = vmul.f32 0.2, %v217_v27  ;;  %vm226_vm6 = vcmp.ge.f32.partialorder %v218_v28, 0.0  ;;  %vm227_vm7 = vcmp.ge.f32.partialorder %v219_v29, 0.0 }
  0x1c   : > { %389 = vst [vmem:[%s172_s25] sm:$0xff] %v388_v36   ;;  %v240_v42 = vsel %vm224_vm4, %v216_v26, %v232_v39  ;;  %v234_v43 = vmul.f32 0.2, %v218_v28  ;;  %v235_v44 = vmul.f32 0.2, %v219_v29 }
  0x1d   : > { %408 = vst [vmem:[%s172_s25 + $0x8] sm:$0xff] %v393_v40   ;;  %v241_v45 = vsel %vm225_vm5, %v217_v27, %v233_v41 }
  0x1e   : > { %v398_v46 = vpack.c.bf16 %v241_v45, %v240_v42  ;;  %v242_v47 = vsel %vm226_vm6, %v218_v28, %v234_v43  ;;  %v243_v48 = vsel %vm227_vm7, %v219_v29, %v235_v44 }
  0x1f   : > { %v403_v49 = vpack.c.bf16 %v243_v48, %v242_v47 }
  0x20   : > { %409 = vst [vmem:[%s172_s25 + $0x10] sm:$0xff] %v398_v46  }
  0x21   : > { %410 = vst [vmem:[%s172_s25 + $0x18] sm:$0xff] %v403_v49  }
  0x22 PF: > { %s13_s12 = sadd.s32 1, %s425_s12  }
  0x23   : > { %p10_p4 = scmp.ge.s32.totalorder %s13_s12, 4  }
  0x25   :  { %12 = sbr.rel (!%p10_p4) target bundleno = 1 (0x1), region = 62 }

// kernel: discriminator_cycle_forward.13
= control target key start
LH: loop header
LB: loop body
LE: loop exit
PB: predicated region body
PF: predicated region fallthrough
CT: control target
= control target key end

     0   :  { %s899_s15 = smov 0   ;;  %s1027_s0 = inlined_call_operand.vmem [shape: bf16[32,512], index: 0, kind: input, shape index: {}]   ;;  %s1028_s1 = inlined_call_operand.vmem [shape: bf16[512,128], index: 1, kind: input, shape index: {}]   ;;  %s1029_s2 = inlined_call_operand.vmem [shape: bf16[32,128], index: 2, kind: output, shape index: {0}]   ;;  %s1030_s3 = inlined_call_operand.vmem [shape: f32[2,1,128], index: 3, kind: output, shape index: {1}]   ;;  %s1031_s4 = inlined_call_operand.vmem [shape: f32[2,1,128], index: 4, kind: output, shape index: {2}]  }
   0x1 LB: > { %s905_s16 = sadd.s32 4294967295, %s872_s15   ;;  %p722_p0 = scmp.ge.s32.totalorder %s872_s15, 1  ;;  %s872_s15 = sphi %s899_s15, %s15_s15  }
   0x2   : > { %p169_p1 = scmp.lt.s32.totalorder %s872_s15, 3 }
   0x4   : > { %p170_p2 = pnand %p722_p0, %p169_p1 }
   0x5   : > { %v828_v0 = vld [vmem:[%s1028_s1 + $0x40] sm:$0xff] (!%p170_p2)   ;;  %v832_v4 = vld [vmem:[%s1028_s1 + $0x48] sm:$0xff] (!%p170_p2)   ;;  %v836_v8 = vld [vmem:[%s1028_s1 + $0x50] sm:$0xff] (!%p170_p2)   ;;  %s723_s25 = sshll.u32 (!%p170_p2), %s905_s16, 1  ;;  %p215_p4 = scmp.lt.s32.totalorder (!%p170_p2), %s905_s16, 1 }
   0x6   : > { %173 = sbr.rel (%p170_p2) target bundleno = 276 (0x114), region = 28  ;;  %v829_v1 = vld [vmem:[%s1028_s1 + $0xc0] sm:$0xff] (!%p170_p2)   ;;  %776 = vmatprep.subr.bf16.mxu0 (!%p170_p2), %v828_v0  ;;  %v833_v5 = vld [vmem:[%s1028_s1 + $0xc8] sm:$0xff] (!%p170_p2)   ;;  %v837_v9 = vld [vmem:[%s1028_s1 + $0xd0] sm:$0xff] (!%p170_p2)   ;;  %p203_p3 = scmp.lt.s32.totalorder (!%p170_p2), %s723_s25, 3 }
   0x7   : > { %v830_v2 = vld [vmem:[%s1028_s1] sm:$0xff] (!%p170_p2)   ;;  %798 = vmatprep.subr.bf16.mxu1 (!%p170_p2), %v829_v1  ;;  %v834_v6 = vld [vmem:[%s1028_s1 + $0x8] sm:$0xff] (!%p170_p2)   ;;  %v838_v10 = vld [vmem:[%s1028_s1 + $0x10] sm:$0xff] (!%p170_p2)  }
   0x8   : > { %v831_v3 = vld [vmem:[%s1028_s1 + $0x80] sm:$0xff] (!%p170_p2)   ;;  %777 = vmatpush3.bf16.msra.mxu0 (!%p170_p2), %v830_v2  ;;  %v835_v7 = vld [vmem:[%s1028_s1 + $0x88] sm:$0xff] (!%p170_p2)   ;;  %v839_v11 = vld [vmem:[%s1028_s1 + $0x90] sm:$0xff] (!%p170_p2)  }
   0x9   : > { %799 = vmatpush3.bf16.msra.mxu1 (!%p170_p2), %v831_v3  ;;  %778 = vmatprep.subr.bf16.mxu0 (!%p170_p2), %v832_v4  ;;  %v840_v12 = vld [vmem:[%s1028_s1 + $0x58] sm:$0xff] (!%p170_p2)   ;;  %v844_v16 = vld [vmem:[%s1028_s1 + $0x60] sm:$0xff] (!%p170_p2)   ;;  %v848_v20 = vld [vmem:[%s1028_s1 + $0x68] sm:$0xff] (!%p170_p2)  }
   0xa   : > { %800 = vmatprep.subr.bf16.mxu1 (!%p170_p2), %v833_v5  ;;  %v841_v13 = vld [vmem:[%s1028_s1 + $0xd8] sm:$0xff] (!%p170_p2)   ;;  %v845_v17 = vld [vmem:[%s1028_s1 + $0xe0] sm:$0xff] (!%p170_p2)   ;;  %v849_v21 = vld [vmem:[%s1028_s1 + $0xe8] sm:$0xff] (!%p170_p2)  }
   0xb   : > { %v842_v14 = vld [vmem:[%s1028_s1 + $0x18] sm:$0xff] (!%p170_p2)   ;;  %v846_v18 = vld [vmem:[%s1028_s1 + $0x20] sm:$0xff] (!%p170_p2)   ;;  %v850_v22 = vld [vmem:[%s1028_s1 + $0x28] sm:$0xff] (!%p170_p2)  }
   0xc   : > { %779 = vmatpush3.bf16.msra.mxu0 (!%p170_p2), %v834_v6  ;;  %v843_v15 = vld [vmem:[%s1028_s1 + $0x98] sm:$0xff] (!%p170_p2)   ;;  %v847_v19 = vld [vmem:[%s1028_s1 + $0xa0] sm:$0xff] (!%p170_p2)   ;;  %v851_v23 = vld [vmem:[%s1028_s1 + $0xa8] sm:$0xff] (!%p170_p2)  }
   0xd   : > { %801 = vmatpush3.bf16.msra.mxu1 %v835_v7  ;;  %780 = vmatprep.subr.bf16.mxu0 %v836_v8  ;;  %s1033_s25 = smov (!%p203_p3, %s723_s25), 3  ;;  %v852_v24 = vld [vmem:[%s1028_s1 + $0x70] sm:$0xff]   ;;  %v856_v28 = vld [vmem:[%s1028_s1 + $0x78] sm:$0xff]   ;;  %s1035_s16 = smov (!%p215_p4, %s905_s16), 1 }
   0xe   : > { %802 = vmatprep.subr.bf16.mxu1 %v837_v9  ;;  %v853_v25 = vld [vmem:[%s1028_s1 + $0xf0] sm:$0xff]   ;;  %s768_s24 = sshll.u32 %s1033_s25, 4  ;;  %v857_v29 = vld [vmem:[%s1028_s1 + $0xf8] sm:$0xff]   ;;  %s727_s13 = sshll.u32 %s1033_s25, 2 }
   0xf   : > { %v854_v26 = vld [vmem:[%s1028_s1 + $0x30] sm:$0xff]   ;;  %s207_s8 = scalar_lea.vmem %s1027_s0, %s768_s24  ;;  %v858_v30 = vld [vmem:[%s1028_s1 + $0x38] sm:$0xff]   ;;  %s213_s18 = scalar_lea.vmem %s1029_s2, %s727_s13 }
  0x10   : > { %781 = vmatpush3.bf16.msra.mxu0 %v838_v10  ;;  %v855_v27 = vld [vmem:[%s1028_s1 + $0xb0] sm:$0xff]   ;;  %v859_v31 = vld [vmem:[%s1028_s1 + $0xb8] sm:$0xff]   ;;  %s217_s20 = scalar_lea.vmem %s1030_s3, %s1035_s16  ;;  %s220_s23 = scalar_lea.vmem %s1031_s4, %s1035_s16 }
  0x11   : > { %803 = vmatpush3.bf16.msra.mxu1 %v839_v11  ;;  %782 = vmatprep.subr.bf16.mxu0 %v840_v12  ;;  %v860_v32 = vld [vmem:[%s207_s8] ss:$16 sps:$4 sm:$0xff]   ;;  %v862_v33 = vld [vmem:[%s207_s8 + $0x4] ss:$16 sps:$4 sm:$0xff]   ;;  %v863_v34 = vld [vmem:[%s207_s8 + $0x8] ss:$16 sps:$4 sm:$0xff]  }
  0x12   : > { %804 = vmatprep.subr.bf16.mxu1 %v841_v13  ;;  %v865_v35 = vld [vmem:[%s207_s8 + $0xc] ss:$16 sps:$4 sm:$0xff]   ;;  %534 = vmatprep.mubr.bf16.mxu0 %v862_v33 }
  0x13   : > { %575 = vmatprep.mubr.bf16.mxu1 %v865_v35 }
  0x14   : > { %783 = vmatpush3.bf16.msra.mxu0 %v842_v14 }
  0x15   : > { %805 = vmatpush3.bf16.msra.mxu1 %v843_v15  ;;  %784 = vmatprep.subr.bf16.mxu0 %v844_v16 }
  0x16   : > { %806 = vmatprep.subr.bf16.mxu1 %v845_v17 }
  0x18   : > { %785 = vmatpush3.bf16.msra.mxu0 %v846_v18 }
  0x19   : > { %807 = vmatpush3.bf16.msra.mxu1 %v847_v19  ;;  %786 = vmatprep.subr.bf16.mxu0 %v848_v20 }
  0x1a   : > { %808 = vmatprep.subr.bf16.mxu1 %v849_v21 }
  0x1c   : > { %787 = vmatpush3.bf16.msra.mxu0 %v850_v22 }
  0x1d   : > { %809 = vmatpush3.bf16.msra.mxu1 %v851_v23  ;;  %788 = vmatprep.subr.bf16.mxu0 %v852_v24 }
  0x1e   : > { %810 = vmatprep.subr.bf16.mxu1 %v853_v25 }
  0x20   : > { %789 = vmatpush3.bf16.msra.mxu0 %v854_v26 }
  0x21   : > { %811 = vmatpush3.bf16.msra.mxu1 %v855_v27  ;;  %790 = vmatprep.subr.bf16.mxu0 %v856_v28 }
  0x22   : > { %812 = vmatprep.subr.bf16.mxu1 %v857_v29 }
  0x24   : > { %791 = vmatpush3.bf16.msra.mxu0 %v858_v30 }
  0x25   : > { %813 = vmatpush3.bf16.msra.mxu1 %v859_v31 }
  0x27   : > { %535 = vmatmul.mubr.bf16.vlgmr.msra.gmra.mrb[0].mxu0 %v860_v32 }
  0x28   : > { %576 = vmatmul.mubr.bf16.vlgmr.msra.gmra.mrb[0].mxu1 %v863_v34 }
  0xfa   : > { %v792_v36 = vpop.f32.mrb[0].mxu0 }
  0xfb   : > { %v814_v37 = vpop.f32.mrb[0].mxu1  ;;  %v793_v38 = vpop.f32.mrb[1].mxu0 }
  0xfc   : > { %v794_v39 = vadd.f32 %v793_v38, %v792_v36  ;;  %v815_v40 = vpop.f32.mrb[1].mxu1  ;;  %v795_v41 = vpop.f32.mrb[2].mxu0 }
  0xfd   : > { %v816_v42 = vadd.f32 %v815_v40, %v814_v37  ;;  %v817_v43 = vpop.f32.mrb[2].mxu1  ;;  %v796_v44 = vpop.f32.mrb[3].mxu0 }
  0xfe   : > { %v797_v45 = vadd.f32 %v796_v44, %v795_v41  ;;  %v818_v46 = vpop.f32.mrb[3].mxu1 }
  0xff   : > { %v578_v47 = vadd.f32 %v816_v42, %v794_v39  ;;  %v819_v48 = vadd.f32 %v818_v46, %v817_v43 }
 0x101   : > { %v581_v49 = vadd.f32 %v819_v48, %v797_v45  ;;  %v602_v50 = vmul.f32 %v578_v47, %v578_v47 }
 0x103   : > { %v774_v51 = vpack.c.bf16 %v581_v49, %v578_v47  ;;  %v594_v52 = vadd.f32 %v581_v49, %v578_v47  ;;  %v603_v53 = vmul.f32 %v581_v49, %v581_v49 }
 0x105   : > { %775 = vst [vmem:[%s213_s18] sm:$0xff] %v774_v51   ;;  %v595_v54 = vrot.slane %v594_v52, 4  ;;  %v604_v55 = vadd.f32 %v603_v53, %v602_v50 }
 0x107   : > { %v596_v56 = vadd.f32 %v595_v54, %v594_v52  ;;  %v605_v57 = vrot.slane %v604_v55, 4 }
 0x109   : > { %v597_v58 = vrot.slane %v596_v56, 2  ;;  %v606_v59 = vadd.f32 %v605_v57, %v604_v55 }
 0x10b   : > { %v598_v60 = vadd.f32 %v597_v58, %v596_v56  ;;  %v607_v61 = vrot.slane %v606_v59, 2 }
 0x10d   : > { %v599_v62 = vrot.slane %v598_v60, 1  ;;  %v608_v63 = vadd.f32 %v607_v61, %v606_v59 }
 0x10f   : > { %v600_v0 = vadd.f32 %v599_v62, %v598_v60  ;;  %v609_v1 = vrot.slane %v608_v63, 1 }
 0x111   : > { %601 = vst [vmem:[%s217_s20] sm:$0x1] %v600_v0  ;;  %v610_v2 = vadd.f32 %v609_v1, %v608_v63 }
 0x113   : > { %611 = vst [vmem:[%s220_s23] sm:$0x1] %v610_v2 }
 0x114 PF: > { %s15_s15 = sadd.s32 1, %s872_s15  }
 0x115   : > { %p12_p5 = scmp.ge.s32.totalorder %s15_s15, 4  }
 0x117   :  { %14 = sbr.rel (!%p12_p5) target bundleno = 1 (0x1), region = 82 }

// kernel: discriminator_cycle_forward.14
= control target key start
LH: loop header
LB: loop body
LE: loop exit
PB: predicated region body
PF: predicated region fallthrough
CT: control target
= control target key end

     0   :  { %s330_s12 = smov 0   ;;  %s353_s0 = inlined_call_operand.vmem [shape: bf16[32,128], index: 0, kind: input, shape index: {}]   ;;  %s354_s1 = inlined_call_operand.vmem [shape: f32[1,128], index: 1, kind: input, shape index: {}]   ;;  %s355_s2 = inlined_call_operand.vmem [shape: f32[1,128], index: 2, kind: input, shape index: {}]   ;;  %s356_s3 = inlined_call_operand.vmem [shape: bf16[32,128], index: 3, kind: output, shape index: {}]  }
   0x1 LB: > { %s268_s13 = sadd.s32 4294967295, %s308_s12   ;;  %p272_p0 = scmp.ge.s32.totalorder %s308_s12, 1  ;;  %s308_s12 = sphi %s330_s12, %s13_s12  }
   0x2   : > { %p138_p1 = scmp.lt.s32.totalorder %s308_s12, 3 }
   0x4   : > { %p139_p2 = pnand %p272_p0, %p138_p1 }
   0x5   : > { %s273_s14 = sshll.u32 (!%p139_p2), %s268_s13, 1  ;;  %v277_v1 = vld [vmem:[%s354_s1] ss:$0 sm:$0xff] (!%p139_p2) }
   0x6   : > { %142 = sbr.rel (%p139_p2) target bundleno = 29 (0x1d), region = 32  ;;  %p163_p3 = scmp.lt.s32.totalorder (!%p139_p2), %s273_s14, 3  ;;  %v278_v4 = vld [vmem:[%s355_s2] ss:$0 sm:$0xff] (!%p139_p2) }
   0xd   : > { %s358_s14 = smov (!%p163_p3, %s273_s14), 3 }
   0xe   : > { %s274_s15 = sshll.u32 %s358_s14, 2 }
   0xf   : > { %s166_s18 = scalar_lea.vmem %s353_s0, %s274_s15  ;;  %s172_s25 = scalar_lea.vmem %s356_s3, %s274_s15 }
  0x10   : > { %v286_v0 = vld [vmem:[%s166_s18] sm:$0xff]  }
  0x11   : > { %v287_v2 = vunpack.c.l.bf16 %v286_v0  ;;  %v288_v3 = vunpack.c.h.bf16 %v286_v0 }
  0x13   : > { %v185_v5 = vmul.f32 %v287_v2, %v277_v1  ;;  %v186_v6 = vmul.f32 %v288_v3, %v277_v1 }
  0x15   : > { %v194_v7 = vadd.f32 %v278_v4, %v185_v5  ;;  %v195_v8 = vadd.f32 %v278_v4, %v186_v6 }
  0x17   : > { %vm196_vm0 = vcmp.ge.f32.partialorder %v194_v7, 0.0  ;;  %vm197_vm1 = vcmp.ge.f32.partialorder %v195_v8, 0.0  ;;  %v198_v9 = vmul.f32 0.2, %v194_v7  ;;  %v199_v10 = vmul.f32 0.2, %v195_v8 }
  0x19   : > { %v200_v11 = vsel %vm196_vm0, %v194_v7, %v198_v9  ;;  %v201_v12 = vsel %vm197_vm1, %v195_v8, %v199_v10 }
  0x1a   : > { %v292_v13 = vpack.c.bf16 %v201_v12, %v200_v11 }
  0x1c   : > { %293 = vst [vmem:[%s172_s25] sm:$0xff] %v292_v13  }
  0x1d PF: > { %s13_s12 = sadd.s32 1, %s308_s12  }
  0x1e   : > { %p10_p4 = scmp.ge.s32.totalorder %s13_s12, 4  }
  0x20   :  { %12 = sbr.rel (!%p10_p4) target bundleno = 1 (0x1), region = 62 }

// kernel: discriminator_cycle_forward.15
= control target key start
LH: loop header
LB: loop body
LE: loop exit
PB: predicated region body
PF: predicated region fallthrough
CT: control target
= control target key end

     0   :  { %s1187_s1 = inlined_call_operand.vmem [shape: bf16[1024,128], index: 1, kind: input, shape index: {}]   ;;  %s1188_s0 = inlined_call_operand.vmem [shape: bf16[8,1024], index: 0, kind: input, shape index: {}]   ;;  %s1189_s2 = inlined_call_operand.vmem [shape: bf16[8,128], index: 2, kind: output, shape index: {}]  }
   0x1   :  { %v889_v0 = vld [vmem:[%s1187_s1 + $0x40] sm:$0xff]   ;;  %v893_v4 = vld [vmem:[%s1187_s1 + $0x48] sm:$0xff]   ;;  %v897_v8 = vld [vmem:[%s1187_s1 + $0x50] sm:$0xff]  }
   0x2   :  { %v890_v1 = vld [vmem:[%s1187_s1 + $0xc0] sm:$0xff]   ;;  %801 = vmatprep.subr.bf16.mxu0 %v889_v0  ;;  %v894_v5 = vld [vmem:[%s1187_s1 + $0xc8] sm:$0xff]   ;;  %v898_v9 = vld [vmem:[%s1187_s1 + $0xd0] sm:$0xff]  }
   0x3   :  { %v891_v2 = vld [vmem:[%s1187_s1] sm:$0xff]   ;;  %823 = vmatprep.subr.bf16.mxu1 %v890_v1  ;;  %v895_v6 = vld [vmem:[%s1187_s1 + $0x8] sm:$0xff]   ;;  %v899_v10 = vld [vmem:[%s1187_s1 + $0x10] sm:$0xff]  }
   0x4   :  { %v892_v3 = vld [vmem:[%s1187_s1 + $0x80] sm:$0xff]   ;;  %802 = vmatpush3.bf16.msra.mxu0 %v891_v2  ;;  %v896_v7 = vld [vmem:[%s1187_s1 + $0x88] sm:$0xff]   ;;  %v900_v11 = vld [vmem:[%s1187_s1 + $0x90] sm:$0xff]  }
   0x5   :  { %824 = vmatpush3.bf16.msra.mxu1 %v892_v3  ;;  %803 = vmatprep.subr.bf16.mxu0 %v893_v4  ;;  %v901_v12 = vld [vmem:[%s1187_s1 + $0x58] sm:$0xff]   ;;  %v905_v16 = vld [vmem:[%s1187_s1 + $0x60] sm:$0xff]   ;;  %v909_v20 = vld [vmem:[%s1187_s1 + $0x68] sm:$0xff]  }
   0x6   :  { %825 = vmatprep.subr.bf16.mxu1 %v894_v5  ;;  %v902_v13 = vld [vmem:[%s1187_s1 + $0xd8] sm:$0xff]   ;;  %v906_v17 = vld [vmem:[%s1187_s1 + $0xe0] sm:$0xff]   ;;  %v910_v21 = vld [vmem:[%s1187_s1 + $0xe8] sm:$0xff]  }
   0x7   :  { %v903_v14 = vld [vmem:[%s1187_s1 + $0x18] sm:$0xff]   ;;  %v907_v18 = vld [vmem:[%s1187_s1 + $0x20] sm:$0xff]   ;;  %v911_v22 = vld [vmem:[%s1187_s1 + $0x28] sm:$0xff]  }
   0x8   :  { %804 = vmatpush3.bf16.msra.mxu0 %v895_v6  ;;  %v904_v15 = vld [vmem:[%s1187_s1 + $0x98] sm:$0xff]   ;;  %v908_v19 = vld [vmem:[%s1187_s1 + $0xa0] sm:$0xff]   ;;  %v912_v23 = vld [vmem:[%s1187_s1 + $0xa8] sm:$0xff]  }
   0x9   :  { %826 = vmatpush3.bf16.msra.mxu1 %v896_v7  ;;  %805 = vmatprep.subr.bf16.mxu0 %v897_v8  ;;  %v913_v24 = vld [vmem:[%s1187_s1 + $0x70] sm:$0xff]   ;;  %v917_v28 = vld [vmem:[%s1187_s1 + $0x78] sm:$0xff]   ;;  %v12_v32 = vld [vmem:[%s1188_s0] sm:$0xff] }
   0xa   :  { %827 = vmatprep.subr.bf16.mxu1 %v898_v9  ;;  %v914_v25 = vld [vmem:[%s1187_s1 + $0xf0] sm:$0xff]   ;;  %v918_v29 = vld [vmem:[%s1187_s1 + $0xf8] sm:$0xff]   ;;  %v13_v33 = vld [vmem:[%s1188_s0 + $0x8] sm:$0xff]  ;;  %v728_v34 = vcombine.low %v12_v32, %v12_v32  ;;  %v729_v35 = vcombine.high %v12_v32, %v12_v32 }
   0xb   :  { %v915_v26 = vld [vmem:[%s1187_s1 + $0x30] sm:$0xff]   ;;  %v919_v30 = vld [vmem:[%s1187_s1 + $0x38] sm:$0xff]   ;;  %v730_v36 = vcombine.low %v13_v33, %v13_v33  ;;  %v731_v37 = vcombine.high %v13_v33, %v13_v33  ;;  %v925_v38 = vld [vmem:[%s1187_s1 + $0x140] sm:$0xff]  }
   0xc   :  { %806 = vmatpush3.bf16.msra.mxu0 %v899_v10  ;;  %v916_v27 = vld [vmem:[%s1187_s1 + $0xb0] sm:$0xff]   ;;  %v920_v31 = vld [vmem:[%s1187_s1 + $0xb8] sm:$0xff]   ;;  %v926_v39 = vld [vmem:[%s1187_s1 + $0x1c0] sm:$0xff]   ;;  %588 = vmatprep.mubr.bf16.mxu0 %v729_v35 }
   0xd   :  { %828 = vmatpush3.bf16.msra.mxu1 %v900_v11  ;;  %807 = vmatprep.subr.bf16.mxu0 %v901_v12  ;;  %v927_v40 = vld [vmem:[%s1187_s1 + $0x100] sm:$0xff]   ;;  %v929_v42 = vld [vmem:[%s1187_s1 + $0x148] sm:$0xff]   ;;  %v933_v46 = vld [vmem:[%s1187_s1 + $0x150] sm:$0xff]  }
   0xe   :  { %829 = vmatprep.subr.bf16.mxu1 %v902_v13  ;;  %628 = vmatprep.mubr.bf16.mxu1 %v731_v37  ;;  %v928_v41 = vld [vmem:[%s1187_s1 + $0x180] sm:$0xff]   ;;  %v930_v43 = vld [vmem:[%s1187_s1 + $0x1c8] sm:$0xff]   ;;  %v934_v47 = vld [vmem:[%s1187_s1 + $0x1d0] sm:$0xff]  }
   0xf   :  { %v931_v44 = vld [vmem:[%s1187_s1 + $0x108] sm:$0xff]   ;;  %v935_v48 = vld [vmem:[%s1187_s1 + $0x110] sm:$0xff]   ;;  %v937_v50 = vld [vmem:[%s1187_s1 + $0x158] sm:$0xff]  }
  0x10   :  { %808 = vmatpush3.bf16.msra.mxu0 %v903_v14  ;;  %v932_v45 = vld [vmem:[%s1187_s1 + $0x188] sm:$0xff]   ;;  %v936_v49 = vld [vmem:[%s1187_s1 + $0x190] sm:$0xff]   ;;  %v938_v51 = vld [vmem:[%s1187_s1 + $0x1d8] sm:$0xff]  }
  0x11   :  { %830 = vmatpush3.bf16.msra.mxu1 %v904_v15  ;;  %809 = vmatprep.subr.bf16.mxu0 %v905_v16  ;;  %v939_v52 = vld [vmem:[%s1187_s1 + $0x118] sm:$0xff]   ;;  %v941_v54 = vld [vmem:[%s1187_s1 + $0x160] sm:$0xff]   ;;  %v945_v58 = vld [vmem:[%s1187_s1 + $0x168] sm:$0xff]  }
  0x12   :  { %831 = vmatprep.subr.bf16.mxu1 %v906_v17  ;;  %v940_v53 = vld [vmem:[%s1187_s1 + $0x198] sm:$0xff]   ;;  %v942_v55 = vld [vmem:[%s1187_s1 + $0x1e0] sm:$0xff]   ;;  %v946_v59 = vld [vmem:[%s1187_s1 + $0x1e8] sm:$0xff]  }
  0x13   :  { %v943_v56 = vld [vmem:[%s1187_s1 + $0x120] sm:$0xff]   ;;  %v947_v60 = vld [vmem:[%s1187_s1 + $0x128] sm:$0xff]   ;;  %v949_v62 = vld [vmem:[%s1187_s1 + $0x170] sm:$0xff]  }
  0x14   :  { %810 = vmatpush3.bf16.msra.mxu0 %v907_v18  ;;  %v944_v57 = vld [vmem:[%s1187_s1 + $0x1a0] sm:$0xff]   ;;  %v948_v61 = vld [vmem:[%s1187_s1 + $0x1a8] sm:$0xff]   ;;  %v950_v63 = vld [vmem:[%s1187_s1 + $0x1f0] sm:$0xff]  }
  0x15   :  { %832 = vmatpush3.bf16.msra.mxu1 %v908_v19  ;;  %811 = vmatprep.subr.bf16.mxu0 %v909_v20  ;;  %v951_v0 = vld [vmem:[%s1187_s1 + $0x130] sm:$0xff]   ;;  %v953_v2 = vld [vmem:[%s1187_s1 + $0x178] sm:$0xff]  }
  0x16   :  { %833 = vmatprep.subr.bf16.mxu1 %v910_v21  ;;  %v952_v1 = vld [vmem:[%s1187_s1 + $0x1b0] sm:$0xff]   ;;  %v954_v3 = vld [vmem:[%s1187_s1 + $0x1f8] sm:$0xff]  }
  0x17   :  { %v955_v4 = vld [vmem:[%s1187_s1 + $0x138] sm:$0xff]   ;;  %v14_v6 = vld [vmem:[%s1188_s0 + $0x10] sm:$0xff] }
  0x18   :  { %812 = vmatpush3.bf16.msra.mxu0 %v911_v22  ;;  %v956_v5 = vld [vmem:[%s1187_s1 + $0x1b8] sm:$0xff]   ;;  %v732_v7 = vcombine.low %v14_v6, %v14_v6  ;;  %v733_v8 = vcombine.high %v14_v6, %v14_v6 }
  0x19   :  { %834 = vmatpush3.bf16.msra.mxu1 %v912_v23  ;;  %813 = vmatprep.subr.bf16.mxu0 %v913_v24  ;;  %v15_v9 = vld [vmem:[%s1188_s0 + $0x18] sm:$0xff] }
  0x1a   :  { %835 = vmatprep.subr.bf16.mxu1 %v914_v25  ;;  %v734_v10 = vcombine.low %v15_v9, %v15_v9  ;;  %v735_v11 = vcombine.high %v15_v9, %v15_v9 }
  0x1c   :  { %814 = vmatpush3.bf16.msra.mxu0 %v915_v26 }
  0x1d   :  { %836 = vmatpush3.bf16.msra.mxu1 %v916_v27  ;;  %815 = vmatprep.subr.bf16.mxu0 %v917_v28 }
  0x1e   :  { %837 = vmatprep.subr.bf16.mxu1 %v918_v29 }
  0x20   :  { %816 = vmatpush3.bf16.msra.mxu0 %v919_v30 }
  0x21   :  { %838 = vmatpush3.bf16.msra.mxu1 %v920_v31  ;;  %845 = vmatprep.subr.bf16.mxu0 %v925_v38 }
  0x22   :  { %867 = vmatprep.subr.bf16.mxu1 %v926_v39 }
  0x23   :  { %589 = vmatmul.mubr.bf16.vlgmr.msra.gmra.mrb[0].mxu0 %v728_v34 }
  0x24   :  { %629 = vmatmul.mubr.bf16.vlgmr.msra.gmra.mrb[0].mxu1 %v730_v36  ;;  %846 = vmatpush3.bf16.msra.mxu0 %v927_v40 }
  0x25   :  { %868 = vmatpush3.bf16.msra.mxu1 %v928_v41  ;;  %847 = vmatprep.subr.bf16.mxu0 %v929_v42 }
  0x26   :  { %869 = vmatprep.subr.bf16.mxu1 %v930_v43  ;;  %668 = vmatprep.mubr.bf16.mxu0 %v733_v8 }
  0x27   :  { %708 = vmatprep.mubr.bf16.mxu1 %v735_v11 }
  0x28   :  { %848 = vmatpush3.bf16.msra.mxu0 %v931_v44 }
  0x29   :  { %870 = vmatpush3.bf16.msra.mxu1 %v932_v45  ;;  %849 = vmatprep.subr.bf16.mxu0 %v933_v46 }
  0x2a   :  { %871 = vmatprep.subr.bf16.mxu1 %v934_v47 }
  0x2c   :  { %850 = vmatpush3.bf16.msra.mxu0 %v935_v48 }
  0x2d   :  { %872 = vmatpush3.bf16.msra.mxu1 %v936_v49  ;;  %851 = vmatprep.subr.bf16.mxu0 %v937_v50 }
  0x2e   :  { %873 = vmatprep.subr.bf16.mxu1 %v938_v51 }
  0x30   :  { %852 = vmatpush3.bf16.msra.mxu0 %v939_v52 }
  0x31   :  { %874 = vmatpush3.bf16.msra.mxu1 %v940_v53  ;;  %853 = vmatprep.subr.bf16.mxu0 %v941_v54 }
  0x32   :  { %875 = vmatprep.subr.bf16.mxu1 %v942_v55 }
  0x34   :  { %854 = vmatpush3.bf16.msra.mxu0 %v943_v56 }
  0x35   :  { %876 = vmatpush3.bf16.msra.mxu1 %v944_v57  ;;  %855 = vmatprep.subr.bf16.mxu0 %v945_v58 }
  0x36   :  { %877 = vmatprep.subr.bf16.mxu1 %v946_v59 }
  0x38   :  { %856 = vmatpush3.bf16.msra.mxu0 %v947_v60 }
  0x39   :  { %878 = vmatpush3.bf16.msra.mxu1 %v948_v61  ;;  %857 = vmatprep.subr.bf16.mxu0 %v949_v62 }
  0x3a   :  { %879 = vmatprep.subr.bf16.mxu1 %v950_v63 }
  0x3c   :  { %858 = vmatpush3.bf16.msra.mxu0 %v951_v0 }
  0x3d   :  { %880 = vmatpush3.bf16.msra.mxu1 %v952_v1  ;;  %859 = vmatprep.subr.bf16.mxu0 %v953_v2 }
  0x3e   :  { %881 = vmatprep.subr.bf16.mxu1 %v954_v3 }
  0x40   :  { %860 = vmatpush3.bf16.msra.mxu0 %v955_v4 }
  0x41   :  { %882 = vmatpush3.bf16.msra.mxu1 %v956_v5 }
  0x43   :  { %669 = vmatmul.mubr.bf16.vlgmr.msra.gmra.mrb[4].mxu0 %v732_v7 }
  0x44   :  { %709 = vmatmul.mubr.bf16.vlgmr.msra.gmra.mrb[4].mxu1 %v734_v10 }
  0xf6   :  { %v817_v12 = vpop.f32.mrb[0].mxu0 }
  0xf7   :  { %v839_v13 = vpop.f32.mrb[0].mxu1  ;;  %v818_v14 = vpop.f32.mrb[1].mxu0 }
  0xf8   :  { %v840_v15 = vpop.f32.mrb[1].mxu1  ;;  %v819_v16 = vadd.f32 %v818_v14, %v817_v12  ;;  %v820_v18 = vpop.f32.mrb[2].mxu0 }
  0xf9   :  { %v841_v17 = vadd.f32 %v840_v15, %v839_v13  ;;  %v842_v19 = vpop.f32.mrb[2].mxu1  ;;  %v821_v20 = vpop.f32.mrb[3].mxu0 }
  0xfa   :  { %v843_v21 = vpop.f32.mrb[3].mxu1 }
  0xfb   :  { %v631_v22 = vadd.f32 %v841_v17, %v819_v16 }
 0x116   :  { %v861_v23 = vpop.f32.mrb[4].mxu0 }
 0x117   :  { %v883_v24 = vpop.f32.mrb[4].mxu1  ;;  %v862_v25 = vpop.f32.mrb[5].mxu0 }
 0x118   :  { %v884_v26 = vpop.f32.mrb[5].mxu1  ;;  %v863_v27 = vadd.f32 %v862_v25, %v861_v23  ;;  %v864_v29 = vpop.f32.mrb[6].mxu0 }
 0x119   :  { %v885_v28 = vadd.f32 %v884_v26, %v883_v24  ;;  %v886_v30 = vpop.f32.mrb[6].mxu1  ;;  %v865_v31 = vpop.f32.mrb[7].mxu0 }
 0x11a   :  { %v887_v32 = vpop.f32.mrb[7].mxu1  ;;  %v671_v33 = vadd.f32 %v863_v27, %v631_v22 }
 0x11c   :  { %v711_v34 = vadd.f32 %v885_v28, %v671_v33 }
 0x11e   :  { %v800_v35 = vmul.f32 -1.442695, %v711_v34 }
 0x120   :  { %961 = vpow2.f32 %v800_v35 }
 0x12a   :  { %v962_v36 = vpop.eup %961 }
 0x12b   :  { %v719_v37 = vadd.f32 1.0, %v962_v36 }
 0x12d   :  { %963 = vrcp.f32 %v719_v37 }
 0x137   :  { %v964_v38 = vpop.eup %963 }
 0x138   :  { %v722_v39 = vpack.c.bf16 %v964_v38, %v964_v38 }
 0x13a   :  { %723 = vst [vmem:[%s1189_s2] sm:$0xf] %v722_v39 }

</bundles_post_ra>
